<compile_context>
chip_gen: v5e
topology: v5e:2x2
jax: 0.10.0
libtpu: 0.0.40
codegen_flags: <defaults>
</compile_context>

<pallas_src>
import functools

import jax
import jax.numpy as jnp
from jax.experimental import pallas as pl
from jax.experimental.pallas import tpu as pltpu


# ---------------------------------------------------------------------------
# Pallas kernel: fused img2windows -> window attention -> windows2img.
# ---------------------------------------------------------------------------
def _window_attn_kernel(qkv_ref, o_ref, q2d, k2d, v2d, o2d, *,
                        scale, num_heads, head_dim, H_sp, W_sp,
                        windows_per_block):
    # qkv_ref : (3, 1, H_sp, Wb*W_sp, C)  input-dtype VMEM tile (q, k, v stacked)
    # o_ref   : (1, H_sp, Wb*W_sp, C)     output-dtype VMEM tile
    # q2d/k2d/v2d : (S, C) bf16 scratch   (flattened window, MXU input dtype)
    # o2d     : (S, C) f32 scratch        (per-window accumulator, all heads)
    for w in range(windows_per_block):            # static unroll over windows
        c0 = w * W_sp

        # ---- on-chip img2windows: gather window rows into (S, C) scratch ----
        for h in range(H_sp):
            r0 = h * W_sp
            # fold scale into q once (f32 multiply, then cast to bf16)
            q2d[r0:r0 + W_sp, :] = (
                qkv_ref[0, 0, h, c0:c0 + W_sp, :] * scale).astype(q2d.dtype)
            k2d[r0:r0 + W_sp, :] = qkv_ref[1, 0, h, c0:c0 + W_sp, :].astype(k2d.dtype)
            v2d[r0:r0 + W_sp, :] = qkv_ref[2, 0, h, c0:c0 + W_sp, :].astype(v2d.dtype)

        qw = q2d[...]
        kw = k2d[...]
        vw = v2d[...]

        # ---- per-head attention; result stored directly into o2d lanes ----
        for hh in range(num_heads):               # static unroll over heads
            lo = hh * head_dim
            hi = lo + head_dim
            qh = qw[:, lo:hi]                     # (S, hd) bf16
            kh = kw[:, lo:hi]
            vh = vw[:, lo:hi]

            # scores: contract last axes directly, f32 accumulation on the MXU
            s = jnp.einsum('sd,td->st', qh, kh,
                           preferred_element_type=jnp.float32)

            # numerically-stable softmax in f32 (matches F.softmax dim=-1)
            m = jnp.max(s, axis=-1, keepdims=True)
            p = jnp.exp(s - m)
            denom = jnp.sum(p, axis=-1, keepdims=True)
            p = p * pl.reciprocal(denom, approx=True)

            # attn_drop has p=0.0 -> identity

            o = jnp.einsum('st,td->sd', p.astype(vh.dtype), vh,
                           preferred_element_type=jnp.float32)
            o2d[:, lo:hi] = o                     # no concat; bounded liveness

        # ---- on-chip windows2img: scatter window output back into o_ref ----
        for h in range(H_sp):
            r0 = h * W_sp
            o_ref[0, h, c0:c0 + W_sp, :] = o2d[r0:r0 + W_sp, :].astype(o_ref.dtype)


# ---------------------------------------------------------------------------
# Tiling heuristics (generation aware).
# ---------------------------------------------------------------------------
def _vmem_capacity_bytes():
    try:
        info = pltpu.get_tpu_info()
        return int(getattr(info, "vmem_capacity_bytes", 64 << 20))
    except Exception:
        return 64 << 20


def _pick_windows_per_block(nW, W_sp, window_bytes, outer_steps, budget_bytes,
                            max_unroll=8, min_total_steps=8):
    """Windows per block along W.

    Hard constraint: (Wb*W_sp) % 8 == 0 or Wb == nW   ((8,128) block rule).
    Soft constraints (relaxed in order): double-buffered working set
    (2 x (3 qkv + 1 out) blocks = 8*Wb*window_bytes) within the VMEM budget,
    bounded static unroll, and >= min_total_steps grid steps so both v7x
    TensorCores get work and prefetch/writeback overlaps.
    """
    divisors = [d for d in range(1, nW + 1) if nW % d == 0]
    aligned = [d for d in divisors if (d * W_sp) % 8 == 0 or d == nW]
    if not aligned:
        aligned = [nW]

    def resident(d):
        return 8 * d * window_bytes

    best = None
    for d in aligned:
        if (resident(d) <= budget_bytes and d <= max_unroll
                and outer_steps * (nW // d) >= min_total_steps):
            if best is None or d > best:
                best = d
    if best is None:  # relax the min-steps requirement
        for d in aligned:
            if resident(d) <= budget_bytes and d <= max_unroll:
                if best is None or d > best:
                    best = d
    if best is None:  # alignment is the only hard requirement
        best = min(aligned)
    return best


# ---------------------------------------------------------------------------
# pallas_call wrapper.
# ---------------------------------------------------------------------------
def _window_attention_pallas(qkv5, scale, num_heads, head_dim, H_sp, W_sp):
    """qkv5: (3, B, H, W, C). Returns (B, H, W, C) in qkv5.dtype."""
    _, B, H, W, C = qkv5.shape
    nH, nW = H // H_sp, W // W_sp
    S = H_sp * W_sp
    itemsize = jnp.dtype(qkv5.dtype).itemsize
    window_bytes = S * C * itemsize

    vmem_cap = _vmem_capacity_bytes()
    budget = min(vmem_cap // 2, 64 << 20)          # double-buffered working set
    wpb = _pick_windows_per_block(nW, W_sp, window_bytes, B * nH, budget)
    wtile = wpb * W_sp
    grid = (B, nH, nW // wpb)

    kernel = functools.partial(
        _window_attn_kernel, scale=float(scale), num_heads=num_heads,
        head_dim=head_dim, H_sp=H_sp, W_sp=W_sp, windows_per_block=wpb)

    in_spec = pl.BlockSpec((3, 1, H_sp, wtile, C), lambda b, i, j: (0, b, i, j, 0))
    out_spec = pl.BlockSpec((1, H_sp, wtile, C), lambda b, i, j: (b, i, j, 0))

    n_win_total = B * nH * nW
    cost = pl.CostEstimate(
        flops=int(4 * n_win_total * num_heads * S * S * head_dim),
        transcendentals=int(n_win_total * num_heads * S * S),
        bytes_accessed=int(4 * B * H * W * C * itemsize),   # 3 reads + 1 write
    )

    resident = 8 * wpb * window_bytes
    vmem_limit = max(32 << 20, min(vmem_cap * 3 // 4, resident + (16 << 20)))

    return pl.pallas_call(
        kernel,
        out_shape=jax.ShapeDtypeStruct((B, H, W, C), qkv5.dtype),
        grid_spec=pltpu.PrefetchScalarGridSpec(
            num_scalar_prefetch=0,
            grid=grid,
            in_specs=[in_spec],
            out_specs=out_spec,
            scratch_shapes=[
                pltpu.VMEM((S, C), jnp.bfloat16),   # q window (flattened)
                pltpu.VMEM((S, C), jnp.bfloat16),   # k window
                pltpu.VMEM((S, C), jnp.bfloat16),   # v window
                pltpu.VMEM((S, C), jnp.float32),    # output accumulator
            ],
        ),
        compiler_params=pltpu.CompilerParams(
            dimension_semantics=("parallel", "parallel", "parallel"),
            vmem_limit_bytes=int(vmem_limit),
        ),
        cost_estimate=cost,
    )(qkv5)


# ---------------------------------------------------------------------------
# Module wrapper (forward-pass semantics of the PyTorch LePEAttention).
# ---------------------------------------------------------------------------
class LePEAttentionPallas:
    """Mirrors LePEAttention.__init__/forward semantics (forward uses no weights)."""

    def __init__(self, dim, resolution, idx, idy=None, split_size=7,
                 dim_out=None, num_heads=8, qk_scale=None):
        self.dim = dim
        self.dim_out = dim_out or dim
        self.resolution = resolution
        self.split_size = split_size
        self.num_heads = num_heads
        head_dim = dim // num_heads
        self.scale = qk_scale or head_dim ** (-0.5)

        H_sp = W_sp = None
        if idx is None:
            pass
        elif idx == -1:
            H_sp, W_sp = resolution[0], resolution[1]
        elif idx == 0:
            H_sp, W_sp = resolution[0], split_size
        elif idx == 1:
            W_sp, H_sp = resolution[1], split_size
        else:
            raise ValueError("ERROR MODE")
        if idy is None:
            pass
        elif idy == 0:
            W_sp, H_sp = split_size, split_size
        elif idy == 1:
            W_sp, H_sp = 1, split_size
        elif idy == 2:
            W_sp, H_sp = split_size, 1
        self.H_sp = H_sp
        self.W_sp = W_sp
        # TODO(synk): get_lepe (depthwise-conv positional branch) is defined in
        # the PyTorch module but never invoked by this forward; not implemented.

    def __call__(self, x_size, qkv):
        # qkv: (3, B, L, C)
        H, W = x_size
        _, B, L, C = qkv.shape

        # im2cswin mutates H_sp/W_sp exactly like the PyTorch code; we derive
        # the values locally per call as well (same result, no stale state used).
        if self.H_sp != self.split_size:
            self.H_sp = H
        if self.W_sp != self.split_size:
            self.W_sp = W
        H_sp, W_sp = self.H_sp, self.W_sp

        assert L == H * W, "x_size inconsistent with sequence length"
        assert H % H_sp == 0 and W % W_sp == 0, "image not divisible by window"
        assert C % self.num_heads == 0, "C must be divisible by num_heads"
        nh = self.num_heads
        hd = C // nh

        # Free view: (3, B, L, C) -> (3, B, H, W, C).  Window partition / merge
        # and the head split / merge all happen inside the Pallas kernel.
        qkv5 = qkv.reshape(3, B, H, W, C)
        out = _window_attention_pallas(qkv5, self.scale, nh, hd, H_sp, W_sp)
        return out.reshape(B, H * W, C)


# ---------------------------------------------------------------------------
# Pure-JAX f32 reference following the PyTorch code path literally.
# ---------------------------------------------------------------------------
def _reference(x_size, qkv, H_sp, W_sp, num_heads, scale):
    q, k, v = qkv[0], qkv[1], qkv[2]
    H, W = x_size
    B, L, C = q.shape

    def im2cswin(x):
        x = jnp.transpose(x, (0, 2, 1)).reshape(B, C, H, W)
        x = x.reshape(B, C, H // H_sp, H_sp, W // W_sp, W_sp)
        x = jnp.transpose(x, (0, 2, 4, 3, 5, 1)).reshape(-1, H_sp * W_sp, C)
        x = x.reshape(-1, H_sp * W_sp, num_heads, C // num_heads)
        return jnp.transpose(x, (0, 2, 1, 3))

    qw, kw, vw = im2cswin(q), im2cswin(k), im2cswin(v)
    attn = (qw * scale) @ jnp.swapaxes(kw, -2, -1)
    attn = jax.nn.softmax(attn, axis=-1)
    x = attn @ vw
    S = H_sp * W_sp
    x = jnp.swapaxes(x, 1, 2).reshape(-1, S, C)
    x = x.reshape(B, H // H_sp, W // W_sp, H_sp, W_sp, C)
    x = jnp.transpose(x, (0, 1, 3, 2, 4, 5)).reshape(B, H, W, C).reshape(B, -1, C)
    return x


if __name__ == "__main__":
    # Small deterministic problem: B=2, H=W=16, C=32, 8 heads, 4x4 windows.
    B, H, W, C = 2, 16, 16, 32
    num_heads = 8
    split_size = 4
    L = H * W

    key = jax.random.PRNGKey(0)
    qkv = jax.random.normal(key, (3, B, L, C), dtype=jnp.float32)

    attn = LePEAttentionPallas(
        dim=C, resolution=(H, W), idx=0, idy=0,
        split_size=split_size, num_heads=num_heads,
    )

    fwd = jax.jit(lambda t: attn((H, W), t))
    out = jax.block_until_ready(fwd(qkv))

    ref = jax.block_until_ready(
        _reference((H, W), qkv, attn.H_sp, attn.W_sp, num_heads, attn.scale))

    assert out.shape == (B, L, C), out.shape
    # bf16 MXU inputs (f32 softmax / f32 accumulation, approx reciprocal) ->
    # loosened tolerance vs the pure-f32 reference.
    assert jnp.allclose(out, ref, atol=5e-2, rtol=5e-2), "mismatch vs reference"

    print("KERNEL_OK")
</pallas_src>

<mosaic_0001>
module attributes {stable_mosaic.version = 11 : i64} {
  func.func @_window_attn_kernel(%arg0: i32, %arg1: i32, %arg2: i32, %arg3: memref<3x1x4x16x32xf32, #tpu.memory_space<vmem>>, %arg4: memref<1x4x16x32xf32, #tpu.memory_space<vmem>>, %arg5: memref<16x32xbf16, #tpu.memory_space<vmem>>, %arg6: memref<16x32xbf16, #tpu.memory_space<vmem>>, %arg7: memref<16x32xbf16, #tpu.memory_space<vmem>>, %arg8: memref<16x32xf32, #tpu.memory_space<vmem>>) attributes {dimension_semantics = [#tpu.dimension_semantics<parallel>, #tpu.dimension_semantics<parallel>, #tpu.dimension_semantics<parallel>], iteration_bounds = array<i64: 2, 4, 1>, scalar_prefetch = 0 : i64, scratch_operands = 4 : i64, tpu.core_type = #tpu.core_type<tc>, window_params = [{transform_indices = @transform_0, window_bounds = array<i64: 3, 1, 4, 16, 32>}, {transform_indices = @transform_1, window_bounds = array<i64: 1, 4, 16, 32>}]} {
    %c0 = arith.constant 0 : index
    %c0_0 = arith.constant 0 : index
    %c0_1 = arith.constant 0 : index
    %c0_2 = arith.constant 0 : index
    %c0_3 = arith.constant 0 : index
    %0 = vector.load %arg3[%c0, %c0_0, %c0_1, %c0_2, %c0_3] : memref<3x1x4x16x32xf32, #tpu.memory_space<vmem>>, vector<1x1x1x4x32xf32>
    %1 = vector.shape_cast %0 : vector<1x1x1x4x32xf32> to vector<4x32xf32>
    %cst = arith.constant 5.000000e-01 : f32
    %2 = vector.broadcast %cst : f32 to vector<4x32xf32>
    %3 = arith.mulf %1, %2 : vector<4x32xf32>
    %4 = arith.truncf %3 : vector<4x32xf32> to vector<4x32xbf16>
    %c0_4 = arith.constant 0 : index
    %c0_5 = arith.constant 0 : index
    %5 = vector.load %arg5[%c0_4, %c0_5] : memref<16x32xbf16, #tpu.memory_space<vmem>>, vector<4x32xbf16>
    tpu.vector_store %arg5[%c0_4, %c0_5], %4 {strides = array<i32>} : memref<16x32xbf16, #tpu.memory_space<vmem>>, vector<4x32xbf16>,
    %c1 = arith.constant 1 : index
    %c0_6 = arith.constant 0 : index
    %c0_7 = arith.constant 0 : index
    %c0_8 = arith.constant 0 : index
    %c0_9 = arith.constant 0 : index
    %6 = vector.load %arg3[%c1, %c0_6, %c0_7, %c0_8, %c0_9] : memref<3x1x4x16x32xf32, #tpu.memory_space<vmem>>, vector<1x1x1x4x32xf32>
    %7 = vector.shape_cast %6 : vector<1x1x1x4x32xf32> to vector<4x32xf32>
    %8 = arith.truncf %7 : vector<4x32xf32> to vector<4x32xbf16>
    %c0_10 = arith.constant 0 : index
    %c0_11 = arith.constant 0 : index
    %9 = vector.load %arg6[%c0_10, %c0_11] : memref<16x32xbf16, #tpu.memory_space<vmem>>, vector<4x32xbf16>
    tpu.vector_store %arg6[%c0_10, %c0_11], %8 {strides = array<i32>} : memref<16x32xbf16, #tpu.memory_space<vmem>>, vector<4x32xbf16>,
    %c2 = arith.constant 2 : index
    %c0_12 = arith.constant 0 : index
    %c0_13 = arith.constant 0 : index
    %c0_14 = arith.constant 0 : index
    %c0_15 = arith.constant 0 : index
    %10 = vector.load %arg3[%c2, %c0_12, %c0_13, %c0_14, %c0_15] : memref<3x1x4x16x32xf32, #tpu.memory_space<vmem>>, vector<1x1x1x4x32xf32>
    %11 = vector.shape_cast %10 : vector<1x1x1x4x32xf32> to vector<4x32xf32>
    %12 = arith.truncf %11 : vector<4x32xf32> to vector<4x32xbf16>
    %c0_16 = arith.constant 0 : index
    %c0_17 = arith.constant 0 : index
    %13 = vector.load %arg7[%c0_16, %c0_17] : memref<16x32xbf16, #tpu.memory_space<vmem>>, vector<4x32xbf16>
    tpu.vector_store %arg7[%c0_16, %c0_17], %12 {strides = array<i32>} : memref<16x32xbf16, #tpu.memory_space<vmem>>, vector<4x32xbf16>,
    %c0_18 = arith.constant 0 : index
    %c0_19 = arith.constant 0 : index
    %c1_20 = arith.constant 1 : index
    %c0_21 = arith.constant 0 : index
    %c0_22 = arith.constant 0 : index
    %14 = vector.load %arg3[%c0_18, %c0_19, %c1_20, %c0_21, %c0_22] : memref<3x1x4x16x32xf32, #tpu.memory_space<vmem>>, vector<1x1x1x4x32xf32>
    %15 = vector.shape_cast %14 : vector<1x1x1x4x32xf32> to vector<4x32xf32>
    %cst_23 = arith.constant 5.000000e-01 : f32
    %16 = vector.broadcast %cst_23 : f32 to vector<4x32xf32>
    %17 = arith.mulf %15, %16 : vector<4x32xf32>
    %18 = arith.truncf %17 : vector<4x32xf32> to vector<4x32xbf16>
    %c4 = arith.constant 4 : index
    %c0_24 = arith.constant 0 : index
    %19 = vector.load %arg5[%c4, %c0_24] : memref<16x32xbf16, #tpu.memory_space<vmem>>, vector<4x32xbf16>
    tpu.vector_store %arg5[%c4, %c0_24], %18 {strides = array<i32>} : memref<16x32xbf16, #tpu.memory_space<vmem>>, vector<4x32xbf16>,
    %c1_25 = arith.constant 1 : index
    %c0_26 = arith.constant 0 : index
    %c1_27 = arith.constant 1 : index
    %c0_28 = arith.constant 0 : index
    %c0_29 = arith.constant 0 : index
    %20 = vector.load %arg3[%c1_25, %c0_26, %c1_27, %c0_28, %c0_29] : memref<3x1x4x16x32xf32, #tpu.memory_space<vmem>>, vector<1x1x1x4x32xf32>
    %21 = vector.shape_cast %20 : vector<1x1x1x4x32xf32> to vector<4x32xf32>
    %22 = arith.truncf %21 : vector<4x32xf32> to vector<4x32xbf16>
    %c4_30 = arith.constant 4 : index
    %c0_31 = arith.constant 0 : index
    %23 = vector.load %arg6[%c4_30, %c0_31] : memref<16x32xbf16, #tpu.memory_space<vmem>>, vector<4x32xbf16>
    tpu.vector_store %arg6[%c4_30, %c0_31], %22 {strides = array<i32>} : memref<16x32xbf16, #tpu.memory_space<vmem>>, vector<4x32xbf16>,
    %c2_32 = arith.constant 2 : index
    %c0_33 = arith.constant 0 : index
    %c1_34 = arith.constant 1 : index
    %c0_35 = arith.constant 0 : index
    %c0_36 = arith.constant 0 : index
    %24 = vector.load %arg3[%c2_32, %c0_33, %c1_34, %c0_35, %c0_36] : memref<3x1x4x16x32xf32, #tpu.memory_space<vmem>>, vector<1x1x1x4x32xf32>
    %25 = vector.shape_cast %24 : vector<1x1x1x4x32xf32> to vector<4x32xf32>
    %26 = arith.truncf %25 : vector<4x32xf32> to vector<4x32xbf16>
    %c4_37 = arith.constant 4 : index
    %c0_38 = arith.constant 0 : index
    %27 = vector.load %arg7[%c4_37, %c0_38] : memref<16x32xbf16, #tpu.memory_space<vmem>>, vector<4x32xbf16>
    tpu.vector_store %arg7[%c4_37, %c0_38], %26 {strides = array<i32>} : memref<16x32xbf16, #tpu.memory_space<vmem>>, vector<4x32xbf16>,
    %c0_39 = arith.constant 0 : index
    %c0_40 = arith.constant 0 : index
    %c2_41 = arith.constant 2 : index
    %c0_42 = arith.constant 0 : index
    %c0_43 = arith.constant 0 : index
    %28 = vector.load %arg3[%c0_39, %c0_40, %c2_41, %c0_42, %c0_43] : memref<3x1x4x16x32xf32, #tpu.memory_space<vmem>>, vector<1x1x1x4x32xf32>
    %29 = vector.shape_cast %28 : vector<1x1x1x4x32xf32> to vector<4x32xf32>
    %cst_44 = arith.constant 5.000000e-01 : f32
    %30 = vector.broadcast %cst_44 : f32 to vector<4x32xf32>
    %31 = arith.mulf %29, %30 : vector<4x32xf32>
    %32 = arith.truncf %31 : vector<4x32xf32> to vector<4x32xbf16>
    %c8 = arith.constant 8 : index
    %c0_45 = arith.constant 0 : index
    %33 = vector.load %arg5[%c8, %c0_45] : memref<16x32xbf16, #tpu.memory_space<vmem>>, vector<4x32xbf16>
    tpu.vector_store %arg5[%c8, %c0_45], %32 {strides = array<i32>} : memref<16x32xbf16, #tpu.memory_space<vmem>>, vector<4x32xbf16>,
    %c1_46 = arith.constant 1 : index
    %c0_47 = arith.constant 0 : index
    %c2_48 = arith.constant 2 : index
    %c0_49 = arith.constant 0 : index
    %c0_50 = arith.constant 0 : index
    %34 = vector.load %arg3[%c1_46, %c0_47, %c2_48, %c0_49, %c0_50] : memref<3x1x4x16x32xf32, #tpu.memory_space<vmem>>, vector<1x1x1x4x32xf32>
    %35 = vector.shape_cast %34 : vector<1x1x1x4x32xf32> to vector<4x32xf32>
    %36 = arith.truncf %35 : vector<4x32xf32> to vector<4x32xbf16>
    %c8_51 = arith.constant 8 : index
    %c0_52 = arith.constant 0 : index
    %37 = vector.load %arg6[%c8_51, %c0_52] : memref<16x32xbf16, #tpu.memory_space<vmem>>, vector<4x32xbf16>
    tpu.vector_store %arg6[%c8_51, %c0_52], %36 {strides = array<i32>} : memref<16x32xbf16, #tpu.memory_space<vmem>>, vector<4x32xbf16>,
    %c2_53 = arith.constant 2 : index
    %c0_54 = arith.constant 0 : index
    %c2_55 = arith.constant 2 : index
    %c0_56 = arith.constant 0 : index
    %c0_57 = arith.constant 0 : index
    %38 = vector.load %arg3[%c2_53, %c0_54, %c2_55, %c0_56, %c0_57] : memref<3x1x4x16x32xf32, #tpu.memory_space<vmem>>, vector<1x1x1x4x32xf32>
    %39 = vector.shape_cast %38 : vector<1x1x1x4x32xf32> to vector<4x32xf32>
    %40 = arith.truncf %39 : vector<4x32xf32> to vector<4x32xbf16>
    %c8_58 = arith.constant 8 : index
    %c0_59 = arith.constant 0 : index
    %41 = vector.load %arg7[%c8_58, %c0_59] : memref<16x32xbf16, #tpu.memory_space<vmem>>, vector<4x32xbf16>
    tpu.vector_store %arg7[%c8_58, %c0_59], %40 {strides = array<i32>} : memref<16x32xbf16, #tpu.memory_space<vmem>>, vector<4x32xbf16>,
    %c0_60 = arith.constant 0 : index
    %c0_61 = arith.constant 0 : index
    %c3 = arith.constant 3 : index
    %c0_62 = arith.constant 0 : index
    %c0_63 = arith.constant 0 : index
    %42 = vector.load %arg3[%c0_60, %c0_61, %c3, %c0_62, %c0_63] : memref<3x1x4x16x32xf32, #tpu.memory_space<vmem>>, vector<1x1x1x4x32xf32>
    %43 = vector.shape_cast %42 : vector<1x1x1x4x32xf32> to vector<4x32xf32>
    %cst_64 = arith.constant 5.000000e-01 : f32
    %44 = vector.broadcast %cst_64 : f32 to vector<4x32xf32>
    %45 = arith.mulf %43, %44 : vector<4x32xf32>
    %46 = arith.truncf %45 : vector<4x32xf32> to vector<4x32xbf16>
    %c12 = arith.constant 12 : index
    %c0_65 = arith.constant 0 : index
    %47 = vector.load %arg5[%c12, %c0_65] : memref<16x32xbf16, #tpu.memory_space<vmem>>, vector<4x32xbf16>
    tpu.vector_store %arg5[%c12, %c0_65], %46 {strides = array<i32>} : memref<16x32xbf16, #tpu.memory_space<vmem>>, vector<4x32xbf16>,
    %c1_66 = arith.constant 1 : index
    %c0_67 = arith.constant 0 : index
    %c3_68 = arith.constant 3 : index
    %c0_69 = arith.constant 0 : index
    %c0_70 = arith.constant 0 : index
    %48 = vector.load %arg3[%c1_66, %c0_67, %c3_68, %c0_69, %c0_70] : memref<3x1x4x16x32xf32, #tpu.memory_space<vmem>>, vector<1x1x1x4x32xf32>
    %49 = vector.shape_cast %48 : vector<1x1x1x4x32xf32> to vector<4x32xf32>
    %50 = arith.truncf %49 : vector<4x32xf32> to vector<4x32xbf16>
    %c12_71 = arith.constant 12 : index
    %c0_72 = arith.constant 0 : index
    %51 = vector.load %arg6[%c12_71, %c0_72] : memref<16x32xbf16, #tpu.memory_space<vmem>>, vector<4x32xbf16>
    tpu.vector_store %arg6[%c12_71, %c0_72], %50 {strides = array<i32>} : memref<16x32xbf16, #tpu.memory_space<vmem>>, vector<4x32xbf16>,
    %c2_73 = arith.constant 2 : index
    %c0_74 = arith.constant 0 : index
    %c3_75 = arith.constant 3 : index
    %c0_76 = arith.constant 0 : index
    %c0_77 = arith.constant 0 : index
    %52 = vector.load %arg3[%c2_73, %c0_74, %c3_75, %c0_76, %c0_77] : memref<3x1x4x16x32xf32, #tpu.memory_space<vmem>>, vector<1x1x1x4x32xf32>
    %53 = vector.shape_cast %52 : vector<1x1x1x4x32xf32> to vector<4x32xf32>
    %54 = arith.truncf %53 : vector<4x32xf32> to vector<4x32xbf16>
    %c12_78 = arith.constant 12 : index
    %c0_79 = arith.constant 0 : index
    %55 = vector.load %arg7[%c12_78, %c0_79] : memref<16x32xbf16, #tpu.memory_space<vmem>>, vector<4x32xbf16>
    tpu.vector_store %arg7[%c12_78, %c0_79], %54 {strides = array<i32>} : memref<16x32xbf16, #tpu.memory_space<vmem>>, vector<4x32xbf16>,
    %c0_80 = arith.constant 0 : index
    %c0_81 = arith.constant 0 : index
    %56 = vector.load %arg5[%c0_80, %c0_81] : memref<16x32xbf16, #tpu.memory_space<vmem>>, vector<16x32xbf16>
    %c0_82 = arith.constant 0 : index
    %c0_83 = arith.constant 0 : index
    %57 = vector.load %arg6[%c0_82, %c0_83] : memref<16x32xbf16, #tpu.memory_space<vmem>>, vector<16x32xbf16>
    %c0_84 = arith.constant 0 : index
    %c0_85 = arith.constant 0 : index
    %58 = vector.load %arg7[%c0_84, %c0_85] : memref<16x32xbf16, #tpu.memory_space<vmem>>, vector<16x32xbf16>
    %59 = vector.extract_strided_slice %56 {offsets = [0, 0], sizes = [16, 4], strides = [1, 1]} : vector<16x32xbf16> to vector<16x4xbf16>
    %60 = vector.extract_strided_slice %57 {offsets = [0, 0], sizes = [16, 4], strides = [1, 1]} : vector<16x32xbf16> to vector<16x4xbf16>
    %61 = vector.extract_strided_slice %58 {offsets = [0, 0], sizes = [16, 4], strides = [1, 1]} : vector<16x32xbf16> to vector<16x4xbf16>
    "tpu.trace_start"() <{level = 10 : i32, message = "sd,td->st"}> : () -> ()
    %cst_86 = arith.constant dense<0.000000e+00> : vector<16x16xf32>
    %62 = tpu.matmul %59, %60, %cst_86 {dimension_numbers = #tpu.dot_dimension_numbers<[1], [1], [0], [0], [0, 0, 1, 0], [], []>} : vector<16x4xbf16>, vector<16x4xbf16>, vector<16x16xf32> -> vector<16x16xf32>
    "tpu.trace_stop"() : () -> ()
    %cst_87 = arith.constant dense<0xFF800000> : vector<16xf32>
    %63 = vector.multi_reduction <maximumf>, %62, %cst_87 [1] : vector<16x16xf32> to vector<16xf32>
    %64 = vector.shape_cast %63 : vector<16xf32> to vector<16x1xf32>
    %65 = vector.broadcast %64 : vector<16x1xf32> to vector<16x16xf32>
    %66 = arith.subf %62, %65 : vector<16x16xf32>
    %67 = math.exp %66 : vector<16x16xf32>
    %cst_88 = arith.constant dense<0.000000e+00> : vector<16xf32>
    %68 = vector.multi_reduction <add>, %67, %cst_88 [1] : vector<16x16xf32> to vector<16xf32>
    %69 = vector.shape_cast %68 : vector<16xf32> to vector<16x1xf32>
    %70 = tpu.reciprocal %69 {approx = true} : vector<16x1xf32> -> vector<16x1xf32>
    %71 = vector.broadcast %70 : vector<16x1xf32> to vector<16x16xf32>
    %72 = arith.mulf %67, %71 : vector<16x16xf32>
    %73 = arith.truncf %72 : vector<16x16xf32> to vector<16x16xbf16>
    "tpu.trace_start"() <{level = 10 : i32, message = "st,td->sd"}> : () -> ()
    %cst_89 = arith.constant dense<0.000000e+00> : vector<16x4xf32>
    %74 = tpu.matmul %73, %61, %cst_89 {dimension_numbers = #tpu.dot_dimension_numbers<[1], [0], [0], [1], [0, 0, 1, 1], [], []>} : vector<16x16xbf16>, vector<16x4xbf16>, vector<16x4xf32> -> vector<16x4xf32>
    "tpu.trace_stop"() : () -> ()
    %c0_90 = arith.constant 0 : index
    %c0_91 = arith.constant 0 : index
    %75 = vector.load %arg8[%c0_90, %c0_91] : memref<16x32xf32, #tpu.memory_space<vmem>>, vector<16x4xf32>
    tpu.vector_store %arg8[%c0_90, %c0_91], %74 {strides = array<i32>} : memref<16x32xf32, #tpu.memory_space<vmem>>, vector<16x4xf32>,
    %76 = vector.extract_strided_slice %56 {offsets = [0, 4], sizes = [16, 4], strides = [1, 1]} : vector<16x32xbf16> to vector<16x4xbf16>
    %77 = vector.extract_strided_slice %57 {offsets = [0, 4], sizes = [16, 4], strides = [1, 1]} : vector<16x32xbf16> to vector<16x4xbf16>
    %78 = vector.extract_strided_slice %58 {offsets = [0, 4], sizes = [16, 4], strides = [1, 1]} : vector<16x32xbf16> to vector<16x4xbf16>
    "tpu.trace_start"() <{level = 10 : i32, message = "sd,td->st"}> : () -> ()
    %cst_92 = arith.constant dense<0.000000e+00> : vector<16x16xf32>
    %79 = tpu.matmul %76, %77, %cst_92 {dimension_numbers = #tpu.dot_dimension_numbers<[1], [1], [0], [0], [0, 0, 1, 0], [], []>} : vector<16x4xbf16>, vector<16x4xbf16>, vector<16x16xf32> -> vector<16x16xf32>
    "tpu.trace_stop"() : () -> ()
    %cst_93 = arith.constant dense<0xFF800000> : vector<16xf32>
    %80 = vector.multi_reduction <maximumf>, %79, %cst_93 [1] : vector<16x16xf32> to vector<16xf32>
    %81 = vector.shape_cast %80 : vector<16xf32> to vector<16x1xf32>
    %82 = vector.broadcast %81 : vector<16x1xf32> to vector<16x16xf32>
    %83 = arith.subf %79, %82 : vector<16x16xf32>
    %84 = math.exp %83 : vector<16x16xf32>
    %cst_94 = arith.constant dense<0.000000e+00> : vector<16xf32>
    %85 = vector.multi_reduction <add>, %84, %cst_94 [1] : vector<16x16xf32> to vector<16xf32>
    %86 = vector.shape_cast %85 : vector<16xf32> to vector<16x1xf32>
    %87 = tpu.reciprocal %86 {approx = true} : vector<16x1xf32> -> vector<16x1xf32>
    %88 = vector.broadcast %87 : vector<16x1xf32> to vector<16x16xf32>
    %89 = arith.mulf %84, %88 : vector<16x16xf32>
    %90 = arith.truncf %89 : vector<16x16xf32> to vector<16x16xbf16>
    "tpu.trace_start"() <{level = 10 : i32, message = "st,td->sd"}> : () -> ()
    %cst_95 = arith.constant dense<0.000000e+00> : vector<16x4xf32>
    %91 = tpu.matmul %90, %78, %cst_95 {dimension_numbers = #tpu.dot_dimension_numbers<[1], [0], [0], [1], [0, 0, 1, 1], [], []>} : vector<16x16xbf16>, vector<16x4xbf16>, vector<16x4xf32> -> vector<16x4xf32>
    "tpu.trace_stop"() : () -> ()
    %c0_96 = arith.constant 0 : index
    %c4_97 = arith.constant 4 : index
    %92 = vector.load %arg8[%c0_96, %c4_97] : memref<16x32xf32, #tpu.memory_space<vmem>>, vector<16x4xf32>
    tpu.vector_store %arg8[%c0_96, %c4_97], %91 {strides = array<i32>} : memref<16x32xf32, #tpu.memory_space<vmem>>, vector<16x4xf32>,
    %93 = vector.extract_strided_slice %56 {offsets = [0, 8], sizes = [16, 4], strides = [1, 1]} : vector<16x32xbf16> to vector<16x4xbf16>
    %94 = vector.extract_strided_slice %57 {offsets = [0, 8], sizes = [16, 4], strides = [1, 1]} : vector<16x32xbf16> to vector<16x4xbf16>
    %95 = vector.extract_strided_slice %58 {offsets = [0, 8], sizes = [16, 4], strides = [1, 1]} : vector<16x32xbf16> to vector<16x4xbf16>
    "tpu.trace_start"() <{level = 10 : i32, message = "sd,td->st"}> : () -> ()
    %cst_98 = arith.constant dense<0.000000e+00> : vector<16x16xf32>
    %96 = tpu.matmul %93, %94, %cst_98 {dimension_numbers = #tpu.dot_dimension_numbers<[1], [1], [0], [0], [0, 0, 1, 0], [], []>} : vector<16x4xbf16>, vector<16x4xbf16>, vector<16x16xf32> -> vector<16x16xf32>
    "tpu.trace_stop"() : () -> ()
    %cst_99 = arith.constant dense<0xFF800000> : vector<16xf32>
    %97 = vector.multi_reduction <maximumf>, %96, %cst_99 [1] : vector<16x16xf32> to vector<16xf32>
    %98 = vector.shape_cast %97 : vector<16xf32> to vector<16x1xf32>
    %99 = vector.broadcast %98 : vector<16x1xf32> to vector<16x16xf32>
    %100 = arith.subf %96, %99 : vector<16x16xf32>
    %101 = math.exp %100 : vector<16x16xf32>
    %cst_100 = arith.constant dense<0.000000e+00> : vector<16xf32>
    %102 = vector.multi_reduction <add>, %101, %cst_100 [1] : vector<16x16xf32> to vector<16xf32>
    %103 = vector.shape_cast %102 : vector<16xf32> to vector<16x1xf32>
    %104 = tpu.reciprocal %103 {approx = true} : vector<16x1xf32> -> vector<16x1xf32>
    %105 = vector.broadcast %104 : vector<16x1xf32> to vector<16x16xf32>
    %106 = arith.mulf %101, %105 : vector<16x16xf32>
    %107 = arith.truncf %106 : vector<16x16xf32> to vector<16x16xbf16>
    "tpu.trace_start"() <{level = 10 : i32, message = "st,td->sd"}> : () -> ()
    %cst_101 = arith.constant dense<0.000000e+00> : vector<16x4xf32>
    %108 = tpu.matmul %107, %95, %cst_101 {dimension_numbers = #tpu.dot_dimension_numbers<[1], [0], [0], [1], [0, 0, 1, 1], [], []>} : vector<16x16xbf16>, vector<16x4xbf16>, vector<16x4xf32> -> vector<16x4xf32>
    "tpu.trace_stop"() : () -> ()
    %c0_102 = arith.constant 0 : index
    %c8_103 = arith.constant 8 : index
    %109 = vector.load %arg8[%c0_102, %c8_103] : memref<16x32xf32, #tpu.memory_space<vmem>>, vector<16x4xf32>
    tpu.vector_store %arg8[%c0_102, %c8_103], %108 {strides = array<i32>} : memref<16x32xf32, #tpu.memory_space<vmem>>, vector<16x4xf32>,
    %110 = vector.extract_strided_slice %56 {offsets = [0, 12], sizes = [16, 4], strides = [1, 1]} : vector<16x32xbf16> to vector<16x4xbf16>
    %111 = vector.extract_strided_slice %57 {offsets = [0, 12], sizes = [16, 4], strides = [1, 1]} : vector<16x32xbf16> to vector<16x4xbf16>
    %112 = vector.extract_strided_slice %58 {offsets = [0, 12], sizes = [16, 4], strides = [1, 1]} : vector<16x32xbf16> to vector<16x4xbf16>
    "tpu.trace_start"() <{level = 10 : i32, message = "sd,td->st"}> : () -> ()
    %cst_104 = arith.constant dense<0.000000e+00> : vector<16x16xf32>
    %113 = tpu.matmul %110, %111, %cst_104 {dimension_numbers = #tpu.dot_dimension_numbers<[1], [1], [0], [0], [0, 0, 1, 0], [], []>} : vector<16x4xbf16>, vector<16x4xbf16>, vector<16x16xf32> -> vector<16x16xf32>
    "tpu.trace_stop"() : () -> ()
    %cst_105 = arith.constant dense<0xFF800000> : vector<16xf32>
    %114 = vector.multi_reduction <maximumf>, %113, %cst_105 [1] : vector<16x16xf32> to vector<16xf32>
    %115 = vector.shape_cast %114 : vector<16xf32> to vector<16x1xf32>
    %116 = vector.broadcast %115 : vector<16x1xf32> to vector<16x16xf32>
    %117 = arith.subf %113, %116 : vector<16x16xf32>
    %118 = math.exp %117 : vector<16x16xf32>
    %cst_106 = arith.constant dense<0.000000e+00> : vector<16xf32>
    %119 = vector.multi_reduction <add>, %118, %cst_106 [1] : vector<16x16xf32> to vector<16xf32>
    %120 = vector.shape_cast %119 : vector<16xf32> to vector<16x1xf32>
    %121 = tpu.reciprocal %120 {approx = true} : vector<16x1xf32> -> vector<16x1xf32>
    %122 = vector.broadcast %121 : vector<16x1xf32> to vector<16x16xf32>
    %123 = arith.mulf %118, %122 : vector<16x16xf32>
    %124 = arith.truncf %123 : vector<16x16xf32> to vector<16x16xbf16>
    "tpu.trace_start"() <{level = 10 : i32, message = "st,td->sd"}> : () -> ()
    %cst_107 = arith.constant dense<0.000000e+00> : vector<16x4xf32>
    %125 = tpu.matmul %124, %112, %cst_107 {dimension_numbers = #tpu.dot_dimension_numbers<[1], [0], [0], [1], [0, 0, 1, 1], [], []>} : vector<16x16xbf16>, vector<16x4xbf16>, vector<16x4xf32> -> vector<16x4xf32>
    "tpu.trace_stop"() : () -> ()
    %c0_108 = arith.constant 0 : index
    %c12_109 = arith.constant 12 : index
    %126 = vector.load %arg8[%c0_108, %c12_109] : memref<16x32xf32, #tpu.memory_space<vmem>>, vector<16x4xf32>
    tpu.vector_store %arg8[%c0_108, %c12_109], %125 {strides = array<i32>} : memref<16x32xf32, #tpu.memory_space<vmem>>, vector<16x4xf32>,
    %127 = vector.extract_strided_slice %56 {offsets = [0, 16], sizes = [16, 4], strides = [1, 1]} : vector<16x32xbf16> to vector<16x4xbf16>
    %128 = vector.extract_strided_slice %57 {offsets = [0, 16], sizes = [16, 4], strides = [1, 1]} : vector<16x32xbf16> to vector<16x4xbf16>
    %129 = vector.extract_strided_slice %58 {offsets = [0, 16], sizes = [16, 4], strides = [1, 1]} : vector<16x32xbf16> to vector<16x4xbf16>
    "tpu.trace_start"() <{level = 10 : i32, message = "sd,td->st"}> : () -> ()
    %cst_110 = arith.constant dense<0.000000e+00> : vector<16x16xf32>
    %130 = tpu.matmul %127, %128, %cst_110 {dimension_numbers = #tpu.dot_dimension_numbers<[1], [1], [0], [0], [0, 0, 1, 0], [], []>} : vector<16x4xbf16>, vector<16x4xbf16>, vector<16x16xf32> -> vector<16x16xf32>
    "tpu.trace_stop"() : () -> ()
    %cst_111 = arith.constant dense<0xFF800000> : vector<16xf32>
    %131 = vector.multi_reduction <maximumf>, %130, %cst_111 [1] : vector<16x16xf32> to vector<16xf32>
    %132 = vector.shape_cast %131 : vector<16xf32> to vector<16x1xf32>
    %133 = vector.broadcast %132 : vector<16x1xf32> to vector<16x16xf32>
    %134 = arith.subf %130, %133 : vector<16x16xf32>
    %135 = math.exp %134 : vector<16x16xf32>
    %cst_112 = arith.constant dense<0.000000e+00> : vector<16xf32>
    %136 = vector.multi_reduction <add>, %135, %cst_112 [1] : vector<16x16xf32> to vector<16xf32>
    %137 = vector.shape_cast %136 : vector<16xf32> to vector<16x1xf32>
    %138 = tpu.reciprocal %137 {approx = true} : vector<16x1xf32> -> vector<16x1xf32>
    %139 = vector.broadcast %138 : vector<16x1xf32> to vector<16x16xf32>
    %140 = arith.mulf %135, %139 : vector<16x16xf32>
    %141 = arith.truncf %140 : vector<16x16xf32> to vector<16x16xbf16>
    "tpu.trace_start"() <{level = 10 : i32, message = "st,td->sd"}> : () -> ()
    %cst_113 = arith.constant dense<0.000000e+00> : vector<16x4xf32>
    %142 = tpu.matmul %141, %129, %cst_113 {dimension_numbers = #tpu.dot_dimension_numbers<[1], [0], [0], [1], [0, 0, 1, 1], [], []>} : vector<16x16xbf16>, vector<16x4xbf16>, vector<16x4xf32> -> vector<16x4xf32>
    "tpu.trace_stop"() : () -> ()
    %c0_114 = arith.constant 0 : index
    %c16 = arith.constant 16 : index
    %143 = vector.load %arg8[%c0_114, %c16] : memref<16x32xf32, #tpu.memory_space<vmem>>, vector<16x4xf32>
    tpu.vector_store %arg8[%c0_114, %c16], %142 {strides = array<i32>} : memref<16x32xf32, #tpu.memory_space<vmem>>, vector<16x4xf32>,
    %144 = vector.extract_strided_slice %56 {offsets = [0, 20], sizes = [16, 4], strides = [1, 1]} : vector<16x32xbf16> to vector<16x4xbf16>
    %145 = vector.extract_strided_slice %57 {offsets = [0, 20], sizes = [16, 4], strides = [1, 1]} : vector<16x32xbf16> to vector<16x4xbf16>
    %146 = vector.extract_strided_slice %58 {offsets = [0, 20], sizes = [16, 4], strides = [1, 1]} : vector<16x32xbf16> to vector<16x4xbf16>
    "tpu.trace_start"() <{level = 10 : i32, message = "sd,td->st"}> : () -> ()
    %cst_115 = arith.constant dense<0.000000e+00> : vector<16x16xf32>
    %147 = tpu.matmul %144, %145, %cst_115 {dimension_numbers = #tpu.dot_dimension_numbers<[1], [1], [0], [0], [0, 0, 1, 0], [], []>} : vector<16x4xbf16>, vector<16x4xbf16>, vector<16x16xf32> -> vector<16x16xf32>
    "tpu.trace_stop"() : () -> ()
    %cst_116 = arith.constant dense<0xFF800000> : vector<16xf32>
    %148 = vector.multi_reduction <maximumf>, %147, %cst_116 [1] : vector<16x16xf32> to vector<16xf32>
    %149 = vector.shape_cast %148 : vector<16xf32> to vector<16x1xf32>
    %150 = vector.broadcast %149 : vector<16x1xf32> to vector<16x16xf32>
    %151 = arith.subf %147, %150 : vector<16x16xf32>
    %152 = math.exp %151 : vector<16x16xf32>
    %cst_117 = arith.constant dense<0.000000e+00> : vector<16xf32>
    %153 = vector.multi_reduction <add>, %152, %cst_117 [1] : vector<16x16xf32> to vector<16xf32>
    %154 = vector.shape_cast %153 : vector<16xf32> to vector<16x1xf32>
    %155 = tpu.reciprocal %154 {approx = true} : vector<16x1xf32> -> vector<16x1xf32>
    %156 = vector.broadcast %155 : vector<16x1xf32> to vector<16x16xf32>
    %157 = arith.mulf %152, %156 : vector<16x16xf32>
    %158 = arith.truncf %157 : vector<16x16xf32> to vector<16x16xbf16>
    "tpu.trace_start"() <{level = 10 : i32, message = "st,td->sd"}> : () -> ()
    %cst_118 = arith.constant dense<0.000000e+00> : vector<16x4xf32>
    %159 = tpu.matmul %158, %146, %cst_118 {dimension_numbers = #tpu.dot_dimension_numbers<[1], [0], [0], [1], [0, 0, 1, 1], [], []>} : vector<16x16xbf16>, vector<16x4xbf16>, vector<16x4xf32> -> vector<16x4xf32>
    "tpu.trace_stop"() : () -> ()
    %c0_119 = arith.constant 0 : index
    %c20 = arith.constant 20 : index
    %160 = vector.load %arg8[%c0_119, %c20] : memref<16x32xf32, #tpu.memory_space<vmem>>, vector<16x4xf32>
    tpu.vector_store %arg8[%c0_119, %c20], %159 {strides = array<i32>} : memref<16x32xf32, #tpu.memory_space<vmem>>, vector<16x4xf32>,
    %161 = vector.extract_strided_slice %56 {offsets = [0, 24], sizes = [16, 4], strides = [1, 1]} : vector<16x32xbf16> to vector<16x4xbf16>
    %162 = vector.extract_strided_slice %57 {offsets = [0, 24], sizes = [16, 4], strides = [1, 1]} : vector<16x32xbf16> to vector<16x4xbf16>
    %163 = vector.extract_strided_slice %58 {offsets = [0, 24], sizes = [16, 4], strides = [1, 1]} : vector<16x32xbf16> to vector<16x4xbf16>
    "tpu.trace_start"() <{level = 10 : i32, message = "sd,td->st"}> : () -> ()
    %cst_120 = arith.constant dense<0.000000e+00> : vector<16x16xf32>
    %164 = tpu.matmul %161, %162, %cst_120 {dimension_numbers = #tpu.dot_dimension_numbers<[1], [1], [0], [0], [0, 0, 1, 0], [], []>} : vector<16x4xbf16>, vector<16x4xbf16>, vector<16x16xf32> -> vector<16x16xf32>
    "tpu.trace_stop"() : () -> ()
    %cst_121 = arith.constant dense<0xFF800000> : vector<16xf32>
    %165 = vector.multi_reduction <maximumf>, %164, %cst_121 [1] : vector<16x16xf32> to vector<16xf32>
    %166 = vector.shape_cast %165 : vector<16xf32> to vector<16x1xf32>
    %167 = vector.broadcast %166 : vector<16x1xf32> to vector<16x16xf32>
    %168 = arith.subf %164, %167 : vector<16x16xf32>
    %169 = math.exp %168 : vector<16x16xf32>
    %cst_122 = arith.constant dense<0.000000e+00> : vector<16xf32>
    %170 = vector.multi_reduction <add>, %169, %cst_122 [1] : vector<16x16xf32> to vector<16xf32>
    %171 = vector.shape_cast %170 : vector<16xf32> to vector<16x1xf32>
    %172 = tpu.reciprocal %171 {approx = true} : vector<16x1xf32> -> vector<16x1xf32>
    %173 = vector.broadcast %172 : vector<16x1xf32> to vector<16x16xf32>
    %174 = arith.mulf %169, %173 : vector<16x16xf32>
    %175 = arith.truncf %174 : vector<16x16xf32> to vector<16x16xbf16>
    "tpu.trace_start"() <{level = 10 : i32, message = "st,td->sd"}> : () -> ()
    %cst_123 = arith.constant dense<0.000000e+00> : vector<16x4xf32>
    %176 = tpu.matmul %175, %163, %cst_123 {dimension_numbers = #tpu.dot_dimension_numbers<[1], [0], [0], [1], [0, 0, 1, 1], [], []>} : vector<16x16xbf16>, vector<16x4xbf16>, vector<16x4xf32> -> vector<16x4xf32>
    "tpu.trace_stop"() : () -> ()
    %c0_124 = arith.constant 0 : index
    %c24 = arith.constant 24 : index
    %177 = vector.load %arg8[%c0_124, %c24] : memref<16x32xf32, #tpu.memory_space<vmem>>, vector<16x4xf32>
    tpu.vector_store %arg8[%c0_124, %c24], %176 {strides = array<i32>} : memref<16x32xf32, #tpu.memory_space<vmem>>, vector<16x4xf32>,
    %178 = vector.extract_strided_slice %56 {offsets = [0, 28], sizes = [16, 4], strides = [1, 1]} : vector<16x32xbf16> to vector<16x4xbf16>
    %179 = vector.extract_strided_slice %57 {offsets = [0, 28], sizes = [16, 4], strides = [1, 1]} : vector<16x32xbf16> to vector<16x4xbf16>
    %180 = vector.extract_strided_slice %58 {offsets = [0, 28], sizes = [16, 4], strides = [1, 1]} : vector<16x32xbf16> to vector<16x4xbf16>
    "tpu.trace_start"() <{level = 10 : i32, message = "sd,td->st"}> : () -> ()
    %cst_125 = arith.constant dense<0.000000e+00> : vector<16x16xf32>
    %181 = tpu.matmul %178, %179, %cst_125 {dimension_numbers = #tpu.dot_dimension_numbers<[1], [1], [0], [0], [0, 0, 1, 0], [], []>} : vector<16x4xbf16>, vector<16x4xbf16>, vector<16x16xf32> -> vector<16x16xf32>
    "tpu.trace_stop"() : () -> ()
    %cst_126 = arith.constant dense<0xFF800000> : vector<16xf32>
    %182 = vector.multi_reduction <maximumf>, %181, %cst_126 [1] : vector<16x16xf32> to vector<16xf32>
    %183 = vector.shape_cast %182 : vector<16xf32> to vector<16x1xf32>
    %184 = vector.broadcast %183 : vector<16x1xf32> to vector<16x16xf32>
    %185 = arith.subf %181, %184 : vector<16x16xf32>
    %186 = math.exp %185 : vector<16x16xf32>
    %cst_127 = arith.constant dense<0.000000e+00> : vector<16xf32>
    %187 = vector.multi_reduction <add>, %186, %cst_127 [1] : vector<16x16xf32> to vector<16xf32>
    %188 = vector.shape_cast %187 : vector<16xf32> to vector<16x1xf32>
    %189 = tpu.reciprocal %188 {approx = true} : vector<16x1xf32> -> vector<16x1xf32>
    %190 = vector.broadcast %189 : vector<16x1xf32> to vector<16x16xf32>
    %191 = arith.mulf %186, %190 : vector<16x16xf32>
    %192 = arith.truncf %191 : vector<16x16xf32> to vector<16x16xbf16>
    "tpu.trace_start"() <{level = 10 : i32, message = "st,td->sd"}> : () -> ()
    %cst_128 = arith.constant dense<0.000000e+00> : vector<16x4xf32>
    %193 = tpu.matmul %192, %180, %cst_128 {dimension_numbers = #tpu.dot_dimension_numbers<[1], [0], [0], [1], [0, 0, 1, 1], [], []>} : vector<16x16xbf16>, vector<16x4xbf16>, vector<16x4xf32> -> vector<16x4xf32>
    "tpu.trace_stop"() : () -> ()
    %c0_129 = arith.constant 0 : index
    %c28 = arith.constant 28 : index
    %194 = vector.load %arg8[%c0_129, %c28] : memref<16x32xf32, #tpu.memory_space<vmem>>, vector<16x4xf32>
    tpu.vector_store %arg8[%c0_129, %c28], %193 {strides = array<i32>} : memref<16x32xf32, #tpu.memory_space<vmem>>, vector<16x4xf32>,
    %c0_130 = arith.constant 0 : index
    %c0_131 = arith.constant 0 : index
    %195 = vector.load %arg8[%c0_130, %c0_131] : memref<16x32xf32, #tpu.memory_space<vmem>>, vector<4x32xf32>
    %c0_132 = arith.constant 0 : index
    %c0_133 = arith.constant 0 : index
    %c0_134 = arith.constant 0 : index
    %c0_135 = arith.constant 0 : index
    %196 = vector.load %arg4[%c0_132, %c0_133, %c0_134, %c0_135] : memref<1x4x16x32xf32, #tpu.memory_space<vmem>>, vector<1x1x4x32xf32>
    %197 = vector.shape_cast %196 : vector<1x1x4x32xf32> to vector<4x32xf32>
    %198 = vector.shape_cast %195 : vector<4x32xf32> to vector<1x1x4x32xf32>
    tpu.vector_store %arg4[%c0_132, %c0_133, %c0_134, %c0_135], %198 {strides = array<i32>} : memref<1x4x16x32xf32, #tpu.memory_space<vmem>>, vector<1x1x4x32xf32>,
    %c4_136 = arith.constant 4 : index
    %c0_137 = arith.constant 0 : index
    %199 = vector.load %arg8[%c4_136, %c0_137] : memref<16x32xf32, #tpu.memory_space<vmem>>, vector<4x32xf32>
    %c0_138 = arith.constant 0 : index
    %c1_139 = arith.constant 1 : index
    %c0_140 = arith.constant 0 : index
    %c0_141 = arith.constant 0 : index
    %200 = vector.load %arg4[%c0_138, %c1_139, %c0_140, %c0_141] : memref<1x4x16x32xf32, #tpu.memory_space<vmem>>, vector<1x1x4x32xf32>
    %201 = vector.shape_cast %200 : vector<1x1x4x32xf32> to vector<4x32xf32>
    %202 = vector.shape_cast %199 : vector<4x32xf32> to vector<1x1x4x32xf32>
    tpu.vector_store %arg4[%c0_138, %c1_139, %c0_140, %c0_141], %202 {strides = array<i32>} : memref<1x4x16x32xf32, #tpu.memory_space<vmem>>, vector<1x1x4x32xf32>,
    %c8_142 = arith.constant 8 : index
    %c0_143 = arith.constant 0 : index
    %203 = vector.load %arg8[%c8_142, %c0_143] : memref<16x32xf32, #tpu.memory_space<vmem>>, vector<4x32xf32>
    %c0_144 = arith.constant 0 : index
    %c2_145 = arith.constant 2 : index
    %c0_146 = arith.constant 0 : index
    %c0_147 = arith.constant 0 : index
    %204 = vector.load %arg4[%c0_144, %c2_145, %c0_146, %c0_147] : memref<1x4x16x32xf32, #tpu.memory_space<vmem>>, vector<1x1x4x32xf32>
    %205 = vector.shape_cast %204 : vector<1x1x4x32xf32> to vector<4x32xf32>
    %206 = vector.shape_cast %203 : vector<4x32xf32> to vector<1x1x4x32xf32>
    tpu.vector_store %arg4[%c0_144, %c2_145, %c0_146, %c0_147], %206 {strides = array<i32>} : memref<1x4x16x32xf32, #tpu.memory_space<vmem>>, vector<1x1x4x32xf32>,
    %c12_148 = arith.constant 12 : index
    %c0_149 = arith.constant 0 : index
    %207 = vector.load %arg8[%c12_148, %c0_149] : memref<16x32xf32, #tpu.memory_space<vmem>>, vector<4x32xf32>
    %c0_150 = arith.constant 0 : index
    %c3_151 = arith.constant 3 : index
    %c0_152 = arith.constant 0 : index
    %c0_153 = arith.constant 0 : index
    %208 = vector.load %arg4[%c0_150, %c3_151, %c0_152, %c0_153] : memref<1x4x16x32xf32, #tpu.memory_space<vmem>>, vector<1x1x4x32xf32>
    %209 = vector.shape_cast %208 : vector<1x1x4x32xf32> to vector<4x32xf32>
    %210 = vector.shape_cast %207 : vector<4x32xf32> to vector<1x1x4x32xf32>
    tpu.vector_store %arg4[%c0_150, %c3_151, %c0_152, %c0_153], %210 {strides = array<i32>} : memref<1x4x16x32xf32, #tpu.memory_space<vmem>>, vector<1x1x4x32xf32>,
    %c0_154 = arith.constant 0 : index
    %c0_155 = arith.constant 0 : index
    %c0_156 = arith.constant 0 : index
    %c4_157 = arith.constant 4 : index
    %c0_158 = arith.constant 0 : index
    %211 = vector.load %arg3[%c0_154, %c0_155, %c0_156, %c4_157, %c0_158] : memref<3x1x4x16x32xf32, #tpu.memory_space<vmem>>, vector<1x1x1x4x32xf32>
    %212 = vector.shape_cast %211 : vector<1x1x1x4x32xf32> to vector<4x32xf32>
    %cst_159 = arith.constant 5.000000e-01 : f32
    %213 = vector.broadcast %cst_159 : f32 to vector<4x32xf32>
    %214 = arith.mulf %212, %213 : vector<4x32xf32>
    %215 = arith.truncf %214 : vector<4x32xf32> to vector<4x32xbf16>
    %c0_160 = arith.constant 0 : index
    %c0_161 = arith.constant 0 : index
    %216 = vector.load %arg5[%c0_160, %c0_161] : memref<16x32xbf16, #tpu.memory_space<vmem>>, vector<4x32xbf16>
    tpu.vector_store %arg5[%c0_160, %c0_161], %215 {strides = array<i32>} : memref<16x32xbf16, #tpu.memory_space<vmem>>, vector<4x32xbf16>,
    %c1_162 = arith.constant 1 : index
    %c0_163 = arith.constant 0 : index
    %c0_164 = arith.constant 0 : index
    %c4_165 = arith.constant 4 : index
    %c0_166 = arith.constant 0 : index
    %217 = vector.load %arg3[%c1_162, %c0_163, %c0_164, %c4_165, %c0_166] : memref<3x1x4x16x32xf32, #tpu.memory_space<vmem>>, vector<1x1x1x4x32xf32>
    %218 = vector.shape_cast %217 : vector<1x1x1x4x32xf32> to vector<4x32xf32>
    %219 = arith.truncf %218 : vector<4x32xf32> to vector<4x32xbf16>
    %c0_167 = arith.constant 0 : index
    %c0_168 = arith.constant 0 : index
    %220 = vector.load %arg6[%c0_167, %c0_168] : memref<16x32xbf16, #tpu.memory_space<vmem>>, vector<4x32xbf16>
    tpu.vector_store %arg6[%c0_167, %c0_168], %219 {strides = array<i32>} : memref<16x32xbf16, #tpu.memory_space<vmem>>, vector<4x32xbf16>,
    %c2_169 = arith.constant 2 : index
    %c0_170 = arith.constant 0 : index
    %c0_171 = arith.constant 0 : index
    %c4_172 = arith.constant 4 : index
    %c0_173 = arith.constant 0 : index
    %221 = vector.load %arg3[%c2_169, %c0_170, %c0_171, %c4_172, %c0_173] : memref<3x1x4x16x32xf32, #tpu.memory_space<vmem>>, vector<1x1x1x4x32xf32>
    %222 = vector.shape_cast %221 : vector<1x1x1x4x32xf32> to vector<4x32xf32>
    %223 = arith.truncf %222 : vector<4x32xf32> to vector<4x32xbf16>
    %c0_174 = arith.constant 0 : index
    %c0_175 = arith.constant 0 : index
    %224 = vector.load %arg7[%c0_174, %c0_175] : memref<16x32xbf16, #tpu.memory_space<vmem>>, vector<4x32xbf16>
    tpu.vector_store %arg7[%c0_174, %c0_175], %223 {strides = array<i32>} : memref<16x32xbf16, #tpu.memory_space<vmem>>, vector<4x32xbf16>,
    %c0_176 = arith.constant 0 : index
    %c0_177 = arith.constant 0 : index
    %c1_178 = arith.constant 1 : index
    %c4_179 = arith.constant 4 : index
    %c0_180 = arith.constant 0 : index
    %225 = vector.load %arg3[%c0_176, %c0_177, %c1_178, %c4_179, %c0_180] : memref<3x1x4x16x32xf32, #tpu.memory_space<vmem>>, vector<1x1x1x4x32xf32>
    %226 = vector.shape_cast %225 : vector<1x1x1x4x32xf32> to vector<4x32xf32>
    %cst_181 = arith.constant 5.000000e-01 : f32
    %227 = vector.broadcast %cst_181 : f32 to vector<4x32xf32>
    %228 = arith.mulf %226, %227 : vector<4x32xf32>
    %229 = arith.truncf %228 : vector<4x32xf32> to vector<4x32xbf16>
    %c4_182 = arith.constant 4 : index
    %c0_183 = arith.constant 0 : index
    %230 = vector.load %arg5[%c4_182, %c0_183] : memref<16x32xbf16, #tpu.memory_space<vmem>>, vector<4x32xbf16>
    tpu.vector_store %arg5[%c4_182, %c0_183], %229 {strides = array<i32>} : memref<16x32xbf16, #tpu.memory_space<vmem>>, vector<4x32xbf16>,
    %c1_184 = arith.constant 1 : index
    %c0_185 = arith.constant 0 : index
    %c1_186 = arith.constant 1 : index
    %c4_187 = arith.constant 4 : index
    %c0_188 = arith.constant 0 : index
    %231 = vector.load %arg3[%c1_184, %c0_185, %c1_186, %c4_187, %c0_188] : memref<3x1x4x16x32xf32, #tpu.memory_space<vmem>>, vector<1x1x1x4x32xf32>
    %232 = vector.shape_cast %231 : vector<1x1x1x4x32xf32> to vector<4x32xf32>
    %233 = arith.truncf %232 : vector<4x32xf32> to vector<4x32xbf16>
    %c4_189 = arith.constant 4 : index
    %c0_190 = arith.constant 0 : index
    %234 = vector.load %arg6[%c4_189, %c0_190] : memref<16x32xbf16, #tpu.memory_space<vmem>>, vector<4x32xbf16>
    tpu.vector_store %arg6[%c4_189, %c0_190], %233 {strides = array<i32>} : memref<16x32xbf16, #tpu.memory_space<vmem>>, vector<4x32xbf16>,
    %c2_191 = arith.constant 2 : index
    %c0_192 = arith.constant 0 : index
    %c1_193 = arith.constant 1 : index
    %c4_194 = arith.constant 4 : index
    %c0_195 = arith.constant 0 : index
    %235 = vector.load %arg3[%c2_191, %c0_192, %c1_193, %c4_194, %c0_195] : memref<3x1x4x16x32xf32, #tpu.memory_space<vmem>>, vector<1x1x1x4x32xf32>
    %236 = vector.shape_cast %235 : vector<1x1x1x4x32xf32> to vector<4x32xf32>
    %237 = arith.truncf %236 : vector<4x32xf32> to vector<4x32xbf16>
    %c4_196 = arith.constant 4 : index
    %c0_197 = arith.constant 0 : index
    %238 = vector.load %arg7[%c4_196, %c0_197] : memref<16x32xbf16, #tpu.memory_space<vmem>>, vector<4x32xbf16>
    tpu.vector_store %arg7[%c4_196, %c0_197], %237 {strides = array<i32>} : memref<16x32xbf16, #tpu.memory_space<vmem>>, vector<4x32xbf16>,
    %c0_198 = arith.constant 0 : index
    %c0_199 = arith.constant 0 : index
    %c2_200 = arith.constant 2 : index
    %c4_201 = arith.constant 4 : index
    %c0_202 = arith.constant 0 : index
    %239 = vector.load %arg3[%c0_198, %c0_199, %c2_200, %c4_201, %c0_202] : memref<3x1x4x16x32xf32, #tpu.memory_space<vmem>>, vector<1x1x1x4x32xf32>
    %240 = vector.shape_cast %239 : vector<1x1x1x4x32xf32> to vector<4x32xf32>
    %cst_203 = arith.constant 5.000000e-01 : f32
    %241 = vector.broadcast %cst_203 : f32 to vector<4x32xf32>
    %242 = arith.mulf %240, %241 : vector<4x32xf32>
    %243 = arith.truncf %242 : vector<4x32xf32> to vector<4x32xbf16>
    %c8_204 = arith.constant 8 : index
    %c0_205 = arith.constant 0 : index
    %244 = vector.load %arg5[%c8_204, %c0_205] : memref<16x32xbf16, #tpu.memory_space<vmem>>, vector<4x32xbf16>
    tpu.vector_store %arg5[%c8_204, %c0_205], %243 {strides = array<i32>} : memref<16x32xbf16, #tpu.memory_space<vmem>>, vector<4x32xbf16>,
    %c1_206 = arith.constant 1 : index
    %c0_207 = arith.constant 0 : index
    %c2_208 = arith.constant 2 : index
    %c4_209 = arith.constant 4 : index
    %c0_210 = arith.constant 0 : index
    %245 = vector.load %arg3[%c1_206, %c0_207, %c2_208, %c4_209, %c0_210] : memref<3x1x4x16x32xf32, #tpu.memory_space<vmem>>, vector<1x1x1x4x32xf32>
    %246 = vector.shape_cast %245 : vector<1x1x1x4x32xf32> to vector<4x32xf32>
    %247 = arith.truncf %246 : vector<4x32xf32> to vector<4x32xbf16>
    %c8_211 = arith.constant 8 : index
    %c0_212 = arith.constant 0 : index
    %248 = vector.load %arg6[%c8_211, %c0_212] : memref<16x32xbf16, #tpu.memory_space<vmem>>, vector<4x32xbf16>
    tpu.vector_store %arg6[%c8_211, %c0_212], %247 {strides = array<i32>} : memref<16x32xbf16, #tpu.memory_space<vmem>>, vector<4x32xbf16>,
    %c2_213 = arith.constant 2 : index
    %c0_214 = arith.constant 0 : index
    %c2_215 = arith.constant 2 : index
    %c4_216 = arith.constant 4 : index
    %c0_217 = arith.constant 0 : index
    %249 = vector.load %arg3[%c2_213, %c0_214, %c2_215, %c4_216, %c0_217] : memref<3x1x4x16x32xf32, #tpu.memory_space<vmem>>, vector<1x1x1x4x32xf32>
    %250 = vector.shape_cast %249 : vector<1x1x1x4x32xf32> to vector<4x32xf32>
    %251 = arith.truncf %250 : vector<4x32xf32> to vector<4x32xbf16>
    %c8_218 = arith.constant 8 : index
    %c0_219 = arith.constant 0 : index
    %252 = vector.load %arg7[%c8_218, %c0_219] : memref<16x32xbf16, #tpu.memory_space<vmem>>, vector<4x32xbf16>
    tpu.vector_store %arg7[%c8_218, %c0_219], %251 {strides = array<i32>} : memref<16x32xbf16, #tpu.memory_space<vmem>>, vector<4x32xbf16>,
    %c0_220 = arith.constant 0 : index
    %c0_221 = arith.constant 0 : index
    %c3_222 = arith.constant 3 : index
    %c4_223 = arith.constant 4 : index
    %c0_224 = arith.constant 0 : index
    %253 = vector.load %arg3[%c0_220, %c0_221, %c3_222, %c4_223, %c0_224] : memref<3x1x4x16x32xf32, #tpu.memory_space<vmem>>, vector<1x1x1x4x32xf32>
    %254 = vector.shape_cast %253 : vector<1x1x1x4x32xf32> to vector<4x32xf32>
    %cst_225 = arith.constant 5.000000e-01 : f32
    %255 = vector.broadcast %cst_225 : f32 to vector<4x32xf32>
    %256 = arith.mulf %254, %255 : vector<4x32xf32>
    %257 = arith.truncf %256 : vector<4x32xf32> to vector<4x32xbf16>
    %c12_226 = arith.constant 12 : index
    %c0_227 = arith.constant 0 : index
    %258 = vector.load %arg5[%c12_226, %c0_227] : memref<16x32xbf16, #tpu.memory_space<vmem>>, vector<4x32xbf16>
    tpu.vector_store %arg5[%c12_226, %c0_227], %257 {strides = array<i32>} : memref<16x32xbf16, #tpu.memory_space<vmem>>, vector<4x32xbf16>,
    %c1_228 = arith.constant 1 : index
    %c0_229 = arith.constant 0 : index
    %c3_230 = arith.constant 3 : index
    %c4_231 = arith.constant 4 : index
    %c0_232 = arith.constant 0 : index
    %259 = vector.load %arg3[%c1_228, %c0_229, %c3_230, %c4_231, %c0_232] : memref<3x1x4x16x32xf32, #tpu.memory_space<vmem>>, vector<1x1x1x4x32xf32>
    %260 = vector.shape_cast %259 : vector<1x1x1x4x32xf32> to vector<4x32xf32>
    %261 = arith.truncf %260 : vector<4x32xf32> to vector<4x32xbf16>
    %c12_233 = arith.constant 12 : index
    %c0_234 = arith.constant 0 : index
    %262 = vector.load %arg6[%c12_233, %c0_234] : memref<16x32xbf16, #tpu.memory_space<vmem>>, vector<4x32xbf16>
    tpu.vector_store %arg6[%c12_233, %c0_234], %261 {strides = array<i32>} : memref<16x32xbf16, #tpu.memory_space<vmem>>, vector<4x32xbf16>,
    %c2_235 = arith.constant 2 : index
    %c0_236 = arith.constant 0 : index
    %c3_237 = arith.constant 3 : index
    %c4_238 = arith.constant 4 : index
    %c0_239 = arith.constant 0 : index
    %263 = vector.load %arg3[%c2_235, %c0_236, %c3_237, %c4_238, %c0_239] : memref<3x1x4x16x32xf32, #tpu.memory_space<vmem>>, vector<1x1x1x4x32xf32>
    %264 = vector.shape_cast %263 : vector<1x1x1x4x32xf32> to vector<4x32xf32>
    %265 = arith.truncf %264 : vector<4x32xf32> to vector<4x32xbf16>
    %c12_240 = arith.constant 12 : index
    %c0_241 = arith.constant 0 : index
    %266 = vector.load %arg7[%c12_240, %c0_241] : memref<16x32xbf16, #tpu.memory_space<vmem>>, vector<4x32xbf16>
    tpu.vector_store %arg7[%c12_240, %c0_241], %265 {strides = array<i32>} : memref<16x32xbf16, #tpu.memory_space<vmem>>, vector<4x32xbf16>,
    %c0_242 = arith.constant 0 : index
    %c0_243 = arith.constant 0 : index
    %267 = vector.load %arg5[%c0_242, %c0_243] : memref<16x32xbf16, #tpu.memory_space<vmem>>, vector<16x32xbf16>
    %c0_244 = arith.constant 0 : index
    %c0_245 = arith.constant 0 : index
    %268 = vector.load %arg6[%c0_244, %c0_245] : memref<16x32xbf16, #tpu.memory_space<vmem>>, vector<16x32xbf16>
    %c0_246 = arith.constant 0 : index
    %c0_247 = arith.constant 0 : index
    %269 = vector.load %arg7[%c0_246, %c0_247] : memref<16x32xbf16, #tpu.memory_space<vmem>>, vector<16x32xbf16>
    %270 = vector.extract_strided_slice %267 {offsets = [0, 0], sizes = [16, 4], strides = [1, 1]} : vector<16x32xbf16> to vector<16x4xbf16>
    %271 = vector.extract_strided_slice %268 {offsets = [0, 0], sizes = [16, 4], strides = [1, 1]} : vector<16x32xbf16> to vector<16x4xbf16>
    %272 = vector.extract_strided_slice %269 {offsets = [0, 0], sizes = [16, 4], strides = [1, 1]} : vector<16x32xbf16> to vector<16x4xbf16>
    "tpu.trace_start"() <{level = 10 : i32, message = "sd,td->st"}> : () -> ()
    %cst_248 = arith.constant dense<0.000000e+00> : vector<16x16xf32>
    %273 = tpu.matmul %270, %271, %cst_248 {dimension_numbers = #tpu.dot_dimension_numbers<[1], [1], [0], [0], [0, 0, 1, 0], [], []>} : vector<16x4xbf16>, vector<16x4xbf16>, vector<16x16xf32> -> vector<16x16xf32>
    "tpu.trace_stop"() : () -> ()
    %cst_249 = arith.constant dense<0xFF800000> : vector<16xf32>
    %274 = vector.multi_reduction <maximumf>, %273, %cst_249 [1] : vector<16x16xf32> to vector<16xf32>
    %275 = vector.shape_cast %274 : vector<16xf32> to vector<16x1xf32>
    %276 = vector.broadcast %275 : vector<16x1xf32> to vector<16x16xf32>
    %277 = arith.subf %273, %276 : vector<16x16xf32>
    %278 = math.exp %277 : vector<16x16xf32>
    %cst_250 = arith.constant dense<0.000000e+00> : vector<16xf32>
    %279 = vector.multi_reduction <add>, %278, %cst_250 [1] : vector<16x16xf32> to vector<16xf32>
    %280 = vector.shape_cast %279 : vector<16xf32> to vector<16x1xf32>
    %281 = tpu.reciprocal %280 {approx = true} : vector<16x1xf32> -> vector<16x1xf32>
    %282 = vector.broadcast %281 : vector<16x1xf32> to vector<16x16xf32>
    %283 = arith.mulf %278, %282 : vector<16x16xf32>
    %284 = arith.truncf %283 : vector<16x16xf32> to vector<16x16xbf16>
    "tpu.trace_start"() <{level = 10 : i32, message = "st,td->sd"}> : () -> ()
    %cst_251 = arith.constant dense<0.000000e+00> : vector<16x4xf32>
    %285 = tpu.matmul %284, %272, %cst_251 {dimension_numbers = #tpu.dot_dimension_numbers<[1], [0], [0], [1], [0, 0, 1, 1], [], []>} : vector<16x16xbf16>, vector<16x4xbf16>, vector<16x4xf32> -> vector<16x4xf32>
    "tpu.trace_stop"() : () -> ()
    %c0_252 = arith.constant 0 : index
    %c0_253 = arith.constant 0 : index
    %286 = vector.load %arg8[%c0_252, %c0_253] : memref<16x32xf32, #tpu.memory_space<vmem>>, vector<16x4xf32>
    tpu.vector_store %arg8[%c0_252, %c0_253], %285 {strides = array<i32>} : memref<16x32xf32, #tpu.memory_space<vmem>>, vector<16x4xf32>,
    %287 = vector.extract_strided_slice %267 {offsets = [0, 4], sizes = [16, 4], strides = [1, 1]} : vector<16x32xbf16> to vector<16x4xbf16>
    %288 = vector.extract_strided_slice %268 {offsets = [0, 4], sizes = [16, 4], strides = [1, 1]} : vector<16x32xbf16> to vector<16x4xbf16>
    %289 = vector.extract_strided_slice %269 {offsets = [0, 4], sizes = [16, 4], strides = [1, 1]} : vector<16x32xbf16> to vector<16x4xbf16>
    "tpu.trace_start"() <{level = 10 : i32, message = "sd,td->st"}> : () -> ()
    %cst_254 = arith.constant dense<0.000000e+00> : vector<16x16xf32>
    %290 = tpu.matmul %287, %288, %cst_254 {dimension_numbers = #tpu.dot_dimension_numbers<[1], [1], [0], [0], [0, 0, 1, 0], [], []>} : vector<16x4xbf16>, vector<16x4xbf16>, vector<16x16xf32> -> vector<16x16xf32>
    "tpu.trace_stop"() : () -> ()
    %cst_255 = arith.constant dense<0xFF800000> : vector<16xf32>
    %291 = vector.multi_reduction <maximumf>, %290, %cst_255 [1] : vector<16x16xf32> to vector<16xf32>
    %292 = vector.shape_cast %291 : vector<16xf32> to vector<16x1xf32>
    %293 = vector.broadcast %292 : vector<16x1xf32> to vector<16x16xf32>
    %294 = arith.subf %290, %293 : vector<16x16xf32>
    %295 = math.exp %294 : vector<16x16xf32>
    %cst_256 = arith.constant dense<0.000000e+00> : vector<16xf32>
    %296 = vector.multi_reduction <add>, %295, %cst_256 [1] : vector<16x16xf32> to vector<16xf32>
    %297 = vector.shape_cast %296 : vector<16xf32> to vector<16x1xf32>
    %298 = tpu.reciprocal %297 {approx = true} : vector<16x1xf32> -> vector<16x1xf32>
    %299 = vector.broadcast %298 : vector<16x1xf32> to vector<16x16xf32>
    %300 = arith.mulf %295, %299 : vector<16x16xf32>
    %301 = arith.truncf %300 : vector<16x16xf32> to vector<16x16xbf16>
    "tpu.trace_start"() <{level = 10 : i32, message = "st,td->sd"}> : () -> ()
    %cst_257 = arith.constant dense<0.000000e+00> : vector<16x4xf32>
    %302 = tpu.matmul %301, %289, %cst_257 {dimension_numbers = #tpu.dot_dimension_numbers<[1], [0], [0], [1], [0, 0, 1, 1], [], []>} : vector<16x16xbf16>, vector<16x4xbf16>, vector<16x4xf32> -> vector<16x4xf32>
    "tpu.trace_stop"() : () -> ()
    %c0_258 = arith.constant 0 : index
    %c4_259 = arith.constant 4 : index
    %303 = vector.load %arg8[%c0_258, %c4_259] : memref<16x32xf32, #tpu.memory_space<vmem>>, vector<16x4xf32>
    tpu.vector_store %arg8[%c0_258, %c4_259], %302 {strides = array<i32>} : memref<16x32xf32, #tpu.memory_space<vmem>>, vector<16x4xf32>,
    %304 = vector.extract_strided_slice %267 {offsets = [0, 8], sizes = [16, 4], strides = [1, 1]} : vector<16x32xbf16> to vector<16x4xbf16>
    %305 = vector.extract_strided_slice %268 {offsets = [0, 8], sizes = [16, 4], strides = [1, 1]} : vector<16x32xbf16> to vector<16x4xbf16>
    %306 = vector.extract_strided_slice %269 {offsets = [0, 8], sizes = [16, 4], strides = [1, 1]} : vector<16x32xbf16> to vector<16x4xbf16>
    "tpu.trace_start"() <{level = 10 : i32, message = "sd,td->st"}> : () -> ()
    %cst_260 = arith.constant dense<0.000000e+00> : vector<16x16xf32>
    %307 = tpu.matmul %304, %305, %cst_260 {dimension_numbers = #tpu.dot_dimension_numbers<[1], [1], [0], [0], [0, 0, 1, 0], [], []>} : vector<16x4xbf16>, vector<16x4xbf16>, vector<16x16xf32> -> vector<16x16xf32>
    "tpu.trace_stop"() : () -> ()
    %cst_261 = arith.constant dense<0xFF800000> : vector<16xf32>
    %308 = vector.multi_reduction <maximumf>, %307, %cst_261 [1] : vector<16x16xf32> to vector<16xf32>
    %309 = vector.shape_cast %308 : vector<16xf32> to vector<16x1xf32>
    %310 = vector.broadcast %309 : vector<16x1xf32> to vector<16x16xf32>
    %311 = arith.subf %307, %310 : vector<16x16xf32>
    %312 = math.exp %311 : vector<16x16xf32>
    %cst_262 = arith.constant dense<0.000000e+00> : vector<16xf32>
    %313 = vector.multi_reduction <add>, %312, %cst_262 [1] : vector<16x16xf32> to vector<16xf32>
    %314 = vector.shape_cast %313 : vector<16xf32> to vector<16x1xf32>
    %315 = tpu.reciprocal %314 {approx = true} : vector<16x1xf32> -> vector<16x1xf32>
    %316 = vector.broadcast %315 : vector<16x1xf32> to vector<16x16xf32>
    %317 = arith.mulf %312, %316 : vector<16x16xf32>
    %318 = arith.truncf %317 : vector<16x16xf32> to vector<16x16xbf16>
    "tpu.trace_start"() <{level = 10 : i32, message = "st,td->sd"}> : () -> ()
    %cst_263 = arith.constant dense<0.000000e+00> : vector<16x4xf32>
    %319 = tpu.matmul %318, %306, %cst_263 {dimension_numbers = #tpu.dot_dimension_numbers<[1], [0], [0], [1], [0, 0, 1, 1], [], []>} : vector<16x16xbf16>, vector<16x4xbf16>, vector<16x4xf32> -> vector<16x4xf32>
    "tpu.trace_stop"() : () -> ()
    %c0_264 = arith.constant 0 : index
    %c8_265 = arith.constant 8 : index
    %320 = vector.load %arg8[%c0_264, %c8_265] : memref<16x32xf32, #tpu.memory_space<vmem>>, vector<16x4xf32>
    tpu.vector_store %arg8[%c0_264, %c8_265], %319 {strides = array<i32>} : memref<16x32xf32, #tpu.memory_space<vmem>>, vector<16x4xf32>,
    %321 = vector.extract_strided_slice %267 {offsets = [0, 12], sizes = [16, 4], strides = [1, 1]} : vector<16x32xbf16> to vector<16x4xbf16>
    %322 = vector.extract_strided_slice %268 {offsets = [0, 12], sizes = [16, 4], strides = [1, 1]} : vector<16x32xbf16> to vector<16x4xbf16>
    %323 = vector.extract_strided_slice %269 {offsets = [0, 12], sizes = [16, 4], strides = [1, 1]} : vector<16x32xbf16> to vector<16x4xbf16>
    "tpu.trace_start"() <{level = 10 : i32, message = "sd,td->st"}> : () -> ()
    %cst_266 = arith.constant dense<0.000000e+00> : vector<16x16xf32>
    %324 = tpu.matmul %321, %322, %cst_266 {dimension_numbers = #tpu.dot_dimension_numbers<[1], [1], [0], [0], [0, 0, 1, 0], [], []>} : vector<16x4xbf16>, vector<16x4xbf16>, vector<16x16xf32> -> vector<16x16xf32>
    "tpu.trace_stop"() : () -> ()
    %cst_267 = arith.constant dense<0xFF800000> : vector<16xf32>
    %325 = vector.multi_reduction <maximumf>, %324, %cst_267 [1] : vector<16x16xf32> to vector<16xf32>
    %326 = vector.shape_cast %325 : vector<16xf32> to vector<16x1xf32>
    %327 = vector.broadcast %326 : vector<16x1xf32> to vector<16x16xf32>
    %328 = arith.subf %324, %327 : vector<16x16xf32>
    %329 = math.exp %328 : vector<16x16xf32>
    %cst_268 = arith.constant dense<0.000000e+00> : vector<16xf32>
    %330 = vector.multi_reduction <add>, %329, %cst_268 [1] : vector<16x16xf32> to vector<16xf32>
    %331 = vector.shape_cast %330 : vector<16xf32> to vector<16x1xf32>
    %332 = tpu.reciprocal %331 {approx = true} : vector<16x1xf32> -> vector<16x1xf32>
    %333 = vector.broadcast %332 : vector<16x1xf32> to vector<16x16xf32>
    %334 = arith.mulf %329, %333 : vector<16x16xf32>
    %335 = arith.truncf %334 : vector<16x16xf32> to vector<16x16xbf16>
    "tpu.trace_start"() <{level = 10 : i32, message = "st,td->sd"}> : () -> ()
    %cst_269 = arith.constant dense<0.000000e+00> : vector<16x4xf32>
    %336 = tpu.matmul %335, %323, %cst_269 {dimension_numbers = #tpu.dot_dimension_numbers<[1], [0], [0], [1], [0, 0, 1, 1], [], []>} : vector<16x16xbf16>, vector<16x4xbf16>, vector<16x4xf32> -> vector<16x4xf32>
    "tpu.trace_stop"() : () -> ()
    %c0_270 = arith.constant 0 : index
    %c12_271 = arith.constant 12 : index
    %337 = vector.load %arg8[%c0_270, %c12_271] : memref<16x32xf32, #tpu.memory_space<vmem>>, vector<16x4xf32>
    tpu.vector_store %arg8[%c0_270, %c12_271], %336 {strides = array<i32>} : memref<16x32xf32, #tpu.memory_space<vmem>>, vector<16x4xf32>,
    %338 = vector.extract_strided_slice %267 {offsets = [0, 16], sizes = [16, 4], strides = [1, 1]} : vector<16x32xbf16> to vector<16x4xbf16>
    %339 = vector.extract_strided_slice %268 {offsets = [0, 16], sizes = [16, 4], strides = [1, 1]} : vector<16x32xbf16> to vector<16x4xbf16>
    %340 = vector.extract_strided_slice %269 {offsets = [0, 16], sizes = [16, 4], strides = [1, 1]} : vector<16x32xbf16> to vector<16x4xbf16>
    "tpu.trace_start"() <{level = 10 : i32, message = "sd,td->st"}> : () -> ()
    %cst_272 = arith.constant dense<0.000000e+00> : vector<16x16xf32>
    %341 = tpu.matmul %338, %339, %cst_272 {dimension_numbers = #tpu.dot_dimension_numbers<[1], [1], [0], [0], [0, 0, 1, 0], [], []>} : vector<16x4xbf16>, vector<16x4xbf16>, vector<16x16xf32> -> vector<16x16xf32>
    "tpu.trace_stop"() : () -> ()
    %cst_273 = arith.constant dense<0xFF800000> : vector<16xf32>
    %342 = vector.multi_reduction <maximumf>, %341, %cst_273 [1] : vector<16x16xf32> to vector<16xf32>
    %343 = vector.shape_cast %342 : vector<16xf32> to vector<16x1xf32>
    %344 = vector.broadcast %343 : vector<16x1xf32> to vector<16x16xf32>
    %345 = arith.subf %341, %344 : vector<16x16xf32>
    %346 = math.exp %345 : vector<16x16xf32>
    %cst_274 = arith.constant dense<0.000000e+00> : vector<16xf32>
    %347 = vector.multi_reduction <add>, %346, %cst_274 [1] : vector<16x16xf32> to vector<16xf32>
    %348 = vector.shape_cast %347 : vector<16xf32> to vector<16x1xf32>
    %349 = tpu.reciprocal %348 {approx = true} : vector<16x1xf32> -> vector<16x1xf32>
    %350 = vector.broadcast %349 : vector<16x1xf32> to vector<16x16xf32>
    %351 = arith.mulf %346, %350 : vector<16x16xf32>
    %352 = arith.truncf %351 : vector<16x16xf32> to vector<16x16xbf16>
    "tpu.trace_start"() <{level = 10 : i32, message = "st,td->sd"}> : () -> ()
    %cst_275 = arith.constant dense<0.000000e+00> : vector<16x4xf32>
    %353 = tpu.matmul %352, %340, %cst_275 {dimension_numbers = #tpu.dot_dimension_numbers<[1], [0], [0], [1], [0, 0, 1, 1], [], []>} : vector<16x16xbf16>, vector<16x4xbf16>, vector<16x4xf32> -> vector<16x4xf32>
    "tpu.trace_stop"() : () -> ()
    %c0_276 = arith.constant 0 : index
    %c16_277 = arith.constant 16 : index
    %354 = vector.load %arg8[%c0_276, %c16_277] : memref<16x32xf32, #tpu.memory_space<vmem>>, vector<16x4xf32>
    tpu.vector_store %arg8[%c0_276, %c16_277], %353 {strides = array<i32>} : memref<16x32xf32, #tpu.memory_space<vmem>>, vector<16x4xf32>,
    %355 = vector.extract_strided_slice %267 {offsets = [0, 20], sizes = [16, 4], strides = [1, 1]} : vector<16x32xbf16> to vector<16x4xbf16>
    %356 = vector.extract_strided_slice %268 {offsets = [0, 20], sizes = [16, 4], strides = [1, 1]} : vector<16x32xbf16> to vector<16x4xbf16>
    %357 = vector.extract_strided_slice %269 {offsets = [0, 20], sizes = [16, 4], strides = [1, 1]} : vector<16x32xbf16> to vector<16x4xbf16>
    "tpu.trace_start"() <{level = 10 : i32, message = "sd,td->st"}> : () -> ()
    %cst_278 = arith.constant dense<0.000000e+00> : vector<16x16xf32>
    %358 = tpu.matmul %355, %356, %cst_278 {dimension_numbers = #tpu.dot_dimension_numbers<[1], [1], [0], [0], [0, 0, 1, 0], [], []>} : vector<16x4xbf16>, vector<16x4xbf16>, vector<16x16xf32> -> vector<16x16xf32>
    "tpu.trace_stop"() : () -> ()
    %cst_279 = arith.constant dense<0xFF800000> : vector<16xf32>
    %359 = vector.multi_reduction <maximumf>, %358, %cst_279 [1] : vector<16x16xf32> to vector<16xf32>
    %360 = vector.shape_cast %359 : vector<16xf32> to vector<16x1xf32>
    %361 = vector.broadcast %360 : vector<16x1xf32> to vector<16x16xf32>
    %362 = arith.subf %358, %361 : vector<16x16xf32>
    %363 = math.exp %362 : vector<16x16xf32>
    %cst_280 = arith.constant dense<0.000000e+00> : vector<16xf32>
    %364 = vector.multi_reduction <add>, %363, %cst_280 [1] : vector<16x16xf32> to vector<16xf32>
    %365 = vector.shape_cast %364 : vector<16xf32> to vector<16x1xf32>
    %366 = tpu.reciprocal %365 {approx = true} : vector<16x1xf32> -> vector<16x1xf32>
    %367 = vector.broadcast %366 : vector<16x1xf32> to vector<16x16xf32>
    %368 = arith.mulf %363, %367 : vector<16x16xf32>
    %369 = arith.truncf %368 : vector<16x16xf32> to vector<16x16xbf16>
    "tpu.trace_start"() <{level = 10 : i32, message = "st,td->sd"}> : () -> ()
    %cst_281 = arith.constant dense<0.000000e+00> : vector<16x4xf32>
    %370 = tpu.matmul %369, %357, %cst_281 {dimension_numbers = #tpu.dot_dimension_numbers<[1], [0], [0], [1], [0, 0, 1, 1], [], []>} : vector<16x16xbf16>, vector<16x4xbf16>, vector<16x4xf32> -> vector<16x4xf32>
    "tpu.trace_stop"() : () -> ()
    %c0_282 = arith.constant 0 : index
    %c20_283 = arith.constant 20 : index
    %371 = vector.load %arg8[%c0_282, %c20_283] : memref<16x32xf32, #tpu.memory_space<vmem>>, vector<16x4xf32>
    tpu.vector_store %arg8[%c0_282, %c20_283], %370 {strides = array<i32>} : memref<16x32xf32, #tpu.memory_space<vmem>>, vector<16x4xf32>,
    %372 = vector.extract_strided_slice %267 {offsets = [0, 24], sizes = [16, 4], strides = [1, 1]} : vector<16x32xbf16> to vector<16x4xbf16>
    %373 = vector.extract_strided_slice %268 {offsets = [0, 24], sizes = [16, 4], strides = [1, 1]} : vector<16x32xbf16> to vector<16x4xbf16>
    %374 = vector.extract_strided_slice %269 {offsets = [0, 24], sizes = [16, 4], strides = [1, 1]} : vector<16x32xbf16> to vector<16x4xbf16>
    "tpu.trace_start"() <{level = 10 : i32, message = "sd,td->st"}> : () -> ()
    %cst_284 = arith.constant dense<0.000000e+00> : vector<16x16xf32>
    %375 = tpu.matmul %372, %373, %cst_284 {dimension_numbers = #tpu.dot_dimension_numbers<[1], [1], [0], [0], [0, 0, 1, 0], [], []>} : vector<16x4xbf16>, vector<16x4xbf16>, vector<16x16xf32> -> vector<16x16xf32>
    "tpu.trace_stop"() : () -> ()
    %cst_285 = arith.constant dense<0xFF800000> : vector<16xf32>
    %376 = vector.multi_reduction <maximumf>, %375, %cst_285 [1] : vector<16x16xf32> to vector<16xf32>
    %377 = vector.shape_cast %376 : vector<16xf32> to vector<16x1xf32>
    %378 = vector.broadcast %377 : vector<16x1xf32> to vector<16x16xf32>
    %379 = arith.subf %375, %378 : vector<16x16xf32>
    %380 = math.exp %379 : vector<16x16xf32>
    %cst_286 = arith.constant dense<0.000000e+00> : vector<16xf32>
    %381 = vector.multi_reduction <add>, %380, %cst_286 [1] : vector<16x16xf32> to vector<16xf32>
    %382 = vector.shape_cast %381 : vector<16xf32> to vector<16x1xf32>
    %383 = tpu.reciprocal %382 {approx = true} : vector<16x1xf32> -> vector<16x1xf32>
    %384 = vector.broadcast %383 : vector<16x1xf32> to vector<16x16xf32>
    %385 = arith.mulf %380, %384 : vector<16x16xf32>
    %386 = arith.truncf %385 : vector<16x16xf32> to vector<16x16xbf16>
    "tpu.trace_start"() <{level = 10 : i32, message = "st,td->sd"}> : () -> ()
    %cst_287 = arith.constant dense<0.000000e+00> : vector<16x4xf32>
    %387 = tpu.matmul %386, %374, %cst_287 {dimension_numbers = #tpu.dot_dimension_numbers<[1], [0], [0], [1], [0, 0, 1, 1], [], []>} : vector<16x16xbf16>, vector<16x4xbf16>, vector<16x4xf32> -> vector<16x4xf32>
    "tpu.trace_stop"() : () -> ()
    %c0_288 = arith.constant 0 : index
    %c24_289 = arith.constant 24 : index
    %388 = vector.load %arg8[%c0_288, %c24_289] : memref<16x32xf32, #tpu.memory_space<vmem>>, vector<16x4xf32>
    tpu.vector_store %arg8[%c0_288, %c24_289], %387 {strides = array<i32>} : memref<16x32xf32, #tpu.memory_space<vmem>>, vector<16x4xf32>,
    %389 = vector.extract_strided_slice %267 {offsets = [0, 28], sizes = [16, 4], strides = [1, 1]} : vector<16x32xbf16> to vector<16x4xbf16>
    %390 = vector.extract_strided_slice %268 {offsets = [0, 28], sizes = [16, 4], strides = [1, 1]} : vector<16x32xbf16> to vector<16x4xbf16>
    %391 = vector.extract_strided_slice %269 {offsets = [0, 28], sizes = [16, 4], strides = [1, 1]} : vector<16x32xbf16> to vector<16x4xbf16>
    "tpu.trace_start"() <{level = 10 : i32, message = "sd,td->st"}> : () -> ()
    %cst_290 = arith.constant dense<0.000000e+00> : vector<16x16xf32>
    %392 = tpu.matmul %389, %390, %cst_290 {dimension_numbers = #tpu.dot_dimension_numbers<[1], [1], [0], [0], [0, 0, 1, 0], [], []>} : vector<16x4xbf16>, vector<16x4xbf16>, vector<16x16xf32> -> vector<16x16xf32>
    "tpu.trace_stop"() : () -> ()
    %cst_291 = arith.constant dense<0xFF800000> : vector<16xf32>
    %393 = vector.multi_reduction <maximumf>, %392, %cst_291 [1] : vector<16x16xf32> to vector<16xf32>
    %394 = vector.shape_cast %393 : vector<16xf32> to vector<16x1xf32>
    %395 = vector.broadcast %394 : vector<16x1xf32> to vector<16x16xf32>
    %396 = arith.subf %392, %395 : vector<16x16xf32>
    %397 = math.exp %396 : vector<16x16xf32>
    %cst_292 = arith.constant dense<0.000000e+00> : vector<16xf32>
    %398 = vector.multi_reduction <add>, %397, %cst_292 [1] : vector<16x16xf32> to vector<16xf32>
    %399 = vector.shape_cast %398 : vector<16xf32> to vector<16x1xf32>
    %400 = tpu.reciprocal %399 {approx = true} : vector<16x1xf32> -> vector<16x1xf32>
    %401 = vector.broadcast %400 : vector<16x1xf32> to vector<16x16xf32>
    %402 = arith.mulf %397, %401 : vector<16x16xf32>
    %403 = arith.truncf %402 : vector<16x16xf32> to vector<16x16xbf16>
    "tpu.trace_start"() <{level = 10 : i32, message = "st,td->sd"}> : () -> ()
    %cst_293 = arith.constant dense<0.000000e+00> : vector<16x4xf32>
    %404 = tpu.matmul %403, %391, %cst_293 {dimension_numbers = #tpu.dot_dimension_numbers<[1], [0], [0], [1], [0, 0, 1, 1], [], []>} : vector<16x16xbf16>, vector<16x4xbf16>, vector<16x4xf32> -> vector<16x4xf32>
    "tpu.trace_stop"() : () -> ()
    %c0_294 = arith.constant 0 : index
    %c28_295 = arith.constant 28 : index
    %405 = vector.load %arg8[%c0_294, %c28_295] : memref<16x32xf32, #tpu.memory_space<vmem>>, vector<16x4xf32>
    tpu.vector_store %arg8[%c0_294, %c28_295], %404 {strides = array<i32>} : memref<16x32xf32, #tpu.memory_space<vmem>>, vector<16x4xf32>,
    %c0_296 = arith.constant 0 : index
    %c0_297 = arith.constant 0 : index
    %406 = vector.load %arg8[%c0_296, %c0_297] : memref<16x32xf32, #tpu.memory_space<vmem>>, vector<4x32xf32>
    %c0_298 = arith.constant 0 : index
    %c0_299 = arith.constant 0 : index
    %c4_300 = arith.constant 4 : index
    %c0_301 = arith.constant 0 : index
    %407 = vector.load %arg4[%c0_298, %c0_299, %c4_300, %c0_301] : memref<1x4x16x32xf32, #tpu.memory_space<vmem>>, vector<1x1x4x32xf32>
    %408 = vector.shape_cast %407 : vector<1x1x4x32xf32> to vector<4x32xf32>
    %409 = vector.shape_cast %406 : vector<4x32xf32> to vector<1x1x4x32xf32>
    tpu.vector_store %arg4[%c0_298, %c0_299, %c4_300, %c0_301], %409 {strides = array<i32>} : memref<1x4x16x32xf32, #tpu.memory_space<vmem>>, vector<1x1x4x32xf32>,
    %c4_302 = arith.constant 4 : index
    %c0_303 = arith.constant 0 : index
    %410 = vector.load %arg8[%c4_302, %c0_303] : memref<16x32xf32, #tpu.memory_space<vmem>>, vector<4x32xf32>
    %c0_304 = arith.constant 0 : index
    %c1_305 = arith.constant 1 : index
    %c4_306 = arith.constant 4 : index
    %c0_307 = arith.constant 0 : index
    %411 = vector.load %arg4[%c0_304, %c1_305, %c4_306, %c0_307] : memref<1x4x16x32xf32, #tpu.memory_space<vmem>>, vector<1x1x4x32xf32>
    %412 = vector.shape_cast %411 : vector<1x1x4x32xf32> to vector<4x32xf32>
    %413 = vector.shape_cast %410 : vector<4x32xf32> to vector<1x1x4x32xf32>
    tpu.vector_store %arg4[%c0_304, %c1_305, %c4_306, %c0_307], %413 {strides = array<i32>} : memref<1x4x16x32xf32, #tpu.memory_space<vmem>>, vector<1x1x4x32xf32>,
    %c8_308 = arith.constant 8 : index
    %c0_309 = arith.constant 0 : index
    %414 = vector.load %arg8[%c8_308, %c0_309] : memref<16x32xf32, #tpu.memory_space<vmem>>, vector<4x32xf32>
    %c0_310 = arith.constant 0 : index
    %c2_311 = arith.constant 2 : index
    %c4_312 = arith.constant 4 : index
    %c0_313 = arith.constant 0 : index
    %415 = vector.load %arg4[%c0_310, %c2_311, %c4_312, %c0_313] : memref<1x4x16x32xf32, #tpu.memory_space<vmem>>, vector<1x1x4x32xf32>
    %416 = vector.shape_cast %415 : vector<1x1x4x32xf32> to vector<4x32xf32>
    %417 = vector.shape_cast %414 : vector<4x32xf32> to vector<1x1x4x32xf32>
    tpu.vector_store %arg4[%c0_310, %c2_311, %c4_312, %c0_313], %417 {strides = array<i32>} : memref<1x4x16x32xf32, #tpu.memory_space<vmem>>, vector<1x1x4x32xf32>,
    %c12_314 = arith.constant 12 : index
    %c0_315 = arith.constant 0 : index
    %418 = vector.load %arg8[%c12_314, %c0_315] : memref<16x32xf32, #tpu.memory_space<vmem>>, vector<4x32xf32>
    %c0_316 = arith.constant 0 : index
    %c3_317 = arith.constant 3 : index
    %c4_318 = arith.constant 4 : index
    %c0_319 = arith.constant 0 : index
    %419 = vector.load %arg4[%c0_316, %c3_317, %c4_318, %c0_319] : memref<1x4x16x32xf32, #tpu.memory_space<vmem>>, vector<1x1x4x32xf32>
    %420 = vector.shape_cast %419 : vector<1x1x4x32xf32> to vector<4x32xf32>
    %421 = vector.shape_cast %418 : vector<4x32xf32> to vector<1x1x4x32xf32>
    tpu.vector_store %arg4[%c0_316, %c3_317, %c4_318, %c0_319], %421 {strides = array<i32>} : memref<1x4x16x32xf32, #tpu.memory_space<vmem>>, vector<1x1x4x32xf32>,
    %c0_320 = arith.constant 0 : index
    %c0_321 = arith.constant 0 : index
    %c0_322 = arith.constant 0 : index
    %c8_323 = arith.constant 8 : index
    %c0_324 = arith.constant 0 : index
    %422 = vector.load %arg3[%c0_320, %c0_321, %c0_322, %c8_323, %c0_324] : memref<3x1x4x16x32xf32, #tpu.memory_space<vmem>>, vector<1x1x1x4x32xf32>
    %423 = vector.shape_cast %422 : vector<1x1x1x4x32xf32> to vector<4x32xf32>
    %cst_325 = arith.constant 5.000000e-01 : f32
    %424 = vector.broadcast %cst_325 : f32 to vector<4x32xf32>
    %425 = arith.mulf %423, %424 : vector<4x32xf32>
    %426 = arith.truncf %425 : vector<4x32xf32> to vector<4x32xbf16>
    %c0_326 = arith.constant 0 : index
    %c0_327 = arith.constant 0 : index
    %427 = vector.load %arg5[%c0_326, %c0_327] : memref<16x32xbf16, #tpu.memory_space<vmem>>, vector<4x32xbf16>
    tpu.vector_store %arg5[%c0_326, %c0_327], %426 {strides = array<i32>} : memref<16x32xbf16, #tpu.memory_space<vmem>>, vector<4x32xbf16>,
    %c1_328 = arith.constant 1 : index
    %c0_329 = arith.constant 0 : index
    %c0_330 = arith.constant 0 : index
    %c8_331 = arith.constant 8 : index
    %c0_332 = arith.constant 0 : index
    %428 = vector.load %arg3[%c1_328, %c0_329, %c0_330, %c8_331, %c0_332] : memref<3x1x4x16x32xf32, #tpu.memory_space<vmem>>, vector<1x1x1x4x32xf32>
    %429 = vector.shape_cast %428 : vector<1x1x1x4x32xf32> to vector<4x32xf32>
    %430 = arith.truncf %429 : vector<4x32xf32> to vector<4x32xbf16>
    %c0_333 = arith.constant 0 : index
    %c0_334 = arith.constant 0 : index
    %431 = vector.load %arg6[%c0_333, %c0_334] : memref<16x32xbf16, #tpu.memory_space<vmem>>, vector<4x32xbf16>
    tpu.vector_store %arg6[%c0_333, %c0_334], %430 {strides = array<i32>} : memref<16x32xbf16, #tpu.memory_space<vmem>>, vector<4x32xbf16>,
    %c2_335 = arith.constant 2 : index
    %c0_336 = arith.constant 0 : index
    %c0_337 = arith.constant 0 : index
    %c8_338 = arith.constant 8 : index
    %c0_339 = arith.constant 0 : index
    %432 = vector.load %arg3[%c2_335, %c0_336, %c0_337, %c8_338, %c0_339] : memref<3x1x4x16x32xf32, #tpu.memory_space<vmem>>, vector<1x1x1x4x32xf32>
    %433 = vector.shape_cast %432 : vector<1x1x1x4x32xf32> to vector<4x32xf32>
    %434 = arith.truncf %433 : vector<4x32xf32> to vector<4x32xbf16>
    %c0_340 = arith.constant 0 : index
    %c0_341 = arith.constant 0 : index
    %435 = vector.load %arg7[%c0_340, %c0_341] : memref<16x32xbf16, #tpu.memory_space<vmem>>, vector<4x32xbf16>
    tpu.vector_store %arg7[%c0_340, %c0_341], %434 {strides = array<i32>} : memref<16x32xbf16, #tpu.memory_space<vmem>>, vector<4x32xbf16>,
    %c0_342 = arith.constant 0 : index
    %c0_343 = arith.constant 0 : index
    %c1_344 = arith.constant 1 : index
    %c8_345 = arith.constant 8 : index
    %c0_346 = arith.constant 0 : index
    %436 = vector.load %arg3[%c0_342, %c0_343, %c1_344, %c8_345, %c0_346] : memref<3x1x4x16x32xf32, #tpu.memory_space<vmem>>, vector<1x1x1x4x32xf32>
    %437 = vector.shape_cast %436 : vector<1x1x1x4x32xf32> to vector<4x32xf32>
    %cst_347 = arith.constant 5.000000e-01 : f32
    %438 = vector.broadcast %cst_347 : f32 to vector<4x32xf32>
    %439 = arith.mulf %437, %438 : vector<4x32xf32>
    %440 = arith.truncf %439 : vector<4x32xf32> to vector<4x32xbf16>
    %c4_348 = arith.constant 4 : index
    %c0_349 = arith.constant 0 : index
    %441 = vector.load %arg5[%c4_348, %c0_349] : memref<16x32xbf16, #tpu.memory_space<vmem>>, vector<4x32xbf16>
    tpu.vector_store %arg5[%c4_348, %c0_349], %440 {strides = array<i32>} : memref<16x32xbf16, #tpu.memory_space<vmem>>, vector<4x32xbf16>,
    %c1_350 = arith.constant 1 : index
    %c0_351 = arith.constant 0 : index
    %c1_352 = arith.constant 1 : index
    %c8_353 = arith.constant 8 : index
    %c0_354 = arith.constant 0 : index
    %442 = vector.load %arg3[%c1_350, %c0_351, %c1_352, %c8_353, %c0_354] : memref<3x1x4x16x32xf32, #tpu.memory_space<vmem>>, vector<1x1x1x4x32xf32>
    %443 = vector.shape_cast %442 : vector<1x1x1x4x32xf32> to vector<4x32xf32>
    %444 = arith.truncf %443 : vector<4x32xf32> to vector<4x32xbf16>
    %c4_355 = arith.constant 4 : index
    %c0_356 = arith.constant 0 : index
    %445 = vector.load %arg6[%c4_355, %c0_356] : memref<16x32xbf16, #tpu.memory_space<vmem>>, vector<4x32xbf16>
    tpu.vector_store %arg6[%c4_355, %c0_356], %444 {strides = array<i32>} : memref<16x32xbf16, #tpu.memory_space<vmem>>, vector<4x32xbf16>,
    %c2_357 = arith.constant 2 : index
    %c0_358 = arith.constant 0 : index
    %c1_359 = arith.constant 1 : index
    %c8_360 = arith.constant 8 : index
    %c0_361 = arith.constant 0 : index
    %446 = vector.load %arg3[%c2_357, %c0_358, %c1_359, %c8_360, %c0_361] : memref<3x1x4x16x32xf32, #tpu.memory_space<vmem>>, vector<1x1x1x4x32xf32>
    %447 = vector.shape_cast %446 : vector<1x1x1x4x32xf32> to vector<4x32xf32>
    %448 = arith.truncf %447 : vector<4x32xf32> to vector<4x32xbf16>
    %c4_362 = arith.constant 4 : index
    %c0_363 = arith.constant 0 : index
    %449 = vector.load %arg7[%c4_362, %c0_363] : memref<16x32xbf16, #tpu.memory_space<vmem>>, vector<4x32xbf16>
    tpu.vector_store %arg7[%c4_362, %c0_363], %448 {strides = array<i32>} : memref<16x32xbf16, #tpu.memory_space<vmem>>, vector<4x32xbf16>,
    %c0_364 = arith.constant 0 : index
    %c0_365 = arith.constant 0 : index
    %c2_366 = arith.constant 2 : index
    %c8_367 = arith.constant 8 : index
    %c0_368 = arith.constant 0 : index
    %450 = vector.load %arg3[%c0_364, %c0_365, %c2_366, %c8_367, %c0_368] : memref<3x1x4x16x32xf32, #tpu.memory_space<vmem>>, vector<1x1x1x4x32xf32>
    %451 = vector.shape_cast %450 : vector<1x1x1x4x32xf32> to vector<4x32xf32>
    %cst_369 = arith.constant 5.000000e-01 : f32
    %452 = vector.broadcast %cst_369 : f32 to vector<4x32xf32>
    %453 = arith.mulf %451, %452 : vector<4x32xf32>
    %454 = arith.truncf %453 : vector<4x32xf32> to vector<4x32xbf16>
    %c8_370 = arith.constant 8 : index
    %c0_371 = arith.constant 0 : index
    %455 = vector.load %arg5[%c8_370, %c0_371] : memref<16x32xbf16, #tpu.memory_space<vmem>>, vector<4x32xbf16>
    tpu.vector_store %arg5[%c8_370, %c0_371], %454 {strides = array<i32>} : memref<16x32xbf16, #tpu.memory_space<vmem>>, vector<4x32xbf16>,
    %c1_372 = arith.constant 1 : index
    %c0_373 = arith.constant 0 : index
    %c2_374 = arith.constant 2 : index
    %c8_375 = arith.constant 8 : index
    %c0_376 = arith.constant 0 : index
    %456 = vector.load %arg3[%c1_372, %c0_373, %c2_374, %c8_375, %c0_376] : memref<3x1x4x16x32xf32, #tpu.memory_space<vmem>>, vector<1x1x1x4x32xf32>
    %457 = vector.shape_cast %456 : vector<1x1x1x4x32xf32> to vector<4x32xf32>
    %458 = arith.truncf %457 : vector<4x32xf32> to vector<4x32xbf16>
    %c8_377 = arith.constant 8 : index
    %c0_378 = arith.constant 0 : index
    %459 = vector.load %arg6[%c8_377, %c0_378] : memref<16x32xbf16, #tpu.memory_space<vmem>>, vector<4x32xbf16>
    tpu.vector_store %arg6[%c8_377, %c0_378], %458 {strides = array<i32>} : memref<16x32xbf16, #tpu.memory_space<vmem>>, vector<4x32xbf16>,
    %c2_379 = arith.constant 2 : index
    %c0_380 = arith.constant 0 : index
    %c2_381 = arith.constant 2 : index
    %c8_382 = arith.constant 8 : index
    %c0_383 = arith.constant 0 : index
    %460 = vector.load %arg3[%c2_379, %c0_380, %c2_381, %c8_382, %c0_383] : memref<3x1x4x16x32xf32, #tpu.memory_space<vmem>>, vector<1x1x1x4x32xf32>
    %461 = vector.shape_cast %460 : vector<1x1x1x4x32xf32> to vector<4x32xf32>
    %462 = arith.truncf %461 : vector<4x32xf32> to vector<4x32xbf16>
    %c8_384 = arith.constant 8 : index
    %c0_385 = arith.constant 0 : index
    %463 = vector.load %arg7[%c8_384, %c0_385] : memref<16x32xbf16, #tpu.memory_space<vmem>>, vector<4x32xbf16>
    tpu.vector_store %arg7[%c8_384, %c0_385], %462 {strides = array<i32>} : memref<16x32xbf16, #tpu.memory_space<vmem>>, vector<4x32xbf16>,
    %c0_386 = arith.constant 0 : index
    %c0_387 = arith.constant 0 : index
    %c3_388 = arith.constant 3 : index
    %c8_389 = arith.constant 8 : index
    %c0_390 = arith.constant 0 : index
    %464 = vector.load %arg3[%c0_386, %c0_387, %c3_388, %c8_389, %c0_390] : memref<3x1x4x16x32xf32, #tpu.memory_space<vmem>>, vector<1x1x1x4x32xf32>
    %465 = vector.shape_cast %464 : vector<1x1x1x4x32xf32> to vector<4x32xf32>
    %cst_391 = arith.constant 5.000000e-01 : f32
    %466 = vector.broadcast %cst_391 : f32 to vector<4x32xf32>
    %467 = arith.mulf %465, %466 : vector<4x32xf32>
    %468 = arith.truncf %467 : vector<4x32xf32> to vector<4x32xbf16>
    %c12_392 = arith.constant 12 : index
    %c0_393 = arith.constant 0 : index
    %469 = vector.load %arg5[%c12_392, %c0_393] : memref<16x32xbf16, #tpu.memory_space<vmem>>, vector<4x32xbf16>
    tpu.vector_store %arg5[%c12_392, %c0_393], %468 {strides = array<i32>} : memref<16x32xbf16, #tpu.memory_space<vmem>>, vector<4x32xbf16>,
    %c1_394 = arith.constant 1 : index
    %c0_395 = arith.constant 0 : index
    %c3_396 = arith.constant 3 : index
    %c8_397 = arith.constant 8 : index
    %c0_398 = arith.constant 0 : index
    %470 = vector.load %arg3[%c1_394, %c0_395, %c3_396, %c8_397, %c0_398] : memref<3x1x4x16x32xf32, #tpu.memory_space<vmem>>, vector<1x1x1x4x32xf32>
    %471 = vector.shape_cast %470 : vector<1x1x1x4x32xf32> to vector<4x32xf32>
    %472 = arith.truncf %471 : vector<4x32xf32> to vector<4x32xbf16>
    %c12_399 = arith.constant 12 : index
    %c0_400 = arith.constant 0 : index
    %473 = vector.load %arg6[%c12_399, %c0_400] : memref<16x32xbf16, #tpu.memory_space<vmem>>, vector<4x32xbf16>
    tpu.vector_store %arg6[%c12_399, %c0_400], %472 {strides = array<i32>} : memref<16x32xbf16, #tpu.memory_space<vmem>>, vector<4x32xbf16>,
    %c2_401 = arith.constant 2 : index
    %c0_402 = arith.constant 0 : index
    %c3_403 = arith.constant 3 : index
    %c8_404 = arith.constant 8 : index
    %c0_405 = arith.constant 0 : index
    %474 = vector.load %arg3[%c2_401, %c0_402, %c3_403, %c8_404, %c0_405] : memref<3x1x4x16x32xf32, #tpu.memory_space<vmem>>, vector<1x1x1x4x32xf32>
    %475 = vector.shape_cast %474 : vector<1x1x1x4x32xf32> to vector<4x32xf32>
    %476 = arith.truncf %475 : vector<4x32xf32> to vector<4x32xbf16>
    %c12_406 = arith.constant 12 : index
    %c0_407 = arith.constant 0 : index
    %477 = vector.load %arg7[%c12_406, %c0_407] : memref<16x32xbf16, #tpu.memory_space<vmem>>, vector<4x32xbf16>
    tpu.vector_store %arg7[%c12_406, %c0_407], %476 {strides = array<i32>} : memref<16x32xbf16, #tpu.memory_space<vmem>>, vector<4x32xbf16>,
    %c0_408 = arith.constant 0 : index
    %c0_409 = arith.constant 0 : index
    %478 = vector.load %arg5[%c0_408, %c0_409] : memref<16x32xbf16, #tpu.memory_space<vmem>>, vector<16x32xbf16>
    %c0_410 = arith.constant 0 : index
    %c0_411 = arith.constant 0 : index
    %479 = vector.load %arg6[%c0_410, %c0_411] : memref<16x32xbf16, #tpu.memory_space<vmem>>, vector<16x32xbf16>
    %c0_412 = arith.constant 0 : index
    %c0_413 = arith.constant 0 : index
    %480 = vector.load %arg7[%c0_412, %c0_413] : memref<16x32xbf16, #tpu.memory_space<vmem>>, vector<16x32xbf16>
    %481 = vector.extract_strided_slice %478 {offsets = [0, 0], sizes = [16, 4], strides = [1, 1]} : vector<16x32xbf16> to vector<16x4xbf16>
    %482 = vector.extract_strided_slice %479 {offsets = [0, 0], sizes = [16, 4], strides = [1, 1]} : vector<16x32xbf16> to vector<16x4xbf16>
    %483 = vector.extract_strided_slice %480 {offsets = [0, 0], sizes = [16, 4], strides = [1, 1]} : vector<16x32xbf16> to vector<16x4xbf16>
    "tpu.trace_start"() <{level = 10 : i32, message = "sd,td->st"}> : () -> ()
    %cst_414 = arith.constant dense<0.000000e+00> : vector<16x16xf32>
    %484 = tpu.matmul %481, %482, %cst_414 {dimension_numbers = #tpu.dot_dimension_numbers<[1], [1], [0], [0], [0, 0, 1, 0], [], []>} : vector<16x4xbf16>, vector<16x4xbf16>, vector<16x16xf32> -> vector<16x16xf32>
    "tpu.trace_stop"() : () -> ()
    %cst_415 = arith.constant dense<0xFF800000> : vector<16xf32>
    %485 = vector.multi_reduction <maximumf>, %484, %cst_415 [1] : vector<16x16xf32> to vector<16xf32>
    %486 = vector.shape_cast %485 : vector<16xf32> to vector<16x1xf32>
    %487 = vector.broadcast %486 : vector<16x1xf32> to vector<16x16xf32>
    %488 = arith.subf %484, %487 : vector<16x16xf32>
    %489 = math.exp %488 : vector<16x16xf32>
    %cst_416 = arith.constant dense<0.000000e+00> : vector<16xf32>
    %490 = vector.multi_reduction <add>, %489, %cst_416 [1] : vector<16x16xf32> to vector<16xf32>
    %491 = vector.shape_cast %490 : vector<16xf32> to vector<16x1xf32>
    %492 = tpu.reciprocal %491 {approx = true} : vector<16x1xf32> -> vector<16x1xf32>
    %493 = vector.broadcast %492 : vector<16x1xf32> to vector<16x16xf32>
    %494 = arith.mulf %489, %493 : vector<16x16xf32>
    %495 = arith.truncf %494 : vector<16x16xf32> to vector<16x16xbf16>
    "tpu.trace_start"() <{level = 10 : i32, message = "st,td->sd"}> : () -> ()
    %cst_417 = arith.constant dense<0.000000e+00> : vector<16x4xf32>
    %496 = tpu.matmul %495, %483, %cst_417 {dimension_numbers = #tpu.dot_dimension_numbers<[1], [0], [0], [1], [0, 0, 1, 1], [], []>} : vector<16x16xbf16>, vector<16x4xbf16>, vector<16x4xf32> -> vector<16x4xf32>
    "tpu.trace_stop"() : () -> ()
    %c0_418 = arith.constant 0 : index
    %c0_419 = arith.constant 0 : index
    %497 = vector.load %arg8[%c0_418, %c0_419] : memref<16x32xf32, #tpu.memory_space<vmem>>, vector<16x4xf32>
    tpu.vector_store %arg8[%c0_418, %c0_419], %496 {strides = array<i32>} : memref<16x32xf32, #tpu.memory_space<vmem>>, vector<16x4xf32>,
    %498 = vector.extract_strided_slice %478 {offsets = [0, 4], sizes = [16, 4], strides = [1, 1]} : vector<16x32xbf16> to vector<16x4xbf16>
    %499 = vector.extract_strided_slice %479 {offsets = [0, 4], sizes = [16, 4], strides = [1, 1]} : vector<16x32xbf16> to vector<16x4xbf16>
    %500 = vector.extract_strided_slice %480 {offsets = [0, 4], sizes = [16, 4], strides = [1, 1]} : vector<16x32xbf16> to vector<16x4xbf16>
    "tpu.trace_start"() <{level = 10 : i32, message = "sd,td->st"}> : () -> ()
    %cst_420 = arith.constant dense<0.000000e+00> : vector<16x16xf32>
    %501 = tpu.matmul %498, %499, %cst_420 {dimension_numbers = #tpu.dot_dimension_numbers<[1], [1], [0], [0], [0, 0, 1, 0], [], []>} : vector<16x4xbf16>, vector<16x4xbf16>, vector<16x16xf32> -> vector<16x16xf32>
    "tpu.trace_stop"() : () -> ()
    %cst_421 = arith.constant dense<0xFF800000> : vector<16xf32>
    %502 = vector.multi_reduction <maximumf>, %501, %cst_421 [1] : vector<16x16xf32> to vector<16xf32>
    %503 = vector.shape_cast %502 : vector<16xf32> to vector<16x1xf32>
    %504 = vector.broadcast %503 : vector<16x1xf32> to vector<16x16xf32>
    %505 = arith.subf %501, %504 : vector<16x16xf32>
    %506 = math.exp %505 : vector<16x16xf32>
    %cst_422 = arith.constant dense<0.000000e+00> : vector<16xf32>
    %507 = vector.multi_reduction <add>, %506, %cst_422 [1] : vector<16x16xf32> to vector<16xf32>
    %508 = vector.shape_cast %507 : vector<16xf32> to vector<16x1xf32>
    %509 = tpu.reciprocal %508 {approx = true} : vector<16x1xf32> -> vector<16x1xf32>
    %510 = vector.broadcast %509 : vector<16x1xf32> to vector<16x16xf32>
    %511 = arith.mulf %506, %510 : vector<16x16xf32>
    %512 = arith.truncf %511 : vector<16x16xf32> to vector<16x16xbf16>
    "tpu.trace_start"() <{level = 10 : i32, message = "st,td->sd"}> : () -> ()
    %cst_423 = arith.constant dense<0.000000e+00> : vector<16x4xf32>
    %513 = tpu.matmul %512, %500, %cst_423 {dimension_numbers = #tpu.dot_dimension_numbers<[1], [0], [0], [1], [0, 0, 1, 1], [], []>} : vector<16x16xbf16>, vector<16x4xbf16>, vector<16x4xf32> -> vector<16x4xf32>
    "tpu.trace_stop"() : () -> ()
    %c0_424 = arith.constant 0 : index
    %c4_425 = arith.constant 4 : index
    %514 = vector.load %arg8[%c0_424, %c4_425] : memref<16x32xf32, #tpu.memory_space<vmem>>, vector<16x4xf32>
    tpu.vector_store %arg8[%c0_424, %c4_425], %513 {strides = array<i32>} : memref<16x32xf32, #tpu.memory_space<vmem>>, vector<16x4xf32>,
    %515 = vector.extract_strided_slice %478 {offsets = [0, 8], sizes = [16, 4], strides = [1, 1]} : vector<16x32xbf16> to vector<16x4xbf16>
    %516 = vector.extract_strided_slice %479 {offsets = [0, 8], sizes = [16, 4], strides = [1, 1]} : vector<16x32xbf16> to vector<16x4xbf16>
    %517 = vector.extract_strided_slice %480 {offsets = [0, 8], sizes = [16, 4], strides = [1, 1]} : vector<16x32xbf16> to vector<16x4xbf16>
    "tpu.trace_start"() <{level = 10 : i32, message = "sd,td->st"}> : () -> ()
    %cst_426 = arith.constant dense<0.000000e+00> : vector<16x16xf32>
    %518 = tpu.matmul %515, %516, %cst_426 {dimension_numbers = #tpu.dot_dimension_numbers<[1], [1], [0], [0], [0, 0, 1, 0], [], []>} : vector<16x4xbf16>, vector<16x4xbf16>, vector<16x16xf32> -> vector<16x16xf32>
    "tpu.trace_stop"() : () -> ()
    %cst_427 = arith.constant dense<0xFF800000> : vector<16xf32>
    %519 = vector.multi_reduction <maximumf>, %518, %cst_427 [1] : vector<16x16xf32> to vector<16xf32>
    %520 = vector.shape_cast %519 : vector<16xf32> to vector<16x1xf32>
    %521 = vector.broadcast %520 : vector<16x1xf32> to vector<16x16xf32>
    %522 = arith.subf %518, %521 : vector<16x16xf32>
    %523 = math.exp %522 : vector<16x16xf32>
    %cst_428 = arith.constant dense<0.000000e+00> : vector<16xf32>
    %524 = vector.multi_reduction <add>, %523, %cst_428 [1] : vector<16x16xf32> to vector<16xf32>
    %525 = vector.shape_cast %524 : vector<16xf32> to vector<16x1xf32>
    %526 = tpu.reciprocal %525 {approx = true} : vector<16x1xf32> -> vector<16x1xf32>
    %527 = vector.broadcast %526 : vector<16x1xf32> to vector<16x16xf32>
    %528 = arith.mulf %523, %527 : vector<16x16xf32>
    %529 = arith.truncf %528 : vector<16x16xf32> to vector<16x16xbf16>
    "tpu.trace_start"() <{level = 10 : i32, message = "st,td->sd"}> : () -> ()
    %cst_429 = arith.constant dense<0.000000e+00> : vector<16x4xf32>
    %530 = tpu.matmul %529, %517, %cst_429 {dimension_numbers = #tpu.dot_dimension_numbers<[1], [0], [0], [1], [0, 0, 1, 1], [], []>} : vector<16x16xbf16>, vector<16x4xbf16>, vector<16x4xf32> -> vector<16x4xf32>
    "tpu.trace_stop"() : () -> ()
    %c0_430 = arith.constant 0 : index
    %c8_431 = arith.constant 8 : index
    %531 = vector.load %arg8[%c0_430, %c8_431] : memref<16x32xf32, #tpu.memory_space<vmem>>, vector<16x4xf32>
    tpu.vector_store %arg8[%c0_430, %c8_431], %530 {strides = array<i32>} : memref<16x32xf32, #tpu.memory_space<vmem>>, vector<16x4xf32>,
    %532 = vector.extract_strided_slice %478 {offsets = [0, 12], sizes = [16, 4], strides = [1, 1]} : vector<16x32xbf16> to vector<16x4xbf16>
    %533 = vector.extract_strided_slice %479 {offsets = [0, 12], sizes = [16, 4], strides = [1, 1]} : vector<16x32xbf16> to vector<16x4xbf16>
    %534 = vector.extract_strided_slice %480 {offsets = [0, 12], sizes = [16, 4], strides = [1, 1]} : vector<16x32xbf16> to vector<16x4xbf16>
    "tpu.trace_start"() <{level = 10 : i32, message = "sd,td->st"}> : () -> ()
    %cst_432 = arith.constant dense<0.000000e+00> : vector<16x16xf32>
    %535 = tpu.matmul %532, %533, %cst_432 {dimension_numbers = #tpu.dot_dimension_numbers<[1], [1], [0], [0], [0, 0, 1, 0], [], []>} : vector<16x4xbf16>, vector<16x4xbf16>, vector<16x16xf32> -> vector<16x16xf32>
    "tpu.trace_stop"() : () -> ()
    %cst_433 = arith.constant dense<0xFF800000> : vector<16xf32>
    %536 = vector.multi_reduction <maximumf>, %535, %cst_433 [1] : vector<16x16xf32> to vector<16xf32>
    %537 = vector.shape_cast %536 : vector<16xf32> to vector<16x1xf32>
    %538 = vector.broadcast %537 : vector<16x1xf32> to vector<16x16xf32>
    %539 = arith.subf %535, %538 : vector<16x16xf32>
    %540 = math.exp %539 : vector<16x16xf32>
    %cst_434 = arith.constant dense<0.000000e+00> : vector<16xf32>
    %541 = vector.multi_reduction <add>, %540, %cst_434 [1] : vector<16x16xf32> to vector<16xf32>
    %542 = vector.shape_cast %541 : vector<16xf32> to vector<16x1xf32>
    %543 = tpu.reciprocal %542 {approx = true} : vector<16x1xf32> -> vector<16x1xf32>
    %544 = vector.broadcast %543 : vector<16x1xf32> to vector<16x16xf32>
    %545 = arith.mulf %540, %544 : vector<16x16xf32>
    %546 = arith.truncf %545 : vector<16x16xf32> to vector<16x16xbf16>
    "tpu.trace_start"() <{level = 10 : i32, message = "st,td->sd"}> : () -> ()
    %cst_435 = arith.constant dense<0.000000e+00> : vector<16x4xf32>
    %547 = tpu.matmul %546, %534, %cst_435 {dimension_numbers = #tpu.dot_dimension_numbers<[1], [0], [0], [1], [0, 0, 1, 1], [], []>} : vector<16x16xbf16>, vector<16x4xbf16>, vector<16x4xf32> -> vector<16x4xf32>
    "tpu.trace_stop"() : () -> ()
    %c0_436 = arith.constant 0 : index
    %c12_437 = arith.constant 12 : index
    %548 = vector.load %arg8[%c0_436, %c12_437] : memref<16x32xf32, #tpu.memory_space<vmem>>, vector<16x4xf32>
    tpu.vector_store %arg8[%c0_436, %c12_437], %547 {strides = array<i32>} : memref<16x32xf32, #tpu.memory_space<vmem>>, vector<16x4xf32>,
    %549 = vector.extract_strided_slice %478 {offsets = [0, 16], sizes = [16, 4], strides = [1, 1]} : vector<16x32xbf16> to vector<16x4xbf16>
    %550 = vector.extract_strided_slice %479 {offsets = [0, 16], sizes = [16, 4], strides = [1, 1]} : vector<16x32xbf16> to vector<16x4xbf16>
    %551 = vector.extract_strided_slice %480 {offsets = [0, 16], sizes = [16, 4], strides = [1, 1]} : vector<16x32xbf16> to vector<16x4xbf16>
    "tpu.trace_start"() <{level = 10 : i32, message = "sd,td->st"}> : () -> ()
    %cst_438 = arith.constant dense<0.000000e+00> : vector<16x16xf32>
    %552 = tpu.matmul %549, %550, %cst_438 {dimension_numbers = #tpu.dot_dimension_numbers<[1], [1], [0], [0], [0, 0, 1, 0], [], []>} : vector<16x4xbf16>, vector<16x4xbf16>, vector<16x16xf32> -> vector<16x16xf32>
    "tpu.trace_stop"() : () -> ()
    %cst_439 = arith.constant dense<0xFF800000> : vector<16xf32>
    %553 = vector.multi_reduction <maximumf>, %552, %cst_439 [1] : vector<16x16xf32> to vector<16xf32>
    %554 = vector.shape_cast %553 : vector<16xf32> to vector<16x1xf32>
    %555 = vector.broadcast %554 : vector<16x1xf32> to vector<16x16xf32>
    %556 = arith.subf %552, %555 : vector<16x16xf32>
    %557 = math.exp %556 : vector<16x16xf32>
    %cst_440 = arith.constant dense<0.000000e+00> : vector<16xf32>
    %558 = vector.multi_reduction <add>, %557, %cst_440 [1] : vector<16x16xf32> to vector<16xf32>
    %559 = vector.shape_cast %558 : vector<16xf32> to vector<16x1xf32>
    %560 = tpu.reciprocal %559 {approx = true} : vector<16x1xf32> -> vector<16x1xf32>
    %561 = vector.broadcast %560 : vector<16x1xf32> to vector<16x16xf32>
    %562 = arith.mulf %557, %561 : vector<16x16xf32>
    %563 = arith.truncf %562 : vector<16x16xf32> to vector<16x16xbf16>
    "tpu.trace_start"() <{level = 10 : i32, message = "st,td->sd"}> : () -> ()
    %cst_441 = arith.constant dense<0.000000e+00> : vector<16x4xf32>
    %564 = tpu.matmul %563, %551, %cst_441 {dimension_numbers = #tpu.dot_dimension_numbers<[1], [0], [0], [1], [0, 0, 1, 1], [], []>} : vector<16x16xbf16>, vector<16x4xbf16>, vector<16x4xf32> -> vector<16x4xf32>
    "tpu.trace_stop"() : () -> ()
    %c0_442 = arith.constant 0 : index
    %c16_443 = arith.constant 16 : index
    %565 = vector.load %arg8[%c0_442, %c16_443] : memref<16x32xf32, #tpu.memory_space<vmem>>, vector<16x4xf32>
    tpu.vector_store %arg8[%c0_442, %c16_443], %564 {strides = array<i32>} : memref<16x32xf32, #tpu.memory_space<vmem>>, vector<16x4xf32>,
    %566 = vector.extract_strided_slice %478 {offsets = [0, 20], sizes = [16, 4], strides = [1, 1]} : vector<16x32xbf16> to vector<16x4xbf16>
    %567 = vector.extract_strided_slice %479 {offsets = [0, 20], sizes = [16, 4], strides = [1, 1]} : vector<16x32xbf16> to vector<16x4xbf16>
    %568 = vector.extract_strided_slice %480 {offsets = [0, 20], sizes = [16, 4], strides = [1, 1]} : vector<16x32xbf16> to vector<16x4xbf16>
    "tpu.trace_start"() <{level = 10 : i32, message = "sd,td->st"}> : () -> ()
    %cst_444 = arith.constant dense<0.000000e+00> : vector<16x16xf32>
    %569 = tpu.matmul %566, %567, %cst_444 {dimension_numbers = #tpu.dot_dimension_numbers<[1], [1], [0], [0], [0, 0, 1, 0], [], []>} : vector<16x4xbf16>, vector<16x4xbf16>, vector<16x16xf32> -> vector<16x16xf32>
    "tpu.trace_stop"() : () -> ()
    %cst_445 = arith.constant dense<0xFF800000> : vector<16xf32>
    %570 = vector.multi_reduction <maximumf>, %569, %cst_445 [1] : vector<16x16xf32> to vector<16xf32>
    %571 = vector.shape_cast %570 : vector<16xf32> to vector<16x1xf32>
    %572 = vector.broadcast %571 : vector<16x1xf32> to vector<16x16xf32>
    %573 = arith.subf %569, %572 : vector<16x16xf32>
    %574 = math.exp %573 : vector<16x16xf32>
    %cst_446 = arith.constant dense<0.000000e+00> : vector<16xf32>
    %575 = vector.multi_reduction <add>, %574, %cst_446 [1] : vector<16x16xf32> to vector<16xf32>
    %576 = vector.shape_cast %575 : vector<16xf32> to vector<16x1xf32>
    %577 = tpu.reciprocal %576 {approx = true} : vector<16x1xf32> -> vector<16x1xf32>
    %578 = vector.broadcast %577 : vector<16x1xf32> to vector<16x16xf32>
    %579 = arith.mulf %574, %578 : vector<16x16xf32>
    %580 = arith.truncf %579 : vector<16x16xf32> to vector<16x16xbf16>
    "tpu.trace_start"() <{level = 10 : i32, message = "st,td->sd"}> : () -> ()
    %cst_447 = arith.constant dense<0.000000e+00> : vector<16x4xf32>
    %581 = tpu.matmul %580, %568, %cst_447 {dimension_numbers = #tpu.dot_dimension_numbers<[1], [0], [0], [1], [0, 0, 1, 1], [], []>} : vector<16x16xbf16>, vector<16x4xbf16>, vector<16x4xf32> -> vector<16x4xf32>
    "tpu.trace_stop"() : () -> ()
    %c0_448 = arith.constant 0 : index
    %c20_449 = arith.constant 20 : index
    %582 = vector.load %arg8[%c0_448, %c20_449] : memref<16x32xf32, #tpu.memory_space<vmem>>, vector<16x4xf32>
    tpu.vector_store %arg8[%c0_448, %c20_449], %581 {strides = array<i32>} : memref<16x32xf32, #tpu.memory_space<vmem>>, vector<16x4xf32>,
    %583 = vector.extract_strided_slice %478 {offsets = [0, 24], sizes = [16, 4], strides = [1, 1]} : vector<16x32xbf16> to vector<16x4xbf16>
    %584 = vector.extract_strided_slice %479 {offsets = [0, 24], sizes = [16, 4], strides = [1, 1]} : vector<16x32xbf16> to vector<16x4xbf16>
    %585 = vector.extract_strided_slice %480 {offsets = [0, 24], sizes = [16, 4], strides = [1, 1]} : vector<16x32xbf16> to vector<16x4xbf16>
    "tpu.trace_start"() <{level = 10 : i32, message = "sd,td->st"}> : () -> ()
    %cst_450 = arith.constant dense<0.000000e+00> : vector<16x16xf32>
    %586 = tpu.matmul %583, %584, %cst_450 {dimension_numbers = #tpu.dot_dimension_numbers<[1], [1], [0], [0], [0, 0, 1, 0], [], []>} : vector<16x4xbf16>, vector<16x4xbf16>, vector<16x16xf32> -> vector<16x16xf32>
    "tpu.trace_stop"() : () -> ()
    %cst_451 = arith.constant dense<0xFF800000> : vector<16xf32>
    %587 = vector.multi_reduction <maximumf>, %586, %cst_451 [1] : vector<16x16xf32> to vector<16xf32>
    %588 = vector.shape_cast %587 : vector<16xf32> to vector<16x1xf32>
    %589 = vector.broadcast %588 : vector<16x1xf32> to vector<16x16xf32>
    %590 = arith.subf %586, %589 : vector<16x16xf32>
    %591 = math.exp %590 : vector<16x16xf32>
    %cst_452 = arith.constant dense<0.000000e+00> : vector<16xf32>
    %592 = vector.multi_reduction <add>, %591, %cst_452 [1] : vector<16x16xf32> to vector<16xf32>
    %593 = vector.shape_cast %592 : vector<16xf32> to vector<16x1xf32>
    %594 = tpu.reciprocal %593 {approx = true} : vector<16x1xf32> -> vector<16x1xf32>
    %595 = vector.broadcast %594 : vector<16x1xf32> to vector<16x16xf32>
    %596 = arith.mulf %591, %595 : vector<16x16xf32>
    %597 = arith.truncf %596 : vector<16x16xf32> to vector<16x16xbf16>
    "tpu.trace_start"() <{level = 10 : i32, message = "st,td->sd"}> : () -> ()
    %cst_453 = arith.constant dense<0.000000e+00> : vector<16x4xf32>
    %598 = tpu.matmul %597, %585, %cst_453 {dimension_numbers = #tpu.dot_dimension_numbers<[1], [0], [0], [1], [0, 0, 1, 1], [], []>} : vector<16x16xbf16>, vector<16x4xbf16>, vector<16x4xf32> -> vector<16x4xf32>
    "tpu.trace_stop"() : () -> ()
    %c0_454 = arith.constant 0 : index
    %c24_455 = arith.constant 24 : index
    %599 = vector.load %arg8[%c0_454, %c24_455] : memref<16x32xf32, #tpu.memory_space<vmem>>, vector<16x4xf32>
    tpu.vector_store %arg8[%c0_454, %c24_455], %598 {strides = array<i32>} : memref<16x32xf32, #tpu.memory_space<vmem>>, vector<16x4xf32>,
    %600 = vector.extract_strided_slice %478 {offsets = [0, 28], sizes = [16, 4], strides = [1, 1]} : vector<16x32xbf16> to vector<16x4xbf16>
    %601 = vector.extract_strided_slice %479 {offsets = [0, 28], sizes = [16, 4], strides = [1, 1]} : vector<16x32xbf16> to vector<16x4xbf16>
    %602 = vector.extract_strided_slice %480 {offsets = [0, 28], sizes = [16, 4], strides = [1, 1]} : vector<16x32xbf16> to vector<16x4xbf16>
    "tpu.trace_start"() <{level = 10 : i32, message = "sd,td->st"}> : () -> ()
    %cst_456 = arith.constant dense<0.000000e+00> : vector<16x16xf32>
    %603 = tpu.matmul %600, %601, %cst_456 {dimension_numbers = #tpu.dot_dimension_numbers<[1], [1], [0], [0], [0, 0, 1, 0], [], []>} : vector<16x4xbf16>, vector<16x4xbf16>, vector<16x16xf32> -> vector<16x16xf32>
    "tpu.trace_stop"() : () -> ()
    %cst_457 = arith.constant dense<0xFF800000> : vector<16xf32>
    %604 = vector.multi_reduction <maximumf>, %603, %cst_457 [1] : vector<16x16xf32> to vector<16xf32>
    %605 = vector.shape_cast %604 : vector<16xf32> to vector<16x1xf32>
    %606 = vector.broadcast %605 : vector<16x1xf32> to vector<16x16xf32>
    %607 = arith.subf %603, %606 : vector<16x16xf32>
    %608 = math.exp %607 : vector<16x16xf32>
    %cst_458 = arith.constant dense<0.000000e+00> : vector<16xf32>
    %609 = vector.multi_reduction <add>, %608, %cst_458 [1] : vector<16x16xf32> to vector<16xf32>
    %610 = vector.shape_cast %609 : vector<16xf32> to vector<16x1xf32>
    %611 = tpu.reciprocal %610 {approx = true} : vector<16x1xf32> -> vector<16x1xf32>
    %612 = vector.broadcast %611 : vector<16x1xf32> to vector<16x16xf32>
    %613 = arith.mulf %608, %612 : vector<16x16xf32>
    %614 = arith.truncf %613 : vector<16x16xf32> to vector<16x16xbf16>
    "tpu.trace_start"() <{level = 10 : i32, message = "st,td->sd"}> : () -> ()
    %cst_459 = arith.constant dense<0.000000e+00> : vector<16x4xf32>
    %615 = tpu.matmul %614, %602, %cst_459 {dimension_numbers = #tpu.dot_dimension_numbers<[1], [0], [0], [1], [0, 0, 1, 1], [], []>} : vector<16x16xbf16>, vector<16x4xbf16>, vector<16x4xf32> -> vector<16x4xf32>
    "tpu.trace_stop"() : () -> ()
    %c0_460 = arith.constant 0 : index
    %c28_461 = arith.constant 28 : index
    %616 = vector.load %arg8[%c0_460, %c28_461] : memref<16x32xf32, #tpu.memory_space<vmem>>, vector<16x4xf32>
    tpu.vector_store %arg8[%c0_460, %c28_461], %615 {strides = array<i32>} : memref<16x32xf32, #tpu.memory_space<vmem>>, vector<16x4xf32>,
    %c0_462 = arith.constant 0 : index
    %c0_463 = arith.constant 0 : index
    %617 = vector.load %arg8[%c0_462, %c0_463] : memref<16x32xf32, #tpu.memory_space<vmem>>, vector<4x32xf32>
    %c0_464 = arith.constant 0 : index
    %c0_465 = arith.constant 0 : index
    %c8_466 = arith.constant 8 : index
    %c0_467 = arith.constant 0 : index
    %618 = vector.load %arg4[%c0_464, %c0_465, %c8_466, %c0_467] : memref<1x4x16x32xf32, #tpu.memory_space<vmem>>, vector<1x1x4x32xf32>
    %619 = vector.shape_cast %618 : vector<1x1x4x32xf32> to vector<4x32xf32>
    %620 = vector.shape_cast %617 : vector<4x32xf32> to vector<1x1x4x32xf32>
    tpu.vector_store %arg4[%c0_464, %c0_465, %c8_466, %c0_467], %620 {strides = array<i32>} : memref<1x4x16x32xf32, #tpu.memory_space<vmem>>, vector<1x1x4x32xf32>,
    %c4_468 = arith.constant 4 : index
    %c0_469 = arith.constant 0 : index
    %621 = vector.load %arg8[%c4_468, %c0_469] : memref<16x32xf32, #tpu.memory_space<vmem>>, vector<4x32xf32>
    %c0_470 = arith.constant 0 : index
    %c1_471 = arith.constant 1 : index
    %c8_472 = arith.constant 8 : index
    %c0_473 = arith.constant 0 : index
    %622 = vector.load %arg4[%c0_470, %c1_471, %c8_472, %c0_473] : memref<1x4x16x32xf32, #tpu.memory_space<vmem>>, vector<1x1x4x32xf32>
    %623 = vector.shape_cast %622 : vector<1x1x4x32xf32> to vector<4x32xf32>
    %624 = vector.shape_cast %621 : vector<4x32xf32> to vector<1x1x4x32xf32>
    tpu.vector_store %arg4[%c0_470, %c1_471, %c8_472, %c0_473], %624 {strides = array<i32>} : memref<1x4x16x32xf32, #tpu.memory_space<vmem>>, vector<1x1x4x32xf32>,
    %c8_474 = arith.constant 8 : index
    %c0_475 = arith.constant 0 : index
    %625 = vector.load %arg8[%c8_474, %c0_475] : memref<16x32xf32, #tpu.memory_space<vmem>>, vector<4x32xf32>
    %c0_476 = arith.constant 0 : index
    %c2_477 = arith.constant 2 : index
    %c8_478 = arith.constant 8 : index
    %c0_479 = arith.constant 0 : index
    %626 = vector.load %arg4[%c0_476, %c2_477, %c8_478, %c0_479] : memref<1x4x16x32xf32, #tpu.memory_space<vmem>>, vector<1x1x4x32xf32>
    %627 = vector.shape_cast %626 : vector<1x1x4x32xf32> to vector<4x32xf32>
    %628 = vector.shape_cast %625 : vector<4x32xf32> to vector<1x1x4x32xf32>
    tpu.vector_store %arg4[%c0_476, %c2_477, %c8_478, %c0_479], %628 {strides = array<i32>} : memref<1x4x16x32xf32, #tpu.memory_space<vmem>>, vector<1x1x4x32xf32>,
    %c12_480 = arith.constant 12 : index
    %c0_481 = arith.constant 0 : index
    %629 = vector.load %arg8[%c12_480, %c0_481] : memref<16x32xf32, #tpu.memory_space<vmem>>, vector<4x32xf32>
    %c0_482 = arith.constant 0 : index
    %c3_483 = arith.constant 3 : index
    %c8_484 = arith.constant 8 : index
    %c0_485 = arith.constant 0 : index
    %630 = vector.load %arg4[%c0_482, %c3_483, %c8_484, %c0_485] : memref<1x4x16x32xf32, #tpu.memory_space<vmem>>, vector<1x1x4x32xf32>
    %631 = vector.shape_cast %630 : vector<1x1x4x32xf32> to vector<4x32xf32>
    %632 = vector.shape_cast %629 : vector<4x32xf32> to vector<1x1x4x32xf32>
    tpu.vector_store %arg4[%c0_482, %c3_483, %c8_484, %c0_485], %632 {strides = array<i32>} : memref<1x4x16x32xf32, #tpu.memory_space<vmem>>, vector<1x1x4x32xf32>,
    %c0_486 = arith.constant 0 : index
    %c0_487 = arith.constant 0 : index
    %c0_488 = arith.constant 0 : index
    %c12_489 = arith.constant 12 : index
    %c0_490 = arith.constant 0 : index
    %633 = vector.load %arg3[%c0_486, %c0_487, %c0_488, %c12_489, %c0_490] : memref<3x1x4x16x32xf32, #tpu.memory_space<vmem>>, vector<1x1x1x4x32xf32>
    %634 = vector.shape_cast %633 : vector<1x1x1x4x32xf32> to vector<4x32xf32>
    %cst_491 = arith.constant 5.000000e-01 : f32
    %635 = vector.broadcast %cst_491 : f32 to vector<4x32xf32>
    %636 = arith.mulf %634, %635 : vector<4x32xf32>
    %637 = arith.truncf %636 : vector<4x32xf32> to vector<4x32xbf16>
    %c0_492 = arith.constant 0 : index
    %c0_493 = arith.constant 0 : index
    %638 = vector.load %arg5[%c0_492, %c0_493] : memref<16x32xbf16, #tpu.memory_space<vmem>>, vector<4x32xbf16>
    tpu.vector_store %arg5[%c0_492, %c0_493], %637 {strides = array<i32>} : memref<16x32xbf16, #tpu.memory_space<vmem>>, vector<4x32xbf16>,
    %c1_494 = arith.constant 1 : index
    %c0_495 = arith.constant 0 : index
    %c0_496 = arith.constant 0 : index
    %c12_497 = arith.constant 12 : index
    %c0_498 = arith.constant 0 : index
    %639 = vector.load %arg3[%c1_494, %c0_495, %c0_496, %c12_497, %c0_498] : memref<3x1x4x16x32xf32, #tpu.memory_space<vmem>>, vector<1x1x1x4x32xf32>
    %640 = vector.shape_cast %639 : vector<1x1x1x4x32xf32> to vector<4x32xf32>
    %641 = arith.truncf %640 : vector<4x32xf32> to vector<4x32xbf16>
    %c0_499 = arith.constant 0 : index
    %c0_500 = arith.constant 0 : index
    %642 = vector.load %arg6[%c0_499, %c0_500] : memref<16x32xbf16, #tpu.memory_space<vmem>>, vector<4x32xbf16>
    tpu.vector_store %arg6[%c0_499, %c0_500], %641 {strides = array<i32>} : memref<16x32xbf16, #tpu.memory_space<vmem>>, vector<4x32xbf16>,
    %c2_501 = arith.constant 2 : index
    %c0_502 = arith.constant 0 : index
    %c0_503 = arith.constant 0 : index
    %c12_504 = arith.constant 12 : index
    %c0_505 = arith.constant 0 : index
    %643 = vector.load %arg3[%c2_501, %c0_502, %c0_503, %c12_504, %c0_505] : memref<3x1x4x16x32xf32, #tpu.memory_space<vmem>>, vector<1x1x1x4x32xf32>
    %644 = vector.shape_cast %643 : vector<1x1x1x4x32xf32> to vector<4x32xf32>
    %645 = arith.truncf %644 : vector<4x32xf32> to vector<4x32xbf16>
    %c0_506 = arith.constant 0 : index
    %c0_507 = arith.constant 0 : index
    %646 = vector.load %arg7[%c0_506, %c0_507] : memref<16x32xbf16, #tpu.memory_space<vmem>>, vector<4x32xbf16>
    tpu.vector_store %arg7[%c0_506, %c0_507], %645 {strides = array<i32>} : memref<16x32xbf16, #tpu.memory_space<vmem>>, vector<4x32xbf16>,
    %c0_508 = arith.constant 0 : index
    %c0_509 = arith.constant 0 : index
    %c1_510 = arith.constant 1 : index
    %c12_511 = arith.constant 12 : index
    %c0_512 = arith.constant 0 : index
    %647 = vector.load %arg3[%c0_508, %c0_509, %c1_510, %c12_511, %c0_512] : memref<3x1x4x16x32xf32, #tpu.memory_space<vmem>>, vector<1x1x1x4x32xf32>
    %648 = vector.shape_cast %647 : vector<1x1x1x4x32xf32> to vector<4x32xf32>
    %cst_513 = arith.constant 5.000000e-01 : f32
    %649 = vector.broadcast %cst_513 : f32 to vector<4x32xf32>
    %650 = arith.mulf %648, %649 : vector<4x32xf32>
    %651 = arith.truncf %650 : vector<4x32xf32> to vector<4x32xbf16>
    %c4_514 = arith.constant 4 : index
    %c0_515 = arith.constant 0 : index
    %652 = vector.load %arg5[%c4_514, %c0_515] : memref<16x32xbf16, #tpu.memory_space<vmem>>, vector<4x32xbf16>
    tpu.vector_store %arg5[%c4_514, %c0_515], %651 {strides = array<i32>} : memref<16x32xbf16, #tpu.memory_space<vmem>>, vector<4x32xbf16>,
    %c1_516 = arith.constant 1 : index
    %c0_517 = arith.constant 0 : index
    %c1_518 = arith.constant 1 : index
    %c12_519 = arith.constant 12 : index
    %c0_520 = arith.constant 0 : index
    %653 = vector.load %arg3[%c1_516, %c0_517, %c1_518, %c12_519, %c0_520] : memref<3x1x4x16x32xf32, #tpu.memory_space<vmem>>, vector<1x1x1x4x32xf32>
    %654 = vector.shape_cast %653 : vector<1x1x1x4x32xf32> to vector<4x32xf32>
    %655 = arith.truncf %654 : vector<4x32xf32> to vector<4x32xbf16>
    %c4_521 = arith.constant 4 : index
    %c0_522 = arith.constant 0 : index
    %656 = vector.load %arg6[%c4_521, %c0_522] : memref<16x32xbf16, #tpu.memory_space<vmem>>, vector<4x32xbf16>
    tpu.vector_store %arg6[%c4_521, %c0_522], %655 {strides = array<i32>} : memref<16x32xbf16, #tpu.memory_space<vmem>>, vector<4x32xbf16>,
    %c2_523 = arith.constant 2 : index
    %c0_524 = arith.constant 0 : index
    %c1_525 = arith.constant 1 : index
    %c12_526 = arith.constant 12 : index
    %c0_527 = arith.constant 0 : index
    %657 = vector.load %arg3[%c2_523, %c0_524, %c1_525, %c12_526, %c0_527] : memref<3x1x4x16x32xf32, #tpu.memory_space<vmem>>, vector<1x1x1x4x32xf32>
    %658 = vector.shape_cast %657 : vector<1x1x1x4x32xf32> to vector<4x32xf32>
    %659 = arith.truncf %658 : vector<4x32xf32> to vector<4x32xbf16>
    %c4_528 = arith.constant 4 : index
    %c0_529 = arith.constant 0 : index
    %660 = vector.load %arg7[%c4_528, %c0_529] : memref<16x32xbf16, #tpu.memory_space<vmem>>, vector<4x32xbf16>
    tpu.vector_store %arg7[%c4_528, %c0_529], %659 {strides = array<i32>} : memref<16x32xbf16, #tpu.memory_space<vmem>>, vector<4x32xbf16>,
    %c0_530 = arith.constant 0 : index
    %c0_531 = arith.constant 0 : index
    %c2_532 = arith.constant 2 : index
    %c12_533 = arith.constant 12 : index
    %c0_534 = arith.constant 0 : index
    %661 = vector.load %arg3[%c0_530, %c0_531, %c2_532, %c12_533, %c0_534] : memref<3x1x4x16x32xf32, #tpu.memory_space<vmem>>, vector<1x1x1x4x32xf32>
    %662 = vector.shape_cast %661 : vector<1x1x1x4x32xf32> to vector<4x32xf32>
    %cst_535 = arith.constant 5.000000e-01 : f32
    %663 = vector.broadcast %cst_535 : f32 to vector<4x32xf32>
    %664 = arith.mulf %662, %663 : vector<4x32xf32>
    %665 = arith.truncf %664 : vector<4x32xf32> to vector<4x32xbf16>
    %c8_536 = arith.constant 8 : index
    %c0_537 = arith.constant 0 : index
    %666 = vector.load %arg5[%c8_536, %c0_537] : memref<16x32xbf16, #tpu.memory_space<vmem>>, vector<4x32xbf16>
    tpu.vector_store %arg5[%c8_536, %c0_537], %665 {strides = array<i32>} : memref<16x32xbf16, #tpu.memory_space<vmem>>, vector<4x32xbf16>,
    %c1_538 = arith.constant 1 : index
    %c0_539 = arith.constant 0 : index
    %c2_540 = arith.constant 2 : index
    %c12_541 = arith.constant 12 : index
    %c0_542 = arith.constant 0 : index
    %667 = vector.load %arg3[%c1_538, %c0_539, %c2_540, %c12_541, %c0_542] : memref<3x1x4x16x32xf32, #tpu.memory_space<vmem>>, vector<1x1x1x4x32xf32>
    %668 = vector.shape_cast %667 : vector<1x1x1x4x32xf32> to vector<4x32xf32>
    %669 = arith.truncf %668 : vector<4x32xf32> to vector<4x32xbf16>
    %c8_543 = arith.constant 8 : index
    %c0_544 = arith.constant 0 : index
    %670 = vector.load %arg6[%c8_543, %c0_544] : memref<16x32xbf16, #tpu.memory_space<vmem>>, vector<4x32xbf16>
    tpu.vector_store %arg6[%c8_543, %c0_544], %669 {strides = array<i32>} : memref<16x32xbf16, #tpu.memory_space<vmem>>, vector<4x32xbf16>,
    %c2_545 = arith.constant 2 : index
    %c0_546 = arith.constant 0 : index
    %c2_547 = arith.constant 2 : index
    %c12_548 = arith.constant 12 : index
    %c0_549 = arith.constant 0 : index
    %671 = vector.load %arg3[%c2_545, %c0_546, %c2_547, %c12_548, %c0_549] : memref<3x1x4x16x32xf32, #tpu.memory_space<vmem>>, vector<1x1x1x4x32xf32>
    %672 = vector.shape_cast %671 : vector<1x1x1x4x32xf32> to vector<4x32xf32>
    %673 = arith.truncf %672 : vector<4x32xf32> to vector<4x32xbf16>
    %c8_550 = arith.constant 8 : index
    %c0_551 = arith.constant 0 : index
    %674 = vector.load %arg7[%c8_550, %c0_551] : memref<16x32xbf16, #tpu.memory_space<vmem>>, vector<4x32xbf16>
    tpu.vector_store %arg7[%c8_550, %c0_551], %673 {strides = array<i32>} : memref<16x32xbf16, #tpu.memory_space<vmem>>, vector<4x32xbf16>,
    %c0_552 = arith.constant 0 : index
    %c0_553 = arith.constant 0 : index
    %c3_554 = arith.constant 3 : index
    %c12_555 = arith.constant 12 : index
    %c0_556 = arith.constant 0 : index
    %675 = vector.load %arg3[%c0_552, %c0_553, %c3_554, %c12_555, %c0_556] : memref<3x1x4x16x32xf32, #tpu.memory_space<vmem>>, vector<1x1x1x4x32xf32>
    %676 = vector.shape_cast %675 : vector<1x1x1x4x32xf32> to vector<4x32xf32>
    %cst_557 = arith.constant 5.000000e-01 : f32
    %677 = vector.broadcast %cst_557 : f32 to vector<4x32xf32>
    %678 = arith.mulf %676, %677 : vector<4x32xf32>
    %679 = arith.truncf %678 : vector<4x32xf32> to vector<4x32xbf16>
    %c12_558 = arith.constant 12 : index
    %c0_559 = arith.constant 0 : index
    %680 = vector.load %arg5[%c12_558, %c0_559] : memref<16x32xbf16, #tpu.memory_space<vmem>>, vector<4x32xbf16>
    tpu.vector_store %arg5[%c12_558, %c0_559], %679 {strides = array<i32>} : memref<16x32xbf16, #tpu.memory_space<vmem>>, vector<4x32xbf16>,
    %c1_560 = arith.constant 1 : index
    %c0_561 = arith.constant 0 : index
    %c3_562 = arith.constant 3 : index
    %c12_563 = arith.constant 12 : index
    %c0_564 = arith.constant 0 : index
    %681 = vector.load %arg3[%c1_560, %c0_561, %c3_562, %c12_563, %c0_564] : memref<3x1x4x16x32xf32, #tpu.memory_space<vmem>>, vector<1x1x1x4x32xf32>
    %682 = vector.shape_cast %681 : vector<1x1x1x4x32xf32> to vector<4x32xf32>
    %683 = arith.truncf %682 : vector<4x32xf32> to vector<4x32xbf16>
    %c12_565 = arith.constant 12 : index
    %c0_566 = arith.constant 0 : index
    %684 = vector.load %arg6[%c12_565, %c0_566] : memref<16x32xbf16, #tpu.memory_space<vmem>>, vector<4x32xbf16>
    tpu.vector_store %arg6[%c12_565, %c0_566], %683 {strides = array<i32>} : memref<16x32xbf16, #tpu.memory_space<vmem>>, vector<4x32xbf16>,
    %c2_567 = arith.constant 2 : index
    %c0_568 = arith.constant 0 : index
    %c3_569 = arith.constant 3 : index
    %c12_570 = arith.constant 12 : index
    %c0_571 = arith.constant 0 : index
    %685 = vector.load %arg3[%c2_567, %c0_568, %c3_569, %c12_570, %c0_571] : memref<3x1x4x16x32xf32, #tpu.memory_space<vmem>>, vector<1x1x1x4x32xf32>
    %686 = vector.shape_cast %685 : vector<1x1x1x4x32xf32> to vector<4x32xf32>
    %687 = arith.truncf %686 : vector<4x32xf32> to vector<4x32xbf16>
    %c12_572 = arith.constant 12 : index
    %c0_573 = arith.constant 0 : index
    %688 = vector.load %arg7[%c12_572, %c0_573] : memref<16x32xbf16, #tpu.memory_space<vmem>>, vector<4x32xbf16>
    tpu.vector_store %arg7[%c12_572, %c0_573], %687 {strides = array<i32>} : memref<16x32xbf16, #tpu.memory_space<vmem>>, vector<4x32xbf16>,
    %c0_574 = arith.constant 0 : index
    %c0_575 = arith.constant 0 : index
    %689 = vector.load %arg5[%c0_574, %c0_575] : memref<16x32xbf16, #tpu.memory_space<vmem>>, vector<16x32xbf16>
    %c0_576 = arith.constant 0 : index
    %c0_577 = arith.constant 0 : index
    %690 = vector.load %arg6[%c0_576, %c0_577] : memref<16x32xbf16, #tpu.memory_space<vmem>>, vector<16x32xbf16>
    %c0_578 = arith.constant 0 : index
    %c0_579 = arith.constant 0 : index
    %691 = vector.load %arg7[%c0_578, %c0_579] : memref<16x32xbf16, #tpu.memory_space<vmem>>, vector<16x32xbf16>
    %692 = vector.extract_strided_slice %689 {offsets = [0, 0], sizes = [16, 4], strides = [1, 1]} : vector<16x32xbf16> to vector<16x4xbf16>
    %693 = vector.extract_strided_slice %690 {offsets = [0, 0], sizes = [16, 4], strides = [1, 1]} : vector<16x32xbf16> to vector<16x4xbf16>
    %694 = vector.extract_strided_slice %691 {offsets = [0, 0], sizes = [16, 4], strides = [1, 1]} : vector<16x32xbf16> to vector<16x4xbf16>
    "tpu.trace_start"() <{level = 10 : i32, message = "sd,td->st"}> : () -> ()
    %cst_580 = arith.constant dense<0.000000e+00> : vector<16x16xf32>
    %695 = tpu.matmul %692, %693, %cst_580 {dimension_numbers = #tpu.dot_dimension_numbers<[1], [1], [0], [0], [0, 0, 1, 0], [], []>} : vector<16x4xbf16>, vector<16x4xbf16>, vector<16x16xf32> -> vector<16x16xf32>
    "tpu.trace_stop"() : () -> ()
    %cst_581 = arith.constant dense<0xFF800000> : vector<16xf32>
    %696 = vector.multi_reduction <maximumf>, %695, %cst_581 [1] : vector<16x16xf32> to vector<16xf32>
    %697 = vector.shape_cast %696 : vector<16xf32> to vector<16x1xf32>
    %698 = vector.broadcast %697 : vector<16x1xf32> to vector<16x16xf32>
    %699 = arith.subf %695, %698 : vector<16x16xf32>
    %700 = math.exp %699 : vector<16x16xf32>
    %cst_582 = arith.constant dense<0.000000e+00> : vector<16xf32>
    %701 = vector.multi_reduction <add>, %700, %cst_582 [1] : vector<16x16xf32> to vector<16xf32>
    %702 = vector.shape_cast %701 : vector<16xf32> to vector<16x1xf32>
    %703 = tpu.reciprocal %702 {approx = true} : vector<16x1xf32> -> vector<16x1xf32>
    %704 = vector.broadcast %703 : vector<16x1xf32> to vector<16x16xf32>
    %705 = arith.mulf %700, %704 : vector<16x16xf32>
    %706 = arith.truncf %705 : vector<16x16xf32> to vector<16x16xbf16>
    "tpu.trace_start"() <{level = 10 : i32, message = "st,td->sd"}> : () -> ()
    %cst_583 = arith.constant dense<0.000000e+00> : vector<16x4xf32>
    %707 = tpu.matmul %706, %694, %cst_583 {dimension_numbers = #tpu.dot_dimension_numbers<[1], [0], [0], [1], [0, 0, 1, 1], [], []>} : vector<16x16xbf16>, vector<16x4xbf16>, vector<16x4xf32> -> vector<16x4xf32>
    "tpu.trace_stop"() : () -> ()
    %c0_584 = arith.constant 0 : index
    %c0_585 = arith.constant 0 : index
    %708 = vector.load %arg8[%c0_584, %c0_585] : memref<16x32xf32, #tpu.memory_space<vmem>>, vector<16x4xf32>
    tpu.vector_store %arg8[%c0_584, %c0_585], %707 {strides = array<i32>} : memref<16x32xf32, #tpu.memory_space<vmem>>, vector<16x4xf32>,
    %709 = vector.extract_strided_slice %689 {offsets = [0, 4], sizes = [16, 4], strides = [1, 1]} : vector<16x32xbf16> to vector<16x4xbf16>
    %710 = vector.extract_strided_slice %690 {offsets = [0, 4], sizes = [16, 4], strides = [1, 1]} : vector<16x32xbf16> to vector<16x4xbf16>
    %711 = vector.extract_strided_slice %691 {offsets = [0, 4], sizes = [16, 4], strides = [1, 1]} : vector<16x32xbf16> to vector<16x4xbf16>
    "tpu.trace_start"() <{level = 10 : i32, message = "sd,td->st"}> : () -> ()
    %cst_586 = arith.constant dense<0.000000e+00> : vector<16x16xf32>
    %712 = tpu.matmul %709, %710, %cst_586 {dimension_numbers = #tpu.dot_dimension_numbers<[1], [1], [0], [0], [0, 0, 1, 0], [], []>} : vector<16x4xbf16>, vector<16x4xbf16>, vector<16x16xf32> -> vector<16x16xf32>
    "tpu.trace_stop"() : () -> ()
    %cst_587 = arith.constant dense<0xFF800000> : vector<16xf32>
    %713 = vector.multi_reduction <maximumf>, %712, %cst_587 [1] : vector<16x16xf32> to vector<16xf32>
    %714 = vector.shape_cast %713 : vector<16xf32> to vector<16x1xf32>
    %715 = vector.broadcast %714 : vector<16x1xf32> to vector<16x16xf32>
    %716 = arith.subf %712, %715 : vector<16x16xf32>
    %717 = math.exp %716 : vector<16x16xf32>
    %cst_588 = arith.constant dense<0.000000e+00> : vector<16xf32>
    %718 = vector.multi_reduction <add>, %717, %cst_588 [1] : vector<16x16xf32> to vector<16xf32>
    %719 = vector.shape_cast %718 : vector<16xf32> to vector<16x1xf32>
    %720 = tpu.reciprocal %719 {approx = true} : vector<16x1xf32> -> vector<16x1xf32>
    %721 = vector.broadcast %720 : vector<16x1xf32> to vector<16x16xf32>
    %722 = arith.mulf %717, %721 : vector<16x16xf32>
    %723 = arith.truncf %722 : vector<16x16xf32> to vector<16x16xbf16>
    "tpu.trace_start"() <{level = 10 : i32, message = "st,td->sd"}> : () -> ()
    %cst_589 = arith.constant dense<0.000000e+00> : vector<16x4xf32>
    %724 = tpu.matmul %723, %711, %cst_589 {dimension_numbers = #tpu.dot_dimension_numbers<[1], [0], [0], [1], [0, 0, 1, 1], [], []>} : vector<16x16xbf16>, vector<16x4xbf16>, vector<16x4xf32> -> vector<16x4xf32>
    "tpu.trace_stop"() : () -> ()
    %c0_590 = arith.constant 0 : index
    %c4_591 = arith.constant 4 : index
    %725 = vector.load %arg8[%c0_590, %c4_591] : memref<16x32xf32, #tpu.memory_space<vmem>>, vector<16x4xf32>
    tpu.vector_store %arg8[%c0_590, %c4_591], %724 {strides = array<i32>} : memref<16x32xf32, #tpu.memory_space<vmem>>, vector<16x4xf32>,
    %726 = vector.extract_strided_slice %689 {offsets = [0, 8], sizes = [16, 4], strides = [1, 1]} : vector<16x32xbf16> to vector<16x4xbf16>
    %727 = vector.extract_strided_slice %690 {offsets = [0, 8], sizes = [16, 4], strides = [1, 1]} : vector<16x32xbf16> to vector<16x4xbf16>
    %728 = vector.extract_strided_slice %691 {offsets = [0, 8], sizes = [16, 4], strides = [1, 1]} : vector<16x32xbf16> to vector<16x4xbf16>
    "tpu.trace_start"() <{level = 10 : i32, message = "sd,td->st"}> : () -> ()
    %cst_592 = arith.constant dense<0.000000e+00> : vector<16x16xf32>
    %729 = tpu.matmul %726, %727, %cst_592 {dimension_numbers = #tpu.dot_dimension_numbers<[1], [1], [0], [0], [0, 0, 1, 0], [], []>} : vector<16x4xbf16>, vector<16x4xbf16>, vector<16x16xf32> -> vector<16x16xf32>
    "tpu.trace_stop"() : () -> ()
    %cst_593 = arith.constant dense<0xFF800000> : vector<16xf32>
    %730 = vector.multi_reduction <maximumf>, %729, %cst_593 [1] : vector<16x16xf32> to vector<16xf32>
    %731 = vector.shape_cast %730 : vector<16xf32> to vector<16x1xf32>
    %732 = vector.broadcast %731 : vector<16x1xf32> to vector<16x16xf32>
    %733 = arith.subf %729, %732 : vector<16x16xf32>
    %734 = math.exp %733 : vector<16x16xf32>
    %cst_594 = arith.constant dense<0.000000e+00> : vector<16xf32>
    %735 = vector.multi_reduction <add>, %734, %cst_594 [1] : vector<16x16xf32> to vector<16xf32>
    %736 = vector.shape_cast %735 : vector<16xf32> to vector<16x1xf32>
    %737 = tpu.reciprocal %736 {approx = true} : vector<16x1xf32> -> vector<16x1xf32>
    %738 = vector.broadcast %737 : vector<16x1xf32> to vector<16x16xf32>
    %739 = arith.mulf %734, %738 : vector<16x16xf32>
    %740 = arith.truncf %739 : vector<16x16xf32> to vector<16x16xbf16>
    "tpu.trace_start"() <{level = 10 : i32, message = "st,td->sd"}> : () -> ()
    %cst_595 = arith.constant dense<0.000000e+00> : vector<16x4xf32>
    %741 = tpu.matmul %740, %728, %cst_595 {dimension_numbers = #tpu.dot_dimension_numbers<[1], [0], [0], [1], [0, 0, 1, 1], [], []>} : vector<16x16xbf16>, vector<16x4xbf16>, vector<16x4xf32> -> vector<16x4xf32>
    "tpu.trace_stop"() : () -> ()
    %c0_596 = arith.constant 0 : index
    %c8_597 = arith.constant 8 : index
    %742 = vector.load %arg8[%c0_596, %c8_597] : memref<16x32xf32, #tpu.memory_space<vmem>>, vector<16x4xf32>
    tpu.vector_store %arg8[%c0_596, %c8_597], %741 {strides = array<i32>} : memref<16x32xf32, #tpu.memory_space<vmem>>, vector<16x4xf32>,
    %743 = vector.extract_strided_slice %689 {offsets = [0, 12], sizes = [16, 4], strides = [1, 1]} : vector<16x32xbf16> to vector<16x4xbf16>
    %744 = vector.extract_strided_slice %690 {offsets = [0, 12], sizes = [16, 4], strides = [1, 1]} : vector<16x32xbf16> to vector<16x4xbf16>
    %745 = vector.extract_strided_slice %691 {offsets = [0, 12], sizes = [16, 4], strides = [1, 1]} : vector<16x32xbf16> to vector<16x4xbf16>
    "tpu.trace_start"() <{level = 10 : i32, message = "sd,td->st"}> : () -> ()
    %cst_598 = arith.constant dense<0.000000e+00> : vector<16x16xf32>
    %746 = tpu.matmul %743, %744, %cst_598 {dimension_numbers = #tpu.dot_dimension_numbers<[1], [1], [0], [0], [0, 0, 1, 0], [], []>} : vector<16x4xbf16>, vector<16x4xbf16>, vector<16x16xf32> -> vector<16x16xf32>
    "tpu.trace_stop"() : () -> ()
    %cst_599 = arith.constant dense<0xFF800000> : vector<16xf32>
    %747 = vector.multi_reduction <maximumf>, %746, %cst_599 [1] : vector<16x16xf32> to vector<16xf32>
    %748 = vector.shape_cast %747 : vector<16xf32> to vector<16x1xf32>
    %749 = vector.broadcast %748 : vector<16x1xf32> to vector<16x16xf32>
    %750 = arith.subf %746, %749 : vector<16x16xf32>
    %751 = math.exp %750 : vector<16x16xf32>
    %cst_600 = arith.constant dense<0.000000e+00> : vector<16xf32>
    %752 = vector.multi_reduction <add>, %751, %cst_600 [1] : vector<16x16xf32> to vector<16xf32>
    %753 = vector.shape_cast %752 : vector<16xf32> to vector<16x1xf32>
    %754 = tpu.reciprocal %753 {approx = true} : vector<16x1xf32> -> vector<16x1xf32>
    %755 = vector.broadcast %754 : vector<16x1xf32> to vector<16x16xf32>
    %756 = arith.mulf %751, %755 : vector<16x16xf32>
    %757 = arith.truncf %756 : vector<16x16xf32> to vector<16x16xbf16>
    "tpu.trace_start"() <{level = 10 : i32, message = "st,td->sd"}> : () -> ()
    %cst_601 = arith.constant dense<0.000000e+00> : vector<16x4xf32>
    %758 = tpu.matmul %757, %745, %cst_601 {dimension_numbers = #tpu.dot_dimension_numbers<[1], [0], [0], [1], [0, 0, 1, 1], [], []>} : vector<16x16xbf16>, vector<16x4xbf16>, vector<16x4xf32> -> vector<16x4xf32>
    "tpu.trace_stop"() : () -> ()
    %c0_602 = arith.constant 0 : index
    %c12_603 = arith.constant 12 : index
    %759 = vector.load %arg8[%c0_602, %c12_603] : memref<16x32xf32, #tpu.memory_space<vmem>>, vector<16x4xf32>
    tpu.vector_store %arg8[%c0_602, %c12_603], %758 {strides = array<i32>} : memref<16x32xf32, #tpu.memory_space<vmem>>, vector<16x4xf32>,
    %760 = vector.extract_strided_slice %689 {offsets = [0, 16], sizes = [16, 4], strides = [1, 1]} : vector<16x32xbf16> to vector<16x4xbf16>
    %761 = vector.extract_strided_slice %690 {offsets = [0, 16], sizes = [16, 4], strides = [1, 1]} : vector<16x32xbf16> to vector<16x4xbf16>
    %762 = vector.extract_strided_slice %691 {offsets = [0, 16], sizes = [16, 4], strides = [1, 1]} : vector<16x32xbf16> to vector<16x4xbf16>
    "tpu.trace_start"() <{level = 10 : i32, message = "sd,td->st"}> : () -> ()
    %cst_604 = arith.constant dense<0.000000e+00> : vector<16x16xf32>
    %763 = tpu.matmul %760, %761, %cst_604 {dimension_numbers = #tpu.dot_dimension_numbers<[1], [1], [0], [0], [0, 0, 1, 0], [], []>} : vector<16x4xbf16>, vector<16x4xbf16>, vector<16x16xf32> -> vector<16x16xf32>
    "tpu.trace_stop"() : () -> ()
    %cst_605 = arith.constant dense<0xFF800000> : vector<16xf32>
    %764 = vector.multi_reduction <maximumf>, %763, %cst_605 [1] : vector<16x16xf32> to vector<16xf32>
    %765 = vector.shape_cast %764 : vector<16xf32> to vector<16x1xf32>
    %766 = vector.broadcast %765 : vector<16x1xf32> to vector<16x16xf32>
    %767 = arith.subf %763, %766 : vector<16x16xf32>
    %768 = math.exp %767 : vector<16x16xf32>
    %cst_606 = arith.constant dense<0.000000e+00> : vector<16xf32>
    %769 = vector.multi_reduction <add>, %768, %cst_606 [1] : vector<16x16xf32> to vector<16xf32>
    %770 = vector.shape_cast %769 : vector<16xf32> to vector<16x1xf32>
    %771 = tpu.reciprocal %770 {approx = true} : vector<16x1xf32> -> vector<16x1xf32>
    %772 = vector.broadcast %771 : vector<16x1xf32> to vector<16x16xf32>
    %773 = arith.mulf %768, %772 : vector<16x16xf32>
    %774 = arith.truncf %773 : vector<16x16xf32> to vector<16x16xbf16>
    "tpu.trace_start"() <{level = 10 : i32, message = "st,td->sd"}> : () -> ()
    %cst_607 = arith.constant dense<0.000000e+00> : vector<16x4xf32>
    %775 = tpu.matmul %774, %762, %cst_607 {dimension_numbers = #tpu.dot_dimension_numbers<[1], [0], [0], [1], [0, 0, 1, 1], [], []>} : vector<16x16xbf16>, vector<16x4xbf16>, vector<16x4xf32> -> vector<16x4xf32>
    "tpu.trace_stop"() : () -> ()
    %c0_608 = arith.constant 0 : index
    %c16_609 = arith.constant 16 : index
    %776 = vector.load %arg8[%c0_608, %c16_609] : memref<16x32xf32, #tpu.memory_space<vmem>>, vector<16x4xf32>
    tpu.vector_store %arg8[%c0_608, %c16_609], %775 {strides = array<i32>} : memref<16x32xf32, #tpu.memory_space<vmem>>, vector<16x4xf32>,
    %777 = vector.extract_strided_slice %689 {offsets = [0, 20], sizes = [16, 4], strides = [1, 1]} : vector<16x32xbf16> to vector<16x4xbf16>
    %778 = vector.extract_strided_slice %690 {offsets = [0, 20], sizes = [16, 4], strides = [1, 1]} : vector<16x32xbf16> to vector<16x4xbf16>
    %779 = vector.extract_strided_slice %691 {offsets = [0, 20], sizes = [16, 4], strides = [1, 1]} : vector<16x32xbf16> to vector<16x4xbf16>
    "tpu.trace_start"() <{level = 10 : i32, message = "sd,td->st"}> : () -> ()
    %cst_610 = arith.constant dense<0.000000e+00> : vector<16x16xf32>
    %780 = tpu.matmul %777, %778, %cst_610 {dimension_numbers = #tpu.dot_dimension_numbers<[1], [1], [0], [0], [0, 0, 1, 0], [], []>} : vector<16x4xbf16>, vector<16x4xbf16>, vector<16x16xf32> -> vector<16x16xf32>
    "tpu.trace_stop"() : () -> ()
    %cst_611 = arith.constant dense<0xFF800000> : vector<16xf32>
    %781 = vector.multi_reduction <maximumf>, %780, %cst_611 [1] : vector<16x16xf32> to vector<16xf32>
    %782 = vector.shape_cast %781 : vector<16xf32> to vector<16x1xf32>
    %783 = vector.broadcast %782 : vector<16x1xf32> to vector<16x16xf32>
    %784 = arith.subf %780, %783 : vector<16x16xf32>
    %785 = math.exp %784 : vector<16x16xf32>
    %cst_612 = arith.constant dense<0.000000e+00> : vector<16xf32>
    %786 = vector.multi_reduction <add>, %785, %cst_612 [1] : vector<16x16xf32> to vector<16xf32>
    %787 = vector.shape_cast %786 : vector<16xf32> to vector<16x1xf32>
    %788 = tpu.reciprocal %787 {approx = true} : vector<16x1xf32> -> vector<16x1xf32>
    %789 = vector.broadcast %788 : vector<16x1xf32> to vector<16x16xf32>
    %790 = arith.mulf %785, %789 : vector<16x16xf32>
    %791 = arith.truncf %790 : vector<16x16xf32> to vector<16x16xbf16>
    "tpu.trace_start"() <{level = 10 : i32, message = "st,td->sd"}> : () -> ()
    %cst_613 = arith.constant dense<0.000000e+00> : vector<16x4xf32>
    %792 = tpu.matmul %791, %779, %cst_613 {dimension_numbers = #tpu.dot_dimension_numbers<[1], [0], [0], [1], [0, 0, 1, 1], [], []>} : vector<16x16xbf16>, vector<16x4xbf16>, vector<16x4xf32> -> vector<16x4xf32>
    "tpu.trace_stop"() : () -> ()
    %c0_614 = arith.constant 0 : index
    %c20_615 = arith.constant 20 : index
    %793 = vector.load %arg8[%c0_614, %c20_615] : memref<16x32xf32, #tpu.memory_space<vmem>>, vector<16x4xf32>
    tpu.vector_store %arg8[%c0_614, %c20_615], %792 {strides = array<i32>} : memref<16x32xf32, #tpu.memory_space<vmem>>, vector<16x4xf32>,
    %794 = vector.extract_strided_slice %689 {offsets = [0, 24], sizes = [16, 4], strides = [1, 1]} : vector<16x32xbf16> to vector<16x4xbf16>
    %795 = vector.extract_strided_slice %690 {offsets = [0, 24], sizes = [16, 4], strides = [1, 1]} : vector<16x32xbf16> to vector<16x4xbf16>
    %796 = vector.extract_strided_slice %691 {offsets = [0, 24], sizes = [16, 4], strides = [1, 1]} : vector<16x32xbf16> to vector<16x4xbf16>
    "tpu.trace_start"() <{level = 10 : i32, message = "sd,td->st"}> : () -> ()
    %cst_616 = arith.constant dense<0.000000e+00> : vector<16x16xf32>
    %797 = tpu.matmul %794, %795, %cst_616 {dimension_numbers = #tpu.dot_dimension_numbers<[1], [1], [0], [0], [0, 0, 1, 0], [], []>} : vector<16x4xbf16>, vector<16x4xbf16>, vector<16x16xf32> -> vector<16x16xf32>
    "tpu.trace_stop"() : () -> ()
    %cst_617 = arith.constant dense<0xFF800000> : vector<16xf32>
    %798 = vector.multi_reduction <maximumf>, %797, %cst_617 [1] : vector<16x16xf32> to vector<16xf32>
    %799 = vector.shape_cast %798 : vector<16xf32> to vector<16x1xf32>
    %800 = vector.broadcast %799 : vector<16x1xf32> to vector<16x16xf32>
    %801 = arith.subf %797, %800 : vector<16x16xf32>
    %802 = math.exp %801 : vector<16x16xf32>
    %cst_618 = arith.constant dense<0.000000e+00> : vector<16xf32>
    %803 = vector.multi_reduction <add>, %802, %cst_618 [1] : vector<16x16xf32> to vector<16xf32>
    %804 = vector.shape_cast %803 : vector<16xf32> to vector<16x1xf32>
    %805 = tpu.reciprocal %804 {approx = true} : vector<16x1xf32> -> vector<16x1xf32>
    %806 = vector.broadcast %805 : vector<16x1xf32> to vector<16x16xf32>
    %807 = arith.mulf %802, %806 : vector<16x16xf32>
    %808 = arith.truncf %807 : vector<16x16xf32> to vector<16x16xbf16>
    "tpu.trace_start"() <{level = 10 : i32, message = "st,td->sd"}> : () -> ()
    %cst_619 = arith.constant dense<0.000000e+00> : vector<16x4xf32>
    %809 = tpu.matmul %808, %796, %cst_619 {dimension_numbers = #tpu.dot_dimension_numbers<[1], [0], [0], [1], [0, 0, 1, 1], [], []>} : vector<16x16xbf16>, vector<16x4xbf16>, vector<16x4xf32> -> vector<16x4xf32>
    "tpu.trace_stop"() : () -> ()
    %c0_620 = arith.constant 0 : index
    %c24_621 = arith.constant 24 : index
    %810 = vector.load %arg8[%c0_620, %c24_621] : memref<16x32xf32, #tpu.memory_space<vmem>>, vector<16x4xf32>
    tpu.vector_store %arg8[%c0_620, %c24_621], %809 {strides = array<i32>} : memref<16x32xf32, #tpu.memory_space<vmem>>, vector<16x4xf32>,
    %811 = vector.extract_strided_slice %689 {offsets = [0, 28], sizes = [16, 4], strides = [1, 1]} : vector<16x32xbf16> to vector<16x4xbf16>
    %812 = vector.extract_strided_slice %690 {offsets = [0, 28], sizes = [16, 4], strides = [1, 1]} : vector<16x32xbf16> to vector<16x4xbf16>
    %813 = vector.extract_strided_slice %691 {offsets = [0, 28], sizes = [16, 4], strides = [1, 1]} : vector<16x32xbf16> to vector<16x4xbf16>
    "tpu.trace_start"() <{level = 10 : i32, message = "sd,td->st"}> : () -> ()
    %cst_622 = arith.constant dense<0.000000e+00> : vector<16x16xf32>
    %814 = tpu.matmul %811, %812, %cst_622 {dimension_numbers = #tpu.dot_dimension_numbers<[1], [1], [0], [0], [0, 0, 1, 0], [], []>} : vector<16x4xbf16>, vector<16x4xbf16>, vector<16x16xf32> -> vector<16x16xf32>
    "tpu.trace_stop"() : () -> ()
    %cst_623 = arith.constant dense<0xFF800000> : vector<16xf32>
    %815 = vector.multi_reduction <maximumf>, %814, %cst_623 [1] : vector<16x16xf32> to vector<16xf32>
    %816 = vector.shape_cast %815 : vector<16xf32> to vector<16x1xf32>
    %817 = vector.broadcast %816 : vector<16x1xf32> to vector<16x16xf32>
    %818 = arith.subf %814, %817 : vector<16x16xf32>
    %819 = math.exp %818 : vector<16x16xf32>
    %cst_624 = arith.constant dense<0.000000e+00> : vector<16xf32>
    %820 = vector.multi_reduction <add>, %819, %cst_624 [1] : vector<16x16xf32> to vector<16xf32>
    %821 = vector.shape_cast %820 : vector<16xf32> to vector<16x1xf32>
    %822 = tpu.reciprocal %821 {approx = true} : vector<16x1xf32> -> vector<16x1xf32>
    %823 = vector.broadcast %822 : vector<16x1xf32> to vector<16x16xf32>
    %824 = arith.mulf %819, %823 : vector<16x16xf32>
    %825 = arith.truncf %824 : vector<16x16xf32> to vector<16x16xbf16>
    "tpu.trace_start"() <{level = 10 : i32, message = "st,td->sd"}> : () -> ()
    %cst_625 = arith.constant dense<0.000000e+00> : vector<16x4xf32>
    %826 = tpu.matmul %825, %813, %cst_625 {dimension_numbers = #tpu.dot_dimension_numbers<[1], [0], [0], [1], [0, 0, 1, 1], [], []>} : vector<16x16xbf16>, vector<16x4xbf16>, vector<16x4xf32> -> vector<16x4xf32>
    "tpu.trace_stop"() : () -> ()
    %c0_626 = arith.constant 0 : index
    %c28_627 = arith.constant 28 : index
    %827 = vector.load %arg8[%c0_626, %c28_627] : memref<16x32xf32, #tpu.memory_space<vmem>>, vector<16x4xf32>
    tpu.vector_store %arg8[%c0_626, %c28_627], %826 {strides = array<i32>} : memref<16x32xf32, #tpu.memory_space<vmem>>, vector<16x4xf32>,
    %c0_628 = arith.constant 0 : index
    %c0_629 = arith.constant 0 : index
    %828 = vector.load %arg8[%c0_628, %c0_629] : memref<16x32xf32, #tpu.memory_space<vmem>>, vector<4x32xf32>
    %c0_630 = arith.constant 0 : index
    %c0_631 = arith.constant 0 : index
    %c12_632 = arith.constant 12 : index
    %c0_633 = arith.constant 0 : index
    %829 = vector.load %arg4[%c0_630, %c0_631, %c12_632, %c0_633] : memref<1x4x16x32xf32, #tpu.memory_space<vmem>>, vector<1x1x4x32xf32>
    %830 = vector.shape_cast %829 : vector<1x1x4x32xf32> to vector<4x32xf32>
    %831 = vector.shape_cast %828 : vector<4x32xf32> to vector<1x1x4x32xf32>
    tpu.vector_store %arg4[%c0_630, %c0_631, %c12_632, %c0_633], %831 {strides = array<i32>} : memref<1x4x16x32xf32, #tpu.memory_space<vmem>>, vector<1x1x4x32xf32>,
    %c4_634 = arith.constant 4 : index
    %c0_635 = arith.constant 0 : index
    %832 = vector.load %arg8[%c4_634, %c0_635] : memref<16x32xf32, #tpu.memory_space<vmem>>, vector<4x32xf32>
    %c0_636 = arith.constant 0 : index
    %c1_637 = arith.constant 1 : index
    %c12_638 = arith.constant 12 : index
    %c0_639 = arith.constant 0 : index
    %833 = vector.load %arg4[%c0_636, %c1_637, %c12_638, %c0_639] : memref<1x4x16x32xf32, #tpu.memory_space<vmem>>, vector<1x1x4x32xf32>
    %834 = vector.shape_cast %833 : vector<1x1x4x32xf32> to vector<4x32xf32>
    %835 = vector.shape_cast %832 : vector<4x32xf32> to vector<1x1x4x32xf32>
    tpu.vector_store %arg4[%c0_636, %c1_637, %c12_638, %c0_639], %835 {strides = array<i32>} : memref<1x4x16x32xf32, #tpu.memory_space<vmem>>, vector<1x1x4x32xf32>,
    %c8_640 = arith.constant 8 : index
    %c0_641 = arith.constant 0 : index
    %836 = vector.load %arg8[%c8_640, %c0_641] : memref<16x32xf32, #tpu.memory_space<vmem>>, vector<4x32xf32>
    %c0_642 = arith.constant 0 : index
    %c2_643 = arith.constant 2 : index
    %c12_644 = arith.constant 12 : index
    %c0_645 = arith.constant 0 : index
    %837 = vector.load %arg4[%c0_642, %c2_643, %c12_644, %c0_645] : memref<1x4x16x32xf32, #tpu.memory_space<vmem>>, vector<1x1x4x32xf32>
    %838 = vector.shape_cast %837 : vector<1x1x4x32xf32> to vector<4x32xf32>
    %839 = vector.shape_cast %836 : vector<4x32xf32> to vector<1x1x4x32xf32>
    tpu.vector_store %arg4[%c0_642, %c2_643, %c12_644, %c0_645], %839 {strides = array<i32>} : memref<1x4x16x32xf32, #tpu.memory_space<vmem>>, vector<1x1x4x32xf32>,
    %c12_646 = arith.constant 12 : index
    %c0_647 = arith.constant 0 : index
    %840 = vector.load %arg8[%c12_646, %c0_647] : memref<16x32xf32, #tpu.memory_space<vmem>>, vector<4x32xf32>
    %c0_648 = arith.constant 0 : index
    %c3_649 = arith.constant 3 : index
    %c12_650 = arith.constant 12 : index
    %c0_651 = arith.constant 0 : index
    %841 = vector.load %arg4[%c0_648, %c3_649, %c12_650, %c0_651] : memref<1x4x16x32xf32, #tpu.memory_space<vmem>>, vector<1x1x4x32xf32>
    %842 = vector.shape_cast %841 : vector<1x1x4x32xf32> to vector<4x32xf32>
    %843 = vector.shape_cast %840 : vector<4x32xf32> to vector<1x1x4x32xf32>
    tpu.vector_store %arg4[%c0_648, %c3_649, %c12_650, %c0_651], %843 {strides = array<i32>} : memref<1x4x16x32xf32, #tpu.memory_space<vmem>>, vector<1x1x4x32xf32>,
    return
  }
  func.func @transform_0(%arg0: i32, %arg1: i32, %arg2: i32) -> (i32, i32, i32, i32, i32) {
    %c0_i32 = arith.constant 0 : i32
    %c0_i32_0 = arith.constant 0 : i32
    %c0_i32_1 = arith.constant 0 : i32
    return %c0_i32, %arg0, %arg1, %arg2, %c0_i32_0 : i32, i32, i32, i32, i32
  }
  func.func @transform_1(%arg0: i32, %arg1: i32, %arg2: i32) -> (i32, i32, i32, i32) {
    %c0_i32 = arith.constant 0 : i32
    %c0_i32_0 = arith.constant 0 : i32
    return %arg0, %arg1, %arg2, %c0_i32 : i32, i32, i32, i32
  }
}

</mosaic_0001>

<bundles_post_ra>
// kernel: _lambda_.1
= control target key start
LH: loop header
LB: loop body
LE: loop exit
PB: predicated region body
PF: predicated region fallthrough
CT: control target
= control target key end

     0   :  { %s3803_s6 = smov 0   ;;  %s3805_s7 = smov 0   ;;  %s5073_s0 = inlined_call_operand.vmem [shape: f32[3,2,16,16,32], index: 0, kind: input, shape index: {}]   ;;  %s5074_s1 = inlined_call_operand.vmem [shape: f32[2,16,16,32], index: 1, kind: output, shape index: {}]  }
   0x1   :  { %s3807_s8 = smov 0   ;;  %s3809_s9 = smov 0  }
   0x2   :  { %s3811_s10 = smov 0   ;;  %s3813_s11 = smov 0  }
   0x3   :  { %s3815_s12 = smov 0  }
   0x4 LB: > { %s26_s13 = sadd.s32 1, %s3769_s10  ;;  %s30_s14 = sadd.s32 1, %s3773_s11  ;;  %s3777_s12 = sphi %s3815_s12, %s11_s12   ;;  %s3773_s11 = sphi %s3813_s11, %s5086_s11   ;;  %s3769_s10 = sphi %s3811_s10, %s5085_s10   ;;  %s3765_s9 = sphi %s3809_s9, %s5084_s9   ;;  %s3761_s8 = sphi %s3807_s8, %s5083_s8   ;;  %s3757_s7 = sphi %s3805_s7, %s5082_s7   ;;  %s3753_s6 = sphi %s3803_s6, %s5081_s6  }
   0x5   : > { %p28_p0 = scmp.ge.s32.totalorder %s26_s13, 4  ;;  %p48_p1 = scmp.ne.s32.totalorder %s3757_s7, %s3753_s6 }
   0x6   : > { %p49_p2 = scmp.eq.s32.totalorder %s3777_s12, 0  ;;  %s41_s18 = sadd.s32 1, %s3757_s7 }
   0x7   : > { %s5088_s13 = smov (%p28_p0, %s26_s13), 0  ;;  %s5090_s14 = smov (!%p28_p0, %s30_s14), %s3773_s11 }
   0x8   : > { %p50_p3 = por %p49_p2, %p48_p1  ;;  %p32_p4 = scmp.ge.s32.totalorder %s5090_s14, 2 }
   0x9   : > { %s35_s15 = ssub.s32 %s3769_s10, %s5088_s13  ;;  %p3202_p6 = scmp.ge.s32.totalorder %s3777_s12, 8 }
   0xa   : > { %s5092_s14 = smov (%p32_p4, %s5090_s14), 0 }
   0xb   : > { %s34_s16 = ssub.s32 %s3773_s11, %s5092_s14  ;;  %104 = sbr.rel (%p3202_p6) target bundleno = 47 (0x2f), region = 16 }
   0xc   : > { %s36_s17 = sor.u32 %s35_s15, %s34_s16 }
   0xd   : > { %p39_p5 = scmp.eq.s32.totalorder %s36_s17, 0 }
   0xf   : > { %s3854_s19 = scalar_select %p39_p5, %s3757_s7, %s41_s18  }
  0x10   : > { %107 = sbr.rel (!%p50_p3) target bundleno = 47 (0x2f), region = 20  ;;  %s109_s20 = sand.u32 (%p50_p3), 1, %s3757_s7  }
  0x11   : > { %s3382_s21 = sshll.u32 (%p50_p3), %s3769_s10, 3  ;;  %s3395_s22 = smul.u32 (%p50_p3), 192, %s109_s20 }
  0x12   : > { %s3205_s23 = sshll.u32 (%p50_p3), %s3773_s11, 5 }
  0x13   : > { %s117_s24 = sadd.s32 (%p50_p3), %s3382_s21, %s3205_s23  ;;  %s3868_s29 = scalar_lea.vmem (%p50_p3), [#allocation6], %s3395_s22 }
  0x14   : > { %s3206_s25 = sshll.u32 (%p50_p3), %s117_s24, 3 }
  0x15   : > { %s3863_s28 = scalar_lea.vmem %s5073_s0, %s3206_s25 }
  0x16   : > { %v194_v0 = vld [vmem:[%s3863_s28] sm:$0xff]  ;;  %v196_v1 = vld [vmem:[%s3863_s28 + $0x8] sm:$0xff]  ;;  %v198_v2 = vld [vmem:[%s3863_s28 + $0x10] sm:$0xff] }
  0x17   : > { %195 = vst [vmem:[%s3868_s29] sm:$0xff] %v194_v0  ;;  %v200_v3 = vld [vmem:[%s3863_s28 + $0x18] sm:$0xff]  ;;  %v202_v4 = vld [vmem:[%s3863_s28 + $0x20] sm:$0xff]  ;;  %v204_v5 = vld [vmem:[%s3863_s28 + $0x28] sm:$0xff] }
  0x18   : > { %197 = vst [vmem:[%s3868_s29 + $0x8] sm:$0xff] %v196_v1  ;;  %v206_v6 = vld [vmem:[%s3863_s28 + $0x30] sm:$0xff]  ;;  %v208_v7 = vld [vmem:[%s3863_s28 + $0x38] sm:$0xff]  ;;  %v210_v8 = vld [vmem:[%s3863_s28 + $0x200] sm:$0xff] }
  0x19   : > { %199 = vst [vmem:[%s3868_s29 + $0x10] sm:$0xff] %v198_v2  ;;  %v212_v9 = vld [vmem:[%s3863_s28 + $0x208] sm:$0xff]  ;;  %v214_v10 = vld [vmem:[%s3863_s28 + $0x210] sm:$0xff]  ;;  %v216_v11 = vld [vmem:[%s3863_s28 + $0x218] sm:$0xff] }
  0x1a   : > { %201 = vst [vmem:[%s3868_s29 + $0x18] sm:$0xff] %v200_v3  ;;  %v218_v12 = vld [vmem:[%s3863_s28 + $0x220] sm:$0xff]  ;;  %v220_v13 = vld [vmem:[%s3863_s28 + $0x228] sm:$0xff]  ;;  %v222_v14 = vld [vmem:[%s3863_s28 + $0x230] sm:$0xff] }
  0x1b   : > { %203 = vst [vmem:[%s3868_s29 + $0x20] sm:$0xff] %v202_v4  ;;  %v224_v15 = vld [vmem:[%s3863_s28 + $0x238] sm:$0xff]  ;;  %v226_v16 = vld [vmem:[%s3863_s28 + $0x400] sm:$0xff]  ;;  %v228_v17 = vld [vmem:[%s3863_s28 + $0x408] sm:$0xff] }
  0x1c   : > { %205 = vst [vmem:[%s3868_s29 + $0x28] sm:$0xff] %v204_v5  ;;  %v230_v18 = vld [vmem:[%s3863_s28 + $0x410] sm:$0xff]  ;;  %v232_v19 = vld [vmem:[%s3863_s28 + $0x418] sm:$0xff]  ;;  %v234_v20 = vld [vmem:[%s3863_s28 + $0x420] sm:$0xff] }
  0x1d   : > { %207 = vst [vmem:[%s3868_s29 + $0x30] sm:$0xff] %v206_v6  ;;  %v236_v21 = vld [vmem:[%s3863_s28 + $0x428] sm:$0xff]  ;;  %v238_v22 = vld [vmem:[%s3863_s28 + $0x430] sm:$0xff]  ;;  %v240_v23 = vld [vmem:[%s3863_s28 + $0x438] sm:$0xff] }
  0x1e   : > { %209 = vst [vmem:[%s3868_s29 + $0x38] sm:$0xff] %v208_v7 }
  0x1f   : > { %211 = vst [vmem:[%s3868_s29 + $0x40] sm:$0xff] %v210_v8 }
  0x20   : > { %213 = vst [vmem:[%s3868_s29 + $0x48] sm:$0xff] %v212_v9 }
  0x21   : > { %215 = vst [vmem:[%s3868_s29 + $0x50] sm:$0xff] %v214_v10 }
  0x22   : > { %217 = vst [vmem:[%s3868_s29 + $0x58] sm:$0xff] %v216_v11 }
  0x23   : > { %219 = vst [vmem:[%s3868_s29 + $0x60] sm:$0xff] %v218_v12 }
  0x24   : > { %221 = vst [vmem:[%s3868_s29 + $0x68] sm:$0xff] %v220_v13 }
  0x25   : > { %223 = vst [vmem:[%s3868_s29 + $0x70] sm:$0xff] %v222_v14 }
  0x26   : > { %225 = vst [vmem:[%s3868_s29 + $0x78] sm:$0xff] %v224_v15 }
  0x27   : > { %227 = vst [vmem:[%s3868_s29 + $0x80] sm:$0xff] %v226_v16 }
  0x28   : > { %229 = vst [vmem:[%s3868_s29 + $0x88] sm:$0xff] %v228_v17 }
  0x29   : > { %231 = vst [vmem:[%s3868_s29 + $0x90] sm:$0xff] %v230_v18 }
  0x2a   : > { %233 = vst [vmem:[%s3868_s29 + $0x98] sm:$0xff] %v232_v19 }
  0x2b   : > { %235 = vst [vmem:[%s3868_s29 + $0xa0] sm:$0xff] %v234_v20 }
  0x2c   : > { %237 = vst [vmem:[%s3868_s29 + $0xa8] sm:$0xff] %v236_v21 }
  0x2d   : > { %239 = vst [vmem:[%s3868_s29 + $0xb0] sm:$0xff] %v238_v22 }
  0x2e   : > { %241 = vst [vmem:[%s3868_s29 + $0xb8] sm:$0xff] %v240_v23 }
  0x2f PF: > { %p3207_p7 = scmp.ge.s32.totalorder %s3777_s12, 1  ;;  %p246_p8 = scmp.lt.s32.totalorder %s3777_s12, 9 }
  0x31   : > { %p247_p9 = pnand %p3207_p7, %p246_p8 }
  0x32   : > { %s253_s30 = sand.u32 (!%p247_p9), 1, %s3753_s6   ;;  %s3779_s4 = smov (!%p247_p9), 124  }
  0x33   : > { %250 = sbr.rel (%p247_p9) target bundleno = 5544 (0x15a8), region = 58  ;;  %s3780_s5 = smov (!%p247_p9), 120  }
  0x34   : > { %s3396_s2 = smul.u32 (!%p247_p9), 192, %s253_s30  ;;  %s3781_s6 = smov (!%p247_p9), 116  }
  0x35   : > { %s3782_s15 = smov (!%p247_p9), 112   ;;  %s3783_s16 = smov (!%p247_p9), 108  }
  0x36   : > { %s3918_s3 = scalar_lea.vmem (!%p247_p9), [#allocation6], %s3396_s2  ;;  %s3784_s17 = smov (!%p247_p9), 100  }
  0x37   : > { %s3785_s18 = smov (!%p247_p9), 104   ;;  %s3786_s20 = smov (!%p247_p9), 12  }
  0x38   : > { %vm303_vm0 = vcmask 254976   ;;  %vm320_vm1 = vcmask 257026   ;;  %v3213_v24 = vld [vmem:[%s3918_s3 + $0x80] sm:$0xf]  ;;  %v3216_v25 = vld [vmem:[%s3918_s3 + $0x90] sm:$0xf] }
  0x39   : > { %v3219_v26 = vld [vmem:[%s3918_s3 + $0xa0] sm:$0xf]  ;;  %v311_v27 = vpack.c.bf16 %v3213_v24, %v3213_v24  ;;  %v331_v28 = vpack.c.bf16 %v3216_v25, %v3216_v25  ;;  %v3222_v30 = vld [vmem:[%s3918_s3 + $0xb0] sm:$0xf]  ;;  %vm387_vm2 = vcmask 31744   ;;  %vm408_vm3 = vcmask 130048  }
  0x3a   : > { %v347_v29 = vpack.c.bf16 %v3219_v26, %v3219_v26  ;;  %v3212_v31 = vld [vmem:[%s3918_s3 + $0x40] sm:$0xf]  ;;  %v3215_v32 = vld [vmem:[%s3918_s3 + $0x50] sm:$0xf]  ;;  %v366_v33 = vpack.c.bf16 %v3222_v30, %v3222_v30  ;;  %v3254_v62 = vld [vmem:[%s3918_s3 + $0x44] sm:$0xf] }
  0x3b   : > { %v324_v34 = vpack.c.bf16 %v3215_v32, %v3215_v32  ;;  %v3218_v35 = vld [vmem:[%s3918_s3 + $0x60] sm:$0xf]  ;;  %v3221_v36 = vld [vmem:[%s3918_s3 + $0x70] sm:$0xf]  ;;  %312 = vst.msk [vmem:[#allocation4] sm:$0x3] %vm303_vm0, %v311_v27  ;;  %v307_v39 = vpack.c.bf16 %v3212_v31, %v3212_v31  ;;  %v1020_v1 = vpack.c.bf16 %v3254_v62, %v3254_v62 }
  0x3c   : > { %v300_v37 = vld [vmem:[%s3918_s3] sm:$0xf]  ;;  %v333_v38 = vrot.slane %v331_v28, 6  ;;  %v359_v40 = vpack.c.bf16 %v3221_v36, %v3221_v36  ;;  %v3214_v42 = vld [vmem:[%s3918_s3 + $0x10] sm:$0xf]  ;;  %v368_v43 = vrot.slane %v366_v33, 6  ;;  %v343_v46 = vpack.c.bf16 %v3218_v35, %v3218_v35 }
  0x3d   : > { %v301_v41 = vmul.f32 0.5, %v300_v37  ;;  %348 = vst.msk [vmem:[#allocation4 + $0x4] sm:$0x3] %vm303_vm0, %v347_v29  ;;  %v326_v44 = vrot.slane %v324_v34, 6  ;;  %v315_v45 = vmul.f32 0.5, %v3214_v42  ;;  %s3787_s21 = smov 4  }
  0x3e   : > { %335 = vst.msk [vmem:[#allocation4] sm:$0xc] %vm320_vm1, %v333_v38  ;;  %v3217_v47 = vld [vmem:[%s3918_s3 + $0x20] sm:$0xf]  ;;  %v361_v48 = vrot.slane %v359_v40, 6  ;;  %s5077_s22 = smov 20  }
  0x3f   : > { %370 = vst.msk [vmem:[#allocation4 + $0x4] sm:$0xc] %vm320_vm1, %v368_v43  ;;  %v316_v49 = vpack.c.bf16 %v315_v45, %v315_v45  ;;  %v338_v50 = vmul.f32 0.5, %v3217_v47  ;;  %v3220_v51 = vld [vmem:[%s3918_s3 + $0x30] sm:$0xf]  ;;  %v302_v52 = vpack.c.bf16 %v301_v41, %v301_v41  ;;  %s5075_s23 = smov 28  }
  0x40   : > { %308 = vst.msk [vmem:[#allocation3] sm:$0x3] %vm303_vm0, %v307_v39  ;;  %v351_v53 = vmul.f32 0.5, %v3220_v51  ;;  %v3257_v63 = vld [vmem:[%s3918_s3 + $0x54] sm:$0xf]  ;;  %vm532_vm4 = vcmask 64544  }
  0x41   : > { %328 = vst.msk [vmem:[#allocation3] sm:$0xc] %vm320_vm1, %v326_v44  ;;  %v318_v54 = vrot.slane %v316_v49, 6  ;;  %v339_v55 = vpack.c.bf16 %v338_v50, %v338_v50  ;;  %v3260_v0 = vld [vmem:[%s3918_s3 + $0x64] sm:$0xf]  ;;  %v1033_v2 = vpack.c.bf16 %v3257_v63, %v3257_v63  ;;  %s3790_s24 = smov 8  }
  0x42   : > { %344 = vst.msk [vmem:[#allocation3 + $0x4] sm:$0x3] %vm303_vm0, %v343_v46  ;;  %v352_v56 = vpack.c.bf16 %v351_v53, %v351_v53  ;;  %v1049_v3 = vpack.c.bf16 %v3260_v0, %v3260_v0  ;;  %v3263_v4 = vld [vmem:[%s3918_s3 + $0x74] sm:$0xf]  ;;  %v3296_v5 = vld [vmem:[%s3918_s3 + $0x48] sm:$0xf] }
  0x43   : > { %363 = vst.msk [vmem:[#allocation3 + $0x4] sm:$0xc] %vm320_vm1, %v361_v48  ;;  %v3299_v6 = vld [vmem:[%s3918_s3 + $0x58] sm:$0xf]  ;;  %v1062_v7 = vpack.c.bf16 %v3263_v4, %v3263_v4  ;;  %v1035_v9 = vrot.slane %v1033_v2, 6  ;;  %v1709_v10 = vpack.c.bf16 %v3296_v5, %v3296_v5  ;;  %s3791_s25 = smov 16  }
  0x44   : > { %304 = vst.msk [vmem:[#allocation2] sm:$0x3] %vm303_vm0, %v302_v52  ;;  %v354_v57 = vrot.slane %v352_v56, 6  ;;  %v1722_v8 = vpack.c.bf16 %v3299_v6, %v3299_v6  ;;  %v3305_v13 = vld [vmem:[%s3918_s3 + $0x78] sm:$0xf]  ;;  %vm610_vm5 = vcmask 97344  }
  0x45   : > { %321 = vst.msk [vmem:[#allocation2] sm:$0xc] %vm320_vm1, %v318_v54  ;;  %v1064_v11 = vrot.slane %v1062_v7, 6  ;;  %v3302_v14 = vld [vmem:[%s3918_s3 + $0x68] sm:$0xf]  ;;  %v1751_v15 = vpack.c.bf16 %v3305_v13, %v3305_v13  ;;  %vm688_vm6 = vcmask 130144  }
  0x46   : > { %v3942_v58 = vld [vmem:[#allocation4] sm:$0xff]  ;;  %340 = vst.msk [vmem:[#allocation2 + $0x4] sm:$0x3] %vm303_vm0, %v339_v55  ;;  %v1724_v12 = vrot.slane %v1722_v8, 6  ;;  %v3255_v16 = vld [vmem:[%s3918_s3 + $0x84] sm:$0xf]  ;;  %v1738_v22 = vpack.c.bf16 %v3302_v14, %v3302_v14 }
  0x47   : > { %356 = vst.msk [vmem:[#allocation2 + $0x4] sm:$0xc] %vm320_vm1, %v354_v57  ;;  %504 = vrot.lane.b32.xlu1 %v3942_v58, %s3779_s4  ;;  %448 = vmatpush.bf16.msra.mxu1 %v3942_v58  ;;  %v3258_v17 = vld [vmem:[%s3918_s3 + $0x94] sm:$0xf]  ;;  %v1023_v18 = vpack.c.bf16 %v3255_v16, %v3255_v16  ;;  %v3261_v20 = vld [vmem:[%s3918_s3 + $0xa4] sm:$0xf] }
  0x48   : > { %v1039_v19 = vpack.c.bf16 %v3258_v17, %v3258_v17  ;;  %v3264_v21 = vld [vmem:[%s3918_s3 + $0xb4] sm:$0xf]  ;;  %v1052_v23 = vpack.c.bf16 %v3261_v20, %v3261_v20  ;;  %v3297_v25 = vld [vmem:[%s3918_s3 + $0x88] sm:$0xf]  ;;  %v3300_v26 = vld [vmem:[%s3918_s3 + $0x98] sm:$0xf] }
  0x49   : > { %v1068_v24 = vpack.c.bf16 %v3264_v21, %v3264_v21  ;;  %v1753_v27 = vrot.slane %v1751_v15, 6  ;;  %1024 = vst.msk [vmem:[#allocation4] sm:$0x3] %vm303_vm0, %v1023_v18  ;;  %v1728_v29 = vpack.c.bf16 %v3300_v26, %v3300_v26  ;;  %v3306_v30 = vld [vmem:[%s3918_s3 + $0xb8] sm:$0xf]  ;;  %v1712_v36 = vpack.c.bf16 %v3297_v25, %v3297_v25  ;;  %s3792_s26 = smov 24  }
  0x4a   : > { %v3949_v59 = vld [vmem:[#allocation3] sm:$0xff]  ;;  %v1041_v28 = vrot.slane %v1039_v19, 6  ;;  %1053 = vst.msk [vmem:[#allocation4 + $0x4] sm:$0x3] %vm303_vm0, %v1052_v23  ;;  %v3256_v34 = vld [vmem:[%s3918_s3 + $0x14] sm:$0xf]  ;;  %v1757_v46 = vpack.c.bf16 %v3306_v30, %v3306_v30 }
  0x4b   : > { %459 = vrot.lane.b32.xlu2 %v3949_v59, %s3779_s4  ;;  %v392_v60 = vsel %vm387_vm2, %v3949_v59, 0  ;;  %1021 = vst.msk [vmem:[#allocation3] sm:$0x3] %vm303_vm0, %v1020_v1  ;;  %v1015_v31 = vld [vmem:[%s3918_s3 + $0x4] sm:$0xf]  ;;  %v1070_v32 = vrot.slane %v1068_v24, 6 }
  0x4c   : > { %401 = vmatpush.bf16.xpose.msra.mxu0 %v392_v60  ;;  %1050 = vst.msk [vmem:[#allocation3 + $0x4] sm:$0x3] %vm303_vm0, %v1049_v3  ;;  %v1016_v33 = vmul.f32 0.5, %v1015_v31  ;;  %v1730_v37 = vrot.slane %v1728_v29, 6  ;;  %v1026_v38 = vmul.f32 0.5, %v3256_v34  ;;  %v1759_v0 = vrot.slane %v1757_v46, 6 }
  0x4d   : > { %1037 = vst.msk [vmem:[#allocation3] sm:$0xc] %vm320_vm1, %v1035_v9  ;;  %v3259_v39 = vld [vmem:[%s3918_s3 + $0x24] sm:$0xf]  ;;  %v3262_v40 = vld [vmem:[%s3918_s3 + $0x34] sm:$0xf] }
  0x4e   : > { %v3955_v61 = vld [vmem:[#allocation2] sm:$0xff]  ;;  %1066 = vst.msk [vmem:[#allocation3 + $0x4] sm:$0xc] %vm320_vm1, %v1064_v11  ;;  %v1017_v41 = vpack.c.bf16 %v1016_v33, %v1016_v33  ;;  %v1027_v42 = vpack.c.bf16 %v1026_v38, %v1026_v38  ;;  %v1045_v43 = vmul.f32 0.5, %v3259_v39  ;;  %v1055_v44 = vmul.f32 0.5, %v3262_v40  ;;  %s3208_s27 = sshll.u32 %s3761_s8, 2 }
  0x4f   : > { %537 = vrot.lane.b32.xlu1 %v3949_v59, %s3780_s5  ;;  %535 = vrot.lane.b32.xlu0 %v3955_v61, %s3780_s5  ;;  %1710 = vst.msk [vmem:[#allocation3] sm:$0x3] %vm303_vm0, %v1709_v10  ;;  %v1704_v45 = vld [vmem:[%s3918_s3 + $0x8] sm:$0xf]  ;;  %v3298_v48 = vld [vmem:[%s3918_s3 + $0x18] sm:$0xf] }
  0x50   : > { %1726 = vst.msk [vmem:[#allocation3] sm:$0xc] %vm320_vm1, %v1724_v12  ;;  %v1705_v47 = vmul.f32 0.5, %v1704_v45  ;;  %v3303_v49 = vld [vmem:[%s3918_s3 + $0xa8] sm:$0xf]  ;;  %v1029_v50 = vrot.slane %v1027_v42, 6  ;;  %v1046_v51 = vpack.c.bf16 %v1045_v43, %v1045_v43  ;;  %v1056_v52 = vpack.c.bf16 %v1055_v44, %v1055_v44 }
  0x51   : > { %1043 = vst.msk [vmem:[#allocation4] sm:$0xc] %vm320_vm1, %v1041_v28  ;;  %v1715_v53 = vmul.f32 0.5, %v3298_v48  ;;  %v3304_v54 = vld [vmem:[%s3918_s3 + $0x38] sm:$0xf]  ;;  %v1741_v63 = vpack.c.bf16 %v3303_v49, %v3303_v49  ;;  %vm766_vm7 = vcmask 162944  }
  0x52   : > { %1072 = vst.msk [vmem:[#allocation4 + $0x4] sm:$0xc] %vm320_vm1, %v1070_v32  ;;  %v1058_v55 = vrot.slane %v1056_v52, 6  ;;  %v1706_v56 = vpack.c.bf16 %v1705_v47, %v1705_v47  ;;  %v3301_v60 = vld [vmem:[%s3918_s3 + $0x28] sm:$0xf]  ;;  %v1744_v62 = vmul.f32 0.5, %v3304_v54 }
  0x53   : > { %457 = vrot.lane.b32.xlu2 %v3955_v61, %s3779_s4  ;;  %3231 = vmatmul.msk.bf16.vlgmr.msra.gmra.mxu0 %vm387_vm2, %v3955_v61  ;;  %1713 = vst.msk [vmem:[#allocation4] sm:$0x3] %vm303_vm0, %v1712_v36  ;;  %v1716_v57 = vpack.c.bf16 %v1715_v53, %v1715_v53  ;;  %v1734_v2 = vmul.f32 0.5, %v3301_v60  ;;  %vm844_vm8 = vcmask 195744   ;;  %p285_p10 = scmp.lt.s32.totalorder %s3765_s9, 1  ;;  %p287_p11 = scmp.lt.s32.totalorder %s3208_s27, 15 }
  0x54   : > { %1732 = vst.msk [vmem:[#allocation4] sm:$0xc] %vm320_vm1, %v1730_v37  ;;  %v1745_v4 = vpack.c.bf16 %v1744_v62, %v1744_v62  ;;  %vm922_vm9 = vcmask 228544   ;;  %vm1000_vm10 = vcmask 261344   ;;  %vm1004_vm11 = vcmask 257024  }
  0x55   : > { %1018 = vst.msk [vmem:[#allocation2] sm:$0x3] %vm303_vm0, %v1017_v41  ;;  %v1718_v1 = vrot.slane %v1716_v57, 6  ;;  %v1735_v5 = vpack.c.bf16 %v1734_v2, %v1734_v2  ;;  %s5094_s9 = smov (!%p285_p10, %s3765_s9), 1  ;;  %s5096_s27 = smov (!%p287_p11, %s3208_s27), 15 }
  0x56   : > { %1031 = vst.msk [vmem:[#allocation2] sm:$0xc] %vm320_vm1, %v1029_v50  ;;  %v1747_v6 = vrot.slane %v1745_v4, 6  ;;  %s3209_s28 = sshll.u32 %s5096_s27, 1  ;;  %s3210_s29 = sshll.u32 %s5094_s9, 5 }
  0x57   : > { %615 = vrot.lane.b32.xlu1 %v3949_v59, %s3781_s6  ;;  %691 = vrot.lane.b32.xlu0 %v3955_v61, %s3782_s15  ;;  %v4000_v35 = vld [vmem:[#allocation3] sm:$0xff]  ;;  %1047 = vst.msk [vmem:[#allocation2 + $0x4] sm:$0x3] %vm303_vm0, %v1046_v51  ;;  %s294_s30 = sadd.s32 %s3210_s29, %s3209_s28  ;;  %s5079_s9 = smov 20  }
  0x58   : > { %1739 = vst.msk [vmem:[#allocation3 + $0x4] sm:$0x3] %vm303_vm0, %v1738_v22  ;;  %s3211_s8 = sshll.u32 %s294_s30, 3 }
  0x59   : > { %1755 = vst.msk [vmem:[#allocation3 + $0x4] sm:$0xc] %vm320_vm1, %v1753_v27 }
  0x5a   : > { %1060 = vst.msk [vmem:[#allocation2 + $0x4] sm:$0xc] %vm320_vm1, %v1058_v55 }
  0x5b   : > { %582 = vrot.lane.b32.xlu2 %v3942_v58, %s3780_s5  ;;  %v4025_v3 = vld [vmem:[#allocation4] sm:$0xff]  ;;  %1707 = vst.msk [vmem:[#allocation2] sm:$0x3] %vm303_vm0, %v1706_v56 }
  0x5c   : > { %1742 = vst.msk [vmem:[#allocation4 + $0x4] sm:$0x3] %vm303_vm0, %v1741_v63 }
  0x5d   : > { %1761 = vst.msk [vmem:[#allocation4 + $0x4] sm:$0xc] %vm320_vm1, %v1759_v0 }
  0x5e   : > { %1720 = vst.msk [vmem:[#allocation2] sm:$0xc] %vm320_vm1, %v1718_v1 }
  0x5f   : > { %771 = vrot.lane.b32.xlu0 %v3949_v59, %s3783_s16  ;;  %927 = vrot.lane.b32.xlu1 %v3949_v59, %s3784_s17 }
  0x63   : > { %613 = vrot.lane.b32.xlu2 %v3955_v61, %s3781_s6 }
  0x65   : > { %v4037_v7 = vld [vmem:[#allocation2] sm:$0xff] }
  0x66   : > { %1736 = vst.msk [vmem:[#allocation2 + $0x4] sm:$0x3] %vm303_vm0, %v1735_v5 }
  0x67   : > { %847 = vrot.lane.b32.xlu0 %v3955_v61, %s3785_s18  ;;  %1159 = vrot.lane.b32.xlu1 %v4000_v35, %s3779_s4  ;;  %1749 = vst.msk [vmem:[#allocation2 + $0x4] sm:$0xc] %vm320_vm1, %v1747_v6 }
  0x6b   : > { %660 = vrot.lane.b32.xlu2 %v3942_v58, %s3781_s6 }
  0x6f   : > { %894 = vrot.lane.b32.xlu0 %v3942_v58, %s3785_s18  ;;  %1204 = vrot.lane.b32.xlu1 %v4025_v3, %s3779_s4 }
  0x73   : > { %693 = vrot.lane.b32.xlu2 %v3949_v59, %s3782_s15 }
  0x77   : > { %925 = vrot.lane.b32.xlu0 %v3955_v61, %s3784_s17  ;;  %1234 = vrot.lane.b32.xlu1 %v4037_v7, %s3780_s5 }
  0x7b   : > { %738 = vrot.lane.b32.xlu2 %v3942_v58, %s3782_s15 }
  0x7f   : > { %1157 = vrot.lane.b32.xlu0 %v4037_v7, %s3779_s4  ;;  %1236 = vrot.lane.b32.xlu1 %v4000_v35, %s3780_s5 }
  0x83   : > { %769 = vrot.lane.b32.xlu2 %v3955_v61, %s3783_s16 }
  0x87   : > { %1281 = vrot.lane.b32.xlu0 %v4025_v3, %s3780_s5  ;;  %1311 = vrot.lane.b32.xlu1 %v4037_v7, %s3781_s6 }
  0x8b   : > { %816 = vrot.lane.b32.xlu2 %v3942_v58, %s3783_s16 }
  0x8f   : > { %1313 = vrot.lane.b32.xlu0 %v4000_v35, %s3781_s6 }
  0x93   : > { %849 = vrot.lane.b32.xlu2 %v3949_v59, %s3785_s18 }
  0x9b   : > { %972 = vrot.lane.b32.xlu2 %v3942_v58, %s3784_s17 }
  0xa5   : > { %v460_v8 = vpop.permute.xlu2 %459 }
  0xa6   : > { %v465_v61 = vsel %vm387_vm2, %v460_v8, 0 }
  0xa7   : > { %474 = vmatpush.bf16.xpose.msra.mxu2 %v465_v61 }
  0xad   : > { %v458_v9 = vpop.permute.xlu2 %457 }
  0xae   : > { %3237 = vmatmul.msk.bf16.vlgmr.msra.gmra.mxu2 %vm387_vm2, %v458_v9 }
  0xb5   : > { %v583_v10 = vpop.permute.xlu2 %582 }
  0xb9   : > { %v505_v11 = vpop.permute.xlu1 %504 }
  0xba   : > { %517 = vmatpush.bf16.msra.mxu3 %v505_v11 }
  0xbd   : > { %v614_v12 = vpop.permute.xlu2 %613 }
  0xbe   : > { %595 = vmatpush.bf16.msrb.mxu3 %v583_v10 }
  0xc1   : > { %v538_v13 = vpop.permute.xlu1 %537  ;;  %v4069_v14 = vpop.permute.xlu0 %535 }
  0xc2   : > { %v543_v59 = vsel %vm387_vm2, %v538_v13, 0 }
  0xc3   : > { %552 = vmatpush.bf16.xpose.msrb.mxu1 %v543_v59 }
  0xc5   : > { %v661_v15 = vpop.permute.xlu2 %660 }
  0xc6   : > { %673 = vmatpush.bf16.msrb.mxu2 %v661_v15 }
  0xc9   : > { %v616_v58 = vpop.permute.xlu1 %615  ;;  %v4072_v16 = vpop.permute.xlu0 %691 }
  0xca   : > { %v621_v17 = vsel %vm387_vm2, %v616_v58, 0 }
  0xcb   : > { %630 = vmatpush.bf16.xpose.msrb.mxu0 %v621_v17 }
  0xcd   : > { %v4075_v18 = vpop.permute.xlu2 %693 }
  0xd0   : > { %v403_v19 = vpop.f32.mrf.mxu0 }
  0xd1   : > { %v409_v20 = vsel %vm408_vm3, %v403_v19, -inf  ;;  %v772_v21 = vpop.permute.xlu0 %771  ;;  %v928_v22 = vpop.permute.xlu1 %927 }
  0xd2   : > { %410 = vmax.xlane.f32.xlu0 %v409_v20  ;;  %3241 = vmatmul.msk.bf16.vlgmr.msrb.gmra.mxu0 %vm387_vm2, %v614_v12  ;;  %v777_v23 = vsel %vm387_vm2, %v772_v21, 0  ;;  %v933_v24 = vsel %vm387_vm2, %v928_v22, 0 }
  0xd3   : > { %786 = vmatpush.bf16.xpose.msra.mxu0 %v777_v23 }
  0xd5   : > { %v4081_v25 = vpop.permute.xlu2 %738 }
  0xd8   : > { %v405_v26 = vpop.f32.mrf.mxu0 }
  0xd9   : > { %v412_v27 = vsel %vm408_vm3, %v405_v26, -inf  ;;  %v4084_v28 = vpop.permute.xlu0 %847  ;;  %v1160_v30 = vpop.permute.xlu1 %1159 }
  0xda   : > { %413 = vmax.xlane.f32.xlu0 %v412_v27  ;;  %v1165_v31 = vsel %vm387_vm2, %v1160_v30, 0 }
  0xdb   : > { %942 = vmatpush.bf16.xpose.msrb.mxu0 %v933_v24 }
  0xdd   : > { %v770_v29 = vpop.permute.xlu2 %769 }
  0xe1   : > { %v4087_v32 = vpop.permute.xlu0 %894  ;;  %v4090_v34 = vpop.permute.xlu1 %1204 }
  0xe2   : > { %3245 = vmatmul.msk.bf16.vlgmr.msra.gmra.mxu0 %vm387_vm2, %v770_v29 }
  0xe3   : > { %1174 = vmatpush.bf16.xpose.msra.mxu0 %v1165_v31 }
  0xe5   : > { %v817_v13 = vpop.permute.xlu2 %816 }
  0xe6   : > { %829 = vmatpush.bf16.msra.mxu2 %v817_v13 }
  0xe9   : > { %v926_v33 = vpop.permute.xlu0 %925  ;;  %v4095_v38 = vpop.permute.xlu1 %1234 }
  0xed   : > { %v4145_v22 = vpop.permute.xlu2 %849 }
  0xf1   : > { %v1158_v36 = vpop.permute.xlu0 %1157  ;;  %v4099_v41 = vpop.permute.xlu1 %1236 }
  0xf2   : > { %3249 = vmatmul.msk.bf16.vlgmr.msrb.gmra.mxu0 %vm387_vm2, %v926_v33 }
  0xf9   : > { %v4093_v37 = vpop.permute.xlu0 %1281  ;;  %v1312_v42 = vpop.permute.xlu1 %1311 }
 0x101   : > { %v1314_v39 = vpop.permute.xlu0 %1313 }
 0x102   : > { %3279 = vmatmul.msk.bf16.vlgmr.msra.gmra.mxu0 %vm387_vm2, %v1158_v36  ;;  %v1319_v40 = vsel %vm387_vm2, %v1314_v39, 0 }
 0x103   : > { %1328 = vmatpush.bf16.xpose.msrb.mxu0 %v1319_v40 }
 0x112   : > { %3283 = vmatmul.msk.bf16.vlgmr.msrb.gmra.mxu0 %vm387_vm2, %v1312_v42 }
 0x131   : > { %v476_v43 = vpop.f32.mrf.mxu2 }
 0x132   : > { %v481_v44 = vsel %vm408_vm3, %v476_v43, -inf }
 0x133   : > { %482 = vmax.xlane.f32.xlu0 %v481_v44 }
 0x139   : > { %v478_v53 = vpop.f32.mrf.mxu2 }
 0x13a   : > { %v484_v57 = vsel %vm408_vm3, %v478_v53, -inf }
 0x145   : > { %v411_v45 = vpop.xlane.xlu0 %410 }
 0x146   : > { %v415_v46 = vsub.f32 %v403_v19, %v411_v45 }
 0x148   : > { %v417_v47 = vmul.f32 1.442695, %v415_v46 }
 0x14a   : > { %3467 = vpow2.f32 %v417_v47 }
 0x14d   : > { %v414_v52 = vpop.xlane.xlu0 %413 }
 0x14e   : > { %v416_v55 = vsub.f32 %v405_v26, %v414_v52  ;;  %v4151_v26 = vpop.permute.xlu2 %972 }
 0x14f   : > { %v632_v48 = vpop.f32.mrf.mxu0 }
 0x150   : > { %v4103_v49 = vpop.eup %3467  ;;  %v637_v50 = vsel %vm408_vm3, %v632_v48, -inf  ;;  %v419_v60 = vmul.f32 1.442695, %v416_v55 }
 0x151   : > { %v421_v51 = vsel %vm408_vm3, %v4103_v49, 0.0  ;;  %638 = vmax.xlane.f32.xlu2 %v637_v50 }
 0x152   : > { %422 = vadd.xlane.f32.xlu1 %v421_v51  ;;  %3469 = vpow2.f32 %v419_v60 }
 0x157   : > { %v634_v54 = vpop.f32.mrf.mxu0 }
 0x158   : > { %v640_v56 = vsel %vm408_vm3, %v634_v54, -inf  ;;  %v4111_v0 = vpop.eup %3469 }
 0x159   : > { %641 = vmax.xlane.f32.xlu0 %v640_v56  ;;  %v424_v4 = vsel %vm408_vm3, %v4111_v0, 0.0 }
 0x15a   : > { %485 = vmax.xlane.f32.xlu1 %v484_v57 }
 0x15f   : > { %v788_v62 = vpop.f32.mrf.mxu0 }
 0x160   : > { %v793_v63 = vsel %vm408_vm3, %v788_v62, -inf }
 0x162   : > { %794 = vmax.xlane.f32.xlu1 %v793_v63 }
 0x167   : > { %v4113_v1 = vpop.f32.mrf.mxu0 }
 0x168   : > { %v796_v2 = vsel %vm408_vm3, %v4113_v1, -inf }
 0x169   : > { %797 = vmax.xlane.f32.xlu2 %v796_v2 }
 0x16a   : > { %425 = vadd.xlane.f32.xlu1 %v424_v4 }
 0x16f   : > { %v4119_v5 = vpop.f32.mrf.mxu0 }
 0x170   : > { %v949_v6 = vsel %vm408_vm3, %v4119_v5, -inf }
 0x171   : > { %950 = vmax.xlane.f32.xlu0 %v949_v6 }
 0x177   : > { %v4123_v8 = vpop.f32.mrf.mxu0 }
 0x178   : > { %v952_v61 = vsel %vm408_vm3, %v4123_v8, -inf }
 0x179   : > { %953 = vmax.xlane.f32.xlu2 %v952_v61 }
 0x17f   : > { %v4127_v9 = vpop.f32.mrf.mxu0 }
 0x180   : > { %v1181_v10 = vsel %vm408_vm3, %v4127_v9, -inf }
 0x181   : > { %1182 = vmax.xlane.f32.xlu2 %v1181_v10 }
 0x187   : > { %v4131_v11 = vpop.f32.mrf.mxu0 }
 0x188   : > { %v1184_v12 = vsel %vm408_vm3, %v4131_v11, -inf }
 0x189   : > { %1185 = vmax.xlane.f32.xlu2 %v1184_v12 }
 0x18f   : > { %v4135_v59 = vpop.f32.mrf.mxu0 }
 0x190   : > { %v1335_v15 = vsel %vm408_vm3, %v4135_v59, -inf }
 0x191   : > { %1336 = vmax.xlane.f32.xlu0 %v1335_v15 }
 0x197   : > { %v4139_v58 = vpop.f32.mrf.mxu0 }
 0x198   : > { %v1338_v17 = vsel %vm408_vm3, %v4139_v58, -inf }
 0x199   : > { %1339 = vmax.xlane.f32.xlu2 %v1338_v17  ;;  %v699_v17 = vsel %vm387_vm2, %v4075_v18, 0 }
 0x1a5   : > { %1390 = vrot.lane.b32.xlu0 %v4000_v35, %s3782_s15 }
 0x1a6   : > { %v483_v19 = vpop.xlane.xlu0 %482 }
 0x1a7   : > { %v487_v20 = vsub.f32 %v476_v43, %v483_v19 }
 0x1a9   : > { %v489_v21 = vmul.f32 1.442695, %v487_v20 }
 0x1ab   : > { %3471 = vpow2.f32 %v489_v21 }
 0x1b1   : > { %v4147_v23 = vpop.eup %3471 }
 0x1b2   : > { %v493_v24 = vsel %vm408_vm3, %v4147_v23, 0.0 }
 0x1b3   : > { %494 = vadd.xlane.f32.xlu2 %v493_v24 }
 0x1c4   : > { %v639_v27 = vpop.xlane.xlu2 %638 }
 0x1c5   : > { %v423_v29 = vpop.xlane.xlu1 %422  ;;  %v643_v30 = vsub.f32 %v632_v48, %v639_v27 }
 0x1c7   : > { %v645_v31 = vmul.f32 1.442695, %v643_v30 }
 0x1c9   : > { %3473 = vpow2.f32 %v645_v31 }
 0x1cc   : > { %v642_v33 = vpop.xlane.xlu0 %641 }
 0x1cd   : > { %v486_v36 = vpop.xlane.xlu1 %485  ;;  %v644_v39 = vsub.f32 %v634_v54, %v642_v33 }
 0x1ce   : > { %v488_v40 = vsub.f32 %v478_v53, %v486_v36 }
 0x1cf   : > { %v4153_v42 = vpop.eup %3473  ;;  %v647_v43 = vmul.f32 1.442695, %v644_v39  ;;  %v1093_v39 = vsel %vm387_vm2, %v4000_v35, 0 }
 0x1d0   : > { %v491_v44 = vmul.f32 1.442695, %v488_v40  ;;  %v649_v45 = vsel %vm408_vm3, %v4153_v42, 0.0 }
 0x1d1   : > { %3475 = vpow2.f32 %v647_v43  ;;  %650 = vadd.xlane.f32.xlu1 %v649_v45 }
 0x1d2   : > { %3477 = vpow2.f32 %v491_v44 }
 0x1d5   : > { %v795_v46 = vpop.xlane.xlu1 %794 }
 0x1d6   : > { %v799_v47 = vsub.f32 %v788_v62, %v795_v46 }
 0x1d7   : > { %v4157_v50 = vpop.eup %3475 }
 0x1d8   : > { %v4159_v48 = vpop.eup %3477  ;;  %v801_v51 = vmul.f32 1.442695, %v799_v47  ;;  %v652_v52 = vsel %vm408_vm3, %v4157_v50, 0.0 }
 0x1d9   : > { %v496_v53 = vsel %vm408_vm3, %v4159_v48, 0.0  ;;  %653 = vadd.xlane.f32.xlu2 %v652_v52 }
 0x1da   : > { %3479 = vpow2.f32 %v801_v51  ;;  %497 = vadd.xlane.f32.xlu0 %v496_v53  ;;  %v1242_v51 = vsel %vm387_vm2, %v4099_v41, 0 }
 0x1db   : > { %3481 = vrcp.f32 %v423_v29  ;;  %v855_v29 = vsel %vm387_vm2, %v4145_v22, 0 }
 0x1dc   : > { %v798_v54 = vpop.xlane.xlu2 %797 }
 0x1dd   : > { %v800_v55 = vsub.f32 %v4113_v1, %v798_v54  ;;  %v426_v56 = vpop.xlane.xlu1 %425 }
 0x1de   : > { %3483 = vrcp.f32 %v426_v56 }
 0x1df   : > { %v803_v57 = vmul.f32 1.442695, %v800_v55 }
 0x1e0   : > { %v4166_v60 = vpop.eup %3479 }
 0x1e1   : > { %3485 = vpow2.f32 %v803_v57  ;;  %v805_v62 = vsel %vm408_vm3, %v4166_v60, 0.0  ;;  %v3482_v63 = vpop.eup %3481 }
 0x1e2   : > { %806 = vadd.xlane.f32.xlu0 %v805_v62  ;;  %v429_v61 = vmul.f32 %v3482_v63, %v4103_v49 }
 0x1e4   : > { %v3484_v2 = vpop.eup %3483  ;;  %v951_v4 = vpop.xlane.xlu0 %950 }
 0x1e5   : > { %v955_v6 = vsub.f32 %v4119_v5, %v951_v4  ;;  %v430_v10 = vmul.f32 %v3484_v2, %v4111_v0 }
 0x1e7   : > { %v4173_v1 = vpop.eup %3485  ;;  %v957_v12 = vmul.f32 1.442695, %v955_v6  ;;  %v431_v13 = vpack.c.bf16 %v430_v10, %v429_v61 }
 0x1e8   : > { %v808_v15 = vsel %vm408_vm3, %v4173_v1, 0.0 }
 0x1e9   : > { %3487 = vpow2.f32 %v957_v12  ;;  %3236 = vmatmul.msk.bf16.vlgmr.msra.gmra.mxu1 %vm408_vm3, %v431_v13  ;;  %809 = vadd.xlane.f32.xlu1 %v808_v15 }
 0x1ea   : > { %708 = vmatpush.bf16.xpose.msra.mxu1 %v699_v17 }
 0x1ec   : > { %v954_v5 = vpop.xlane.xlu2 %953 }
 0x1ed   : > { %v956_v49 = vsub.f32 %v4123_v8, %v954_v5 }
 0x1ef   : > { %v4181_v19 = vpop.eup %3487  ;;  %v959_v0 = vmul.f32 1.442695, %v956_v49 }
 0x1f0   : > { %v961_v20 = vsel %vm408_vm3, %v4181_v19, 0.0 }
 0x1f1   : > { %3489 = vpow2.f32 %v959_v0  ;;  %1358 = vrot.lane.b32.xlu2 %v4025_v3, %s3781_s6  ;;  %962 = vadd.xlane.f32.xlu1 %v961_v20 }
 0x1f4   : > { %v1183_v18 = vpop.xlane.xlu2 %1182 }
 0x1f5   : > { %v1187_v21 = vsub.f32 %v4127_v9, %v1183_v18 }
 0x1f7   : > { %v4188_v24 = vpop.eup %3489  ;;  %v1189_v27 = vmul.f32 1.442695, %v1187_v21 }
 0x1f8   : > { %v964_v8 = vsel %vm408_vm3, %v4188_v24, 0.0 }
 0x1f9   : > { %3491 = vpow2.f32 %v1189_v27  ;;  %3239 = vmatmul.msk.bf16.vlgmr.msrb.gmra.mxu1 %vm387_vm2, %v4069_v14  ;;  %965 = vadd.xlane.f32.xlu0 %v964_v8 }
 0x1fa   : > { %864 = vmatpush.bf16.xpose.msrb.mxu1 %v855_v29  ;;  %1388 = vrot.lane.b32.xlu2 %v4037_v7, %s3782_s15 }
 0x1fc   : > { %v1186_v31 = vpop.xlane.xlu2 %1185 }
 0x1ff   : > { %v4198_v30 = vpop.eup %3491 }
 0x200   : > { %v1193_v9 = vsel %vm408_vm3, %v4198_v30, 0.0 }
 0x201   : > { %1194 = vadd.xlane.f32.xlu0 %v1193_v9 }
 0x204   : > { %v1337_v33 = vpop.xlane.xlu0 %1336 }
 0x205   : > { %v1341_v36 = vsub.f32 %v4135_v59, %v1337_v33  ;;  %v1188_v59 = vsub.f32 %v4131_v11, %v1186_v31 }
 0x207   : > { %v1343_v22 = vmul.f32 1.442695, %v1341_v36  ;;  %v1191_v46 = vmul.f32 1.442695, %v1188_v59 }
 0x209   : > { %3493 = vpow2.f32 %v1343_v22  ;;  %3243 = vmatmul.msk.bf16.vlgmr.msra.gmra.mxu1 %vm387_vm2, %v4072_v16 }
 0x20a   : > { %1102 = vmatpush.bf16.xpose.msra.mxu1 %v1093_v39 }
 0x20c   : > { %v1340_v14 = vpop.xlane.xlu2 %1339 }
 0x20d   : > { %v1342_v40 = vsub.f32 %v4139_v58, %v1340_v14 }
 0x20f   : > { %v4208_v43 = vpop.eup %3493  ;;  %v1345_v44 = vmul.f32 1.442695, %v1342_v40 }
 0x210   : > { %v1347_v45 = vsel %vm408_vm3, %v4208_v43, 0.0 }
 0x211   : > { %3495 = vpow2.f32 %v1345_v44  ;;  %1348 = vadd.xlane.f32.xlu1 %v1347_v45 }
 0x212   : > { %3497 = vpow2.f32 %v1191_v46 }
 0x217   : > { %v4213_v47 = vpop.eup %3495  ;;  %v1391_v52 = vpop.permute.xlu0 %1390 }
 0x218   : > { %v1350_v16 = vsel %vm408_vm3, %v4213_v47, 0.0  ;;  %v4221_v58 = vpop.eup %3497  ;;  %v1396_v53 = vsel %vm387_vm2, %v1391_v52, 0 }
 0x219   : > { %3247 = vmatmul.msk.bf16.vlgmr.msrb.gmra.mxu1 %vm387_vm2, %v4084_v28  ;;  %1351 = vadd.xlane.f32.xlu0 %v1350_v16  ;;  %v1196_v11 = vsel %vm408_vm3, %v4221_v58, 0.0 }
 0x21a   : > { %1251 = vmatpush.bf16.xpose.msrb.mxu1 %v1242_v51 }
 0x223   : > { %1197 = vadd.xlane.f32.xlu2 %v1196_v11 }
 0x226   : > { %v495_v41 = vpop.xlane.xlu2 %494 }
 0x229   : > { %3273 = vmatmul.msk.bf16.vlgmr.msra.gmra.mxu1 %vm387_vm2, %v4037_v7 }
 0x22a   : > { %1405 = vmatpush.bf16.xpose.msra.mxu1 %v1396_v53 }
 0x239   : > { %3281 = vmatmul.msk.bf16.vlgmr.msrb.gmra.mxu1 %vm387_vm2, %v4095_v38 }
 0x244   : > { %v651_v28 = vpop.xlane.xlu1 %650 }
 0x245   : > { %3499 = vrcp.f32 %v651_v28 }
 0x246   : > { %3501 = vrcp.f32 %v495_v41 }
 0x24b   : > { %v3500_v56 = vpop.eup %3499 }
 0x24c   : > { %v654_v54 = vpop.xlane.xlu2 %653  ;;  %v3502_v57 = vpop.eup %3501  ;;  %v657_v2 = vmul.f32 %v3500_v56, %v4153_v42 }
 0x24d   : > { %v498_v55 = vpop.xlane.xlu0 %497  ;;  %3503 = vrcp.f32 %v654_v54  ;;  %v501_v61 = vmul.f32 %v3502_v57, %v4147_v23 }
 0x24e   : > { %3505 = vrcp.f32 %v498_v55 }
 0x253   : > { %v3504_v62 = vpop.eup %3503 }
 0x254   : > { %v3506_v63 = vpop.eup %3505  ;;  %v658_v4 = vmul.f32 %v3504_v62, %v4157_v50  ;;  %v1359_v6 = vpop.permute.xlu2 %1358 }
 0x255   : > { %v502_v38 = vmul.f32 %v3506_v63, %v4159_v48  ;;  %v807_v13 = vpop.xlane.xlu0 %806 }
 0x256   : > { %v659_v10 = vpack.c.bf16 %v658_v4, %v657_v2  ;;  %3507 = vrcp.f32 %v807_v13 }
 0x257   : > { %v503_v12 = vpack.c.bf16 %v502_v38, %v501_v61 }
 0x258   : > { %3242 = vmatmul.msk.bf16.vlgmr.msrb.gmra.mxu2 %vm408_vm3, %v659_v10 }
 0x259   : > { %3238 = vmatmul.msk.bf16.vlgmr.msra.gmra.mxu3 %vm408_vm3, %v503_v12  ;;  %985 = vmatpush.bf16.msrb.mxu2 %v4151_v26 }
 0x25a   : > { %751 = vmatpush.bf16.msra.mxu3 %v4081_v25 }
 0x25c   : > { %v810_v42 = vpop.xlane.xlu1 %809  ;;  %v1389_v15 = vpop.permute.xlu2 %1388 }
 0x25d   : > { %3509 = vrcp.f32 %v810_v42  ;;  %3285 = vmatmul.msk.bf16.vlgmr.msra.gmra.mxu1 %vm387_vm2, %v1389_v15  ;;  %v3508_v23 = vpop.eup %3507 }
 0x25e   : > { %v813_v48 = vmul.f32 %v3508_v23, %v4166_v60 }
 0x263   : > { %v3510_v50 = vpop.eup %3509 }
 0x264   : > { %v814_v17 = vmul.f32 %v3510_v50, %v4173_v1  ;;  %v963_v0 = vpop.xlane.xlu1 %962 }
 0x265   : > { %3511 = vrcp.f32 %v963_v0 }
 0x266   : > { %v815_v5 = vpack.c.bf16 %v814_v17, %v813_v48  ;;  %v450_v49 = vpop.f32.mrf.mxu1 }
 0x267   : > { %455 = vst.msk [vmem:[#allocation5] sm:$0xff] %vm387_vm2, %v450_v49 }
 0x268   : > { %3246 = vmatmul.msk.bf16.vlgmr.msra.gmra.mxu2 %vm408_vm3, %v815_v5 }
 0x269   : > { %1217 = vmatpush.bf16.msra.mxu2 %v4090_v34 }
 0x26b   : > { %v3512_v20 = vpop.eup %3511 }
 0x26c   : > { %v966_v25 = vpop.xlane.xlu0 %965  ;;  %v969_v60 = vmul.f32 %v3512_v20, %v4181_v19 }
 0x26d   : > { %3513 = vrcp.f32 %v966_v25 }
 0x26e   : > { %v452_v26 = vpop.f32.mrf.mxu1 }
 0x26f   : > { %456 = vst.msk [vmem:[#allocation5 + $0x8] sm:$0xff] %vm387_vm2, %v452_v26 }
 0x273   : > { %v3514_v18 = vpop.eup %3513 }
 0x274   : > { %v970_v1 = vmul.f32 %v3514_v18, %v4188_v24  ;;  %v1195_v33 = vpop.xlane.xlu0 %1194 }
 0x275   : > { %3515 = vrcp.f32 %v1195_v33 }
 0x276   : > { %v971_v21 = vpack.c.bf16 %v970_v1, %v969_v60  ;;  %v4247_v27 = vpop.f32.mrf.mxu1 }
 0x277   : > { %v559_v8 = vsel %vm408_vm3, %v4247_v27, -inf }
 0x278   : > { %560 = vmax.xlane.f32.xlu2 %v559_v8  ;;  %3250 = vmatmul.msk.bf16.vlgmr.msrb.gmra.mxu2 %vm408_vm3, %v971_v21 }
 0x279   : > { %1371 = vmatpush.bf16.msrb.mxu2 %v1359_v6 }
 0x27b   : > { %v3516_v14 = vpop.eup %3515 }
 0x27c   : > { %v1201_v44 = vmul.f32 %v3516_v14, %v4198_v30 }
 0x27e   : > { %v4252_v34 = vpop.f32.mrf.mxu1 }
 0x27f   : > { %v562_v29 = vsel %vm408_vm3, %v4252_v34, -inf }
 0x280   : > { %563 = vmax.xlane.f32.xlu0 %v562_v29 }
 0x284   : > { %v1349_v11 = vpop.xlane.xlu1 %1348 }
 0x286   : > { %v4256_v9 = vpop.f32.mrf.mxu1 }
 0x287   : > { %v715_v19 = vsel %vm408_vm3, %v4256_v9, -inf }
 0x288   : > { %716 = vmax.xlane.f32.xlu0 %v715_v19 }
 0x28c   : > { %v1352_v16 = vpop.xlane.xlu0 %1351 }
 0x28e   : > { %v4260_v24 = vpop.f32.mrf.mxu1 }
 0x28f   : > { %v718_v31 = vsel %vm408_vm3, %v4260_v24, -inf }
 0x290   : > { %719 = vmax.xlane.f32.xlu2 %v718_v31 }
 0x296   : > { %v4264_v36 = vpop.f32.mrf.mxu1  ;;  %v1198_v22 = vpop.xlane.xlu2 %1197 }
 0x297   : > { %3517 = vrcp.f32 %v1198_v22  ;;  %v871_v39 = vsel %vm408_vm3, %v4264_v36, -inf }
 0x298   : > { %872 = vmax.xlane.f32.xlu0 %v871_v39  ;;  %3519 = vrcp.f32 %v1352_v16 }
 0x299   : > { %3521 = vrcp.f32 %v1349_v11 }
 0x29d   : > { %v3518_v40 = vpop.eup %3517 }
 0x29e   : > { %v1202_v45 = vmul.f32 %v3518_v40, %v4221_v58  ;;  %v4270_v59 = vpop.f32.mrf.mxu1  ;;  %v3520_v58 = vpop.eup %3519 }
 0x29f   : > { %v874_v46 = vsel %vm408_vm3, %v4270_v59, -inf  ;;  %v3522_v53 = vpop.eup %3521  ;;  %v1356_v41 = vmul.f32 %v3520_v58, %v4213_v47 }
 0x2a0   : > { %v1203_v51 = vpack.c.bf16 %v1202_v45, %v1201_v44  ;;  %875 = vmax.xlane.f32.xlu2 %v874_v46  ;;  %v1355_v28 = vmul.f32 %v3522_v53, %v4208_v43 }
 0x2a2   : > { %3280 = vmatmul.msk.bf16.vlgmr.msra.gmra.mxu2 %vm408_vm3, %v1203_v51  ;;  %v1357_v56 = vpack.c.bf16 %v1356_v41, %v1355_v28 }
 0x2a6   : > { %v4275_v52 = vpop.f32.mrf.mxu1 }
 0x2a7   : > { %v1109_v30 = vsel %vm408_vm3, %v4275_v52, -inf }
 0x2a8   : > { %1110 = vmax.xlane.f32.xlu2 %v1109_v30 }
 0x2ae   : > { %v4281_v54 = vpop.f32.mrf.mxu1 }
 0x2af   : > { %v1112_v55 = vsel %vm408_vm3, %v4281_v54, -inf }
 0x2b0   : > { %1113 = vmax.xlane.f32.xlu0 %v1112_v55 }
 0x2b2   : > { %3284 = vmatmul.msk.bf16.vlgmr.msrb.gmra.mxu2 %vm408_vm3, %v1357_v56 }
 0x2b6   : > { %v4286_v57 = vpop.f32.mrf.mxu1 }
 0x2b7   : > { %v1258_v62 = vsel %vm408_vm3, %v4286_v57, -inf }
 0x2b8   : > { %1259 = vmax.xlane.f32.xlu2 %v1258_v62 }
 0x2be   : > { %v4290_v63 = vpop.f32.mrf.mxu1 }
 0x2bf   : > { %v1261_v43 = vsel %vm408_vm3, %v4290_v63, -inf }
 0x2c0   : > { %1262 = vmax.xlane.f32.xlu1 %v1261_v43 }
 0x2c4   : > { %1435 = vrot.lane.b32.xlu0 %v4025_v3, %s3782_s15 }
 0x2cc   : > { %1465 = vrot.lane.b32.xlu0 %v4037_v7, %s3783_s16 }
 0x2d9   : > { %1467 = vrot.lane.b32.xlu1 %v4000_v35, %s3783_s16 }
 0x2da   : > { %v4300_v47 = vpop.f32.mrf.mxu1 }
 0x2db   : > { %v675_v2 = vpop.f32.mrf.mxu2  ;;  %v1412_v4 = vsel %vm408_vm3, %v4300_v47, -inf }
 0x2dc   : > { %1413 = vmax.xlane.f32.xlu2 %v1412_v4  ;;  %v519_v6 = vpop.f32.mrf.mxu3 }
 0x2e2   : > { %v4306_v10 = vpop.f32.mrf.mxu1 }
 0x2e3   : > { %v677_v61 = vpop.f32.mrf.mxu2  ;;  %v1415_v13 = vsel %vm408_vm3, %v4306_v10, -inf }
 0x2e4   : > { %684 = vrot.lane.b32.xlu1 %v677_v61, %s3786_s20  ;;  %v521_v38 = vpop.f32.mrf.mxu3 }
 0x2eb   : > { %v831_v50 = vpop.f32.mrf.mxu2  ;;  %v561_v17 = vpop.xlane.xlu2 %560 }
 0x2ec   : > { %528 = vrot.lane.b32.xlu1 %v521_v38, %s3787_s21  ;;  %v565_v5 = vsub.f32 %v4247_v27, %v561_v17 }
 0x2ee   : > { %v567_v49 = vmul.f32 1.442695, %v565_v5 }
 0x2f3   : > { %v564_v12 = vpop.xlane.xlu0 %563  ;;  %v833_v0 = vpop.f32.mrf.mxu2 }
 0x2f4   : > { %v566_v42 = vsub.f32 %v4252_v34, %v564_v12 }
 0x2f6   : > { %v569_v15 = vmul.f32 1.442695, %v566_v42  ;;  %1416 = vmax.xlane.f32.xlu0 %v1415_v13 }
 0x2f8   : > { %3523 = vpow2.f32 %v569_v15 }
 0x2f9   : > { %3525 = vpow2.f32 %v567_v49 }
 0x2fb   : > { %v987_v26 = vpop.f32.mrf.mxu2  ;;  %v717_v1 = vpop.xlane.xlu0 %716 }
 0x2fc   : > { %v721_v51 = vsub.f32 %v4256_v9, %v717_v1 }
 0x2fe   : > { %v4311_v23 = vpop.eup %3523  ;;  %v723_v58 = vmul.f32 1.442695, %v721_v51 }
 0x2ff   : > { %v574_v48 = vsel %vm408_vm3, %v4311_v23, 0.0  ;;  %v4317_v25 = vpop.eup %3525 }
 0x300   : > { %575 = vadd.xlane.f32.xlu2 %v574_v48  ;;  %v571_v20 = vsel %vm408_vm3, %v4317_v25, 0.0 }
 0x303   : > { %v989_v18 = vpop.f32.mrf.mxu2  ;;  %v720_v21 = vpop.xlane.xlu2 %719 }
 0x304   : > { %v722_v8 = vsub.f32 %v4260_v24, %v720_v21 }
 0x306   : > { %v725_v19 = vmul.f32 1.442695, %v722_v8 }
 0x308   : > { %3527 = vpow2.f32 %v725_v19 }
 0x30a   : > { %682 = vrot.lane.b32.xlu0 %v675_v2, %s3786_s20 }
 0x30b   : > { %v873_v27 = vpop.xlane.xlu0 %872 }
 0x30e   : > { %v4332_v40 = vpop.eup %3527 }
 0x30f   : > { %v730_v24 = vsel %vm408_vm3, %v4332_v40, 0.0 }
 0x312   : > { %526 = vrot.lane.b32.xlu0 %v519_v6, %s3787_s21 }
 0x313   : > { %v876_v34 = vpop.xlane.xlu2 %875 }
 0x314   : > { %v878_v29 = vsub.f32 %v4270_v59, %v876_v34 }
 0x316   : > { %572 = vadd.xlane.f32.xlu1 %v571_v20  ;;  %v881_v33 = vmul.f32 1.442695, %v878_v29 }
 0x318   : > { %3529 = vpow2.f32 %v881_v33 }
 0x31a   : > { %838 = vrot.lane.b32.xlu0 %v831_v50, %s5077_s22 }
 0x31b   : > { %v1111_v4 = vpop.xlane.xlu2 %1110 }
 0x31c   : > { %v1115_v21 = vsub.f32 %v4275_v52, %v1111_v4 }
 0x31e   : > { %v4334_v45 = vpop.eup %3529 }
 0x31f   : > { %v886_v16 = vsel %vm408_vm3, %v4334_v45, 0.0 }
 0x322   : > { %996 = vrot.lane.b32.xlu0 %v989_v18, %s5075_s23 }
 0x323   : > { %v1114_v31 = vpop.xlane.xlu0 %1113 }
 0x324   : > { %v1116_v39 = vsub.f32 %v4281_v54, %v1114_v31  ;;  %v877_v54 = vsub.f32 %v4264_v36, %v873_v27  ;;  %v1117_v27 = vmul.f32 1.442695, %v1115_v21 }
 0x325   : > { %v1219_v60 = vpop.f32.mrf.mxu2 }
 0x326   : > { %1226 = vrot.lane.b32.xlu2 %v1219_v60, %s3787_s21  ;;  %v1119_v44 = vmul.f32 1.442695, %v1116_v39  ;;  %v879_v55 = vmul.f32 1.442695, %v877_v54 }
 0x328   : > { %3531 = vpow2.f32 %v1119_v44 }
 0x329   : > { %3533 = vpow2.f32 %v723_v58 }
 0x32a   : > { %3535 = vpow2.f32 %v879_v55 }
 0x32b   : > { %v1260_v61 = vpop.xlane.xlu2 %1259 }
 0x32c   : > { %v1264_v38 = vsub.f32 %v4286_v57, %v1260_v61 }
 0x32d   : > { %v1221_v53 = vpop.f32.mrf.mxu2 }
 0x32e   : > { %v4342_v30 = vpop.eup %3531  ;;  %v1266_v12 = vmul.f32 1.442695, %v1264_v38 }
 0x32f   : > { %840 = vrot.lane.b32.xlu1 %v833_v0, %s5077_s22  ;;  %v1124_v28 = vsel %vm408_vm3, %v4342_v30, 0.0  ;;  %v4350_v9 = vpop.eup %3533 }
 0x330   : > { %v727_v43 = vsel %vm408_vm3, %v4350_v9, 0.0  ;;  %v4356_v2 = vpop.eup %3535  ;;  %3537 = vpow2.f32 %v1266_v12 }
 0x331   : > { %v883_v36 = vsel %vm408_vm3, %v4356_v2, 0.0 }
 0x333   : > { %v1263_v22 = vpop.xlane.xlu1 %1262 }
 0x334   : > { %v1265_v15 = vsub.f32 %v4290_v63, %v1263_v22 }
 0x335   : > { %v1373_v62 = vpop.f32.mrf.mxu2 }
 0x336   : > { %v4330_v14 = vpop.permute.xlu0 %1435  ;;  %v1268_v50 = vmul.f32 1.442695, %v1265_v15  ;;  %v4370_v5 = vpop.eup %3537 }
 0x337   : > { %994 = vrot.lane.b32.xlu1 %v987_v26, %s5075_s23  ;;  %v1270_v49 = vsel %vm408_vm3, %v4370_v5, 0.0 }
 0x338   : > { %3539 = vpow2.f32 %v1268_v50 }
 0x33d   : > { %v1375_v29 = vpop.f32.mrf.mxu2 }
 0x33e   : > { %v1466_v11 = vpop.permute.xlu0 %1465  ;;  %v4374_v0 = vpop.eup %3539 }
 0x33f   : > { %v1273_v60 = vsel %vm408_vm3, %v4374_v0, 0.0 }
 0x34b   : > { %v1468_v46 = vpop.permute.xlu1 %1467 }
 0x34c   : > { %v1473_v59 = vsel %vm387_vm2, %v1468_v46, 0  ;;  %731 = vadd.xlane.f32.xlu0 %v730_v24 }
 0x34d   : > { %1482 = vmatpush.bf16.xpose.msra.mxu0 %v1473_v59 }
 0x34f   : > { %887 = vadd.xlane.f32.xlu2 %v886_v16  ;;  %v4365_v42 = vpop.xlane.xlu2 %1413 }
 0x354   : > { %3287 = vmatmul.msk.bf16.vlgmr.msra.gmra.mxu0 %vm387_vm2, %v1466_v11 }
 0x356   : > { %v4345_v41 = vpop.permute.xlu1 %684 }
 0x357   : > { %1125 = vadd.xlane.f32.xlu2 %v1124_v28 }
 0x35e   : > { %v529_v56 = vpop.permute.xlu1 %528 }
 0x35f   : > { %534 = vst.msk [vmem:[#allocation5 + $0x8] sm:$0xff] %vm532_vm4, %v529_v56 }
 0x360   : > { %1380 = vrot.lane.b32.xlu0 %v1373_v62, %s3786_s20 }
 0x361   : > { %728 = vadd.xlane.f32.xlu1 %v727_v43 }
 0x369   : > { %884 = vadd.xlane.f32.xlu1 %v883_v36  ;;  %v4360_v6 = vpop.xlane.xlu0 %1416 }
 0x373   : > { %v576_v17 = vpop.xlane.xlu2 %575 }
 0x374   : > { %3541 = vrcp.f32 %v576_v17 }
 0x37a   : > { %v3542_v63 = vpop.eup %3541 }
 0x37b   : > { %v580_v20 = vmul.f32 %v3542_v63, %v4311_v23 }
 0x37c   : > { %v4363_v13 = vpop.permute.xlu0 %682 }
 0x380   : > { %v4394_v39 = vpop.permute.xlu2 %1226 }
 0x382   : > { %1228 = vrot.lane.b32.xlu1 %v1221_v53, %s3787_s21 }
 0x384   : > { %v527_v48 = vpop.permute.xlu0 %526 }
 0x385   : > { %533 = vst.msk [vmem:[#allocation5] sm:$0xff] %vm532_vm4, %v527_v48 }
 0x389   : > { %v573_v57 = vpop.xlane.xlu1 %572 }
 0x38a   : > { %3543 = vrcp.f32 %v573_v57  ;;  %1271 = vadd.xlane.f32.xlu0 %v1270_v49 }
 0x38b   : > { %3545 = vpow2.f32 %v1117_v27 }
 0x38c   : > { %v4384_v23 = vpop.permute.xlu0 %838 }
 0x390   : > { %v3544_v26 = vpop.eup %3543 }
 0x391   : > { %v579_v18 = vmul.f32 %v3544_v26, %v4317_v25  ;;  %v3546_v8 = vpop.eup %3545 }
 0x392   : > { %1274 = vadd.xlane.f32.xlu0 %v1273_v60  ;;  %v1121_v34 = vsel %vm408_vm3, %v3546_v8, 0.0 }
 0x393   : > { %v581_v1 = vpack.c.bf16 %v580_v20, %v579_v18  ;;  %v1418_v20 = vsub.f32 %v4300_v47, %v4365_v42 }
 0x394   : > { %v4389_v19 = vpop.permute.xlu0 %996 }
 0x395   : > { %3240 = vmatmul.msk.bf16.vlgmr.msrb.gmra.mxu3 %vm408_vm3, %v581_v1  ;;  %v1420_v60 = vmul.f32 1.442695, %v1418_v20 }
 0x396   : > { %907 = vmatpush.bf16.msrb.mxu3 %v4087_v32 }
 0x3a1   : > { %v4386_v25 = vpop.permute.xlu1 %840 }
 0x3a9   : > { %v4391_v31 = vpop.permute.xlu1 %994 }
 0x3ac   : > { %1122 = vadd.xlane.f32.xlu1 %v1121_v34 }
 0x3bf   : > { %v732_v32 = vpop.xlane.xlu0 %731 }
 0x3c0   : > { %3547 = vrcp.f32 %v732_v32 }
 0x3c2   : > { %v888_v53 = vpop.xlane.xlu2 %887 }
 0x3c5   : > { %1382 = vrot.lane.b32.xlu1 %v1375_v29, %s3786_s20 }
 0x3c6   : > { %v3548_v44 = vpop.eup %3547 }
 0x3c7   : > { %v736_v16 = vmul.f32 %v3548_v44, %v4332_v40  ;;  %v1419_v40 = vsub.f32 %v4306_v10, %v4360_v6 }
 0x3d1   : > { %v1484_v33 = vpop.f32.mrf.mxu0 }
 0x3d2   : > { %v1489_v52 = vsel %vm408_vm3, %v1484_v33, -inf  ;;  %v4411_v43 = vpop.permute.xlu0 %1380 }
 0x3d3   : > { %1490 = vmax.xlane.f32.xlu0 %v1489_v52 }
 0x3d4   : > { %v729_v22 = vpop.xlane.xlu1 %728 }
 0x3d5   : > { %3549 = vrcp.f32 %v729_v22 }
 0x3d9   : > { %v1486_v46 = vpop.f32.mrf.mxu0 }
 0x3da   : > { %v1492_v24 = vsel %vm408_vm3, %v1486_v46, -inf }
 0x3db   : > { %v3550_v59 = vpop.eup %3549  ;;  %1493 = vmax.xlane.f32.xlu2 %v1492_v24 }
 0x3dc   : > { %v735_v51 = vmul.f32 %v3550_v59, %v4350_v9  ;;  %v885_v58 = vpop.xlane.xlu1 %884  ;;  %v1422_v9 = vmul.f32 1.442695, %v1419_v40 }
 0x3dd   : > { %3551 = vrcp.f32 %v885_v58 }
 0x3de   : > { %v737_v11 = vpack.c.bf16 %v736_v16, %v735_v51  ;;  %3553 = vrcp.f32 %v888_v53 }
 0x3df   : > { %3555 = vpow2.f32 %v1422_v9 }
 0x3e0   : > { %3244 = vmatmul.msk.bf16.vlgmr.msra.gmra.mxu3 %vm408_vm3, %v737_v11 }
 0x3e1   : > { %1148 = vmatpush.bf16.msra.mxu3 %v4025_v3 }
 0x3e3   : > { %v3552_v28 = vpop.eup %3551 }
 0x3e4   : > { %v3554_v54 = vpop.eup %3553  ;;  %v891_v55 = vmul.f32 %v3552_v28, %v4356_v2 }
 0x3e5   : > { %v892_v56 = vmul.f32 %v3554_v54, %v4334_v45  ;;  %v1126_v45 = vpop.xlane.xlu2 %1125 }
 0x3e6   : > { %3557 = vrcp.f32 %v1126_v45 }
 0x3e7   : > { %v893_v62 = vpack.c.bf16 %v892_v56, %v891_v55 }
 0x3f0   : > { %3248 = vmatmul.msk.bf16.vlgmr.msrb.gmra.mxu3 %vm408_vm3, %v893_v62 }
 0x3f1   : > { %1294 = vmatpush.bf16.msrb.mxu3 %v4093_v37  ;;  %v3556_v37 = vpop.eup %3555 }
 0x3f2   : > { %v1427_v61 = vsel %vm408_vm3, %v3556_v37, 0.0  ;;  %v3558_v38 = vpop.eup %3557 }
 0x3f3   : > { %1512 = vrot.lane.b32.xlu2 %v4025_v3, %s3783_s16  ;;  %v1130_v15 = vmul.f32 %v3558_v38, %v4342_v30 }
 0x3f4   : > { %v4413_v2 = vpop.permute.xlu1 %1228 }
 0x3fb   : > { %1542 = vrot.lane.b32.xlu2 %v4037_v7, %s3785_s18 }
 0x3fd   : > { %v1272_v36 = vpop.xlane.xlu0 %1271 }
 0x405   : > { %v1275_v6 = vpop.xlane.xlu0 %1274 }
 0x41f   : > { %v1123_v4 = vpop.xlane.xlu1 %1122 }
 0x420   : > { %3559 = vrcp.f32 %v1123_v4 }
 0x421   : > { %3561 = vrcp.f32 %v1275_v6 }
 0x422   : > { %3563 = vrcp.f32 %v1272_v36 }
 0x424   : > { %1428 = vadd.xlane.f32.xlu2 %v1427_v61 }
 0x426   : > { %v3560_v12 = vpop.eup %3559 }
 0x427   : > { %v1129_v10 = vmul.f32 %v3560_v12, %v3546_v8  ;;  %v3562_v48 = vpop.eup %3561 }
 0x428   : > { %v3564_v17 = vpop.eup %3563  ;;  %v1279_v57 = vmul.f32 %v3562_v48, %v4374_v0 }
 0x429   : > { %v1131_v50 = vpack.c.bf16 %v1130_v15, %v1129_v10  ;;  %v1278_v49 = vmul.f32 %v3564_v17, %v4370_v5 }
 0x42b   : > { %3278 = vmatmul.msk.bf16.vlgmr.msra.gmra.mxu3 %vm408_vm3, %v1131_v50  ;;  %v1280_v63 = vpack.c.bf16 %v1279_v57, %v1278_v49 }
 0x42c   : > { %1448 = vmatpush.bf16.msra.mxu3 %v4330_v14 }
 0x437   : > { %v4427_v42 = vpop.permute.xlu1 %1382 }
 0x43b   : > { %3282 = vmatmul.msk.bf16.vlgmr.msrb.gmra.mxu3 %vm408_vm3, %v1280_v63 }
 0x446   : > { %v1491_v26 = vpop.xlane.xlu0 %1490 }
 0x447   : > { %v1495_v30 = vsub.f32 %v1484_v33, %v1491_v26 }
 0x449   : > { %v1497_v18 = vmul.f32 1.442695, %v1495_v30 }
 0x44b   : > { %3565 = vpow2.f32 %v1497_v18 }
 0x44c   : > { %3567 = vpow2.f32 %v1420_v60 }
 0x44e   : > { %v1494_v1 = vpop.xlane.xlu2 %1493 }
 0x44f   : > { %v1496_v14 = vsub.f32 %v1486_v46, %v1494_v1 }
 0x451   : > { %v3566_v21 = vpop.eup %3565  ;;  %v1499_v27 = vmul.f32 1.442695, %v1496_v14 }
 0x452   : > { %v1501_v0 = vsel %vm408_vm3, %v3566_v21, 0.0  ;;  %v3568_v5 = vpop.eup %3567 }
 0x453   : > { %3569 = vpow2.f32 %v1499_v27  ;;  %1502 = vadd.xlane.f32.xlu1 %v1501_v0  ;;  %v1424_v29 = vsel %vm408_vm3, %v3568_v5, 0.0 }
 0x456   : > { %v1513_v47 = vpop.permute.xlu2 %1512 }
 0x457   : > { %1525 = vmatpush.bf16.msra.mxu2 %v1513_v47 }
 0x459   : > { %v3570_v8 = vpop.eup %3569 }
 0x45a   : > { %v1504_v34 = vsel %vm408_vm3, %v3570_v8, 0.0 }
 0x45b   : > { %1505 = vadd.xlane.f32.xlu0 %v1504_v34  ;;  %1425 = vadd.xlane.f32.xlu1 %v1424_v29 }
 0x45e   : > { %v1543_v32 = vpop.permute.xlu2 %1542 }
 0x497   : > { %v1429_v52 = vpop.xlane.xlu2 %1428 }
 0x498   : > { %3571 = vrcp.f32 %v1429_v52 }
 0x49e   : > { %v3572_v46 = vpop.eup %3571 }
 0x49f   : > { %v1433_v51 = vmul.f32 %v3572_v46, %v3556_v37  ;;  %v3338_v46 = vld [vmem:[%s3918_s3 + $0x4c] sm:$0xf] }
 0x4c6   : > { %v1503_v33 = vpop.xlane.xlu1 %1502 }
 0x4c7   : > { %3573 = vrcp.f32 %v1503_v33 }
 0x4cd   : > { %v3574_v24 = vpop.eup %3573 }
 0x4ce   : > { %v1426_v22 = vpop.xlane.xlu1 %1425  ;;  %v1506_v44 = vpop.xlane.xlu0 %1505  ;;  %v1509_v58 = vmul.f32 %v3574_v24, %v3566_v21  ;;  %v2398_v24 = vpack.c.bf16 %v3338_v46, %v3338_v46 }
 0x4cf   : > { %3575 = vrcp.f32 %v1426_v22 }
 0x4d0   : > { %3577 = vrcp.f32 %v1506_v44  ;;  %v4464_v44 = vld [vmem:[#allocation3] sm:$0xff] }
 0x4d1   : > { %2399 = vst.msk [vmem:[#allocation3] sm:$0x3] %vm303_vm0, %v2398_v24 }
 0x4d5   : > { %v3576_v59 = vpop.eup %3575 }
 0x4d6   : > { %v3578_v16 = vpop.eup %3577  ;;  %v1432_v11 = vmul.f32 %v3576_v59, %v3568_v5 }
 0x4d7   : > { %v1510_v53 = vmul.f32 %v3578_v16, %v3570_v8  ;;  %v4455_v8 = vpop.f32.mrf.mxu3  ;;  %v3344_v16 = vld [vmem:[%s3918_s3 + $0x6c] sm:$0xf] }
 0x4d8   : > { %v1434_v28 = vpack.c.bf16 %v1433_v51, %v1432_v11  ;;  %v3347_v51 = vld [vmem:[%s3918_s3 + $0x7c] sm:$0xf]  ;;  %v1782_v11 = vsel %vm387_vm2, %v4464_v44, 0 }
 0x4d9   : > { %v1511_v54 = vpack.c.bf16 %v1510_v53, %v1509_v58  ;;  %v2427_v58 = vpack.c.bf16 %v3344_v16, %v3344_v16  ;;  %v2440_v53 = vpack.c.bf16 %v3347_v51, %v3347_v51 }
 0x4da   : > { %3286 = vmatmul.msk.bf16.vlgmr.msra.gmra.mxu3 %vm408_vm3, %v1434_v28  ;;  %v2393_v28 = vld [vmem:[%s3918_s3 + $0xc] sm:$0xf] }
 0x4db   : > { %3288 = vmatmul.msk.bf16.vlgmr.msra.gmra.mxu2 %vm408_vm3, %v1511_v54  ;;  %v3340_v54 = vld [vmem:[%s3918_s3 + $0x1c] sm:$0xf]  ;;  %2428 = vst.msk [vmem:[#allocation3 + $0x4] sm:$0x3] %vm303_vm0, %v2427_v58 }
 0x4df   : > { %v599_v29 = vpop.f32.mrf.mxu3 }
 0x4e7   : > { %v4460_v47 = vpop.f32.mrf.mxu3 }
 0x55e   : > { %v1527_v55 = vpop.f32.mrf.mxu2 }
 0x55f   : > { %1534 = vrot.lane.b32.xlu1 %v1527_v55, %s5077_s22 }
 0x566   : > { %v1529_v56 = vpop.f32.mrf.mxu2 }
 0x567   : > { %1536 = vrot.lane.b32.xlu0 %v1529_v56, %s5077_s22  ;;  %v2394_v56 = vmul.f32 0.5, %v2393_v28  ;;  %s4539_s22 = scalar_lea.vmem %s5074_s1, %s3211_s8 }
 0x56f   : > { %1544 = vrot.lane.b32.xlu0 %v4000_v35, %s3785_s18 }
 0x5d1   : > { %v4445_v61 = vpop.permute.xlu1 %1534 }
 0x5d9   : > { %v4435_v62 = vpop.permute.xlu0 %1536 }
 0x5e1   : > { %v1545_v40 = vpop.permute.xlu0 %1544 }
 0x5e2   : > { %v1550_v9 = vsel %vm387_vm2, %v1545_v40, 0  ;;  %v2404_v40 = vmul.f32 0.5, %v3340_v54 }
 0x5e3   : > { %1559 = vmatpush.bf16.xpose.msrb.mxu1 %v1550_v9 }
 0x5ea   : > { %3289 = vmatmul.msk.bf16.vlgmr.msrb.gmra.mxu1 %vm387_vm2, %v1543_v32  ;;  %v755_v32 = vpop.f32.mrf.mxu3 }
 0x5eb   : > { %1791 = vmatpush.bf16.xpose.msra.mxu1 %v1782_v11 }
 0x667   : > { %v1561_v45 = vpop.f32.mrf.mxu1 }
 0x668   : > { %v1566_v36 = vsel %vm408_vm3, %v1561_v45, -inf }
 0x669   : > { %1567 = vmax.xlane.f32.xlu1 %v1566_v36  ;;  %v3343_v36 = vld [vmem:[%s3918_s3 + $0x2c] sm:$0xf] }
 0x66f   : > { %v1563_v4 = vpop.f32.mrf.mxu1 }
 0x670   : > { %v1569_v37 = vsel %vm408_vm3, %v1563_v4, -inf }
 0x671   : > { %1570 = vmax.xlane.f32.xlu2 %v1569_v37  ;;  %v2395_v37 = vpack.c.bf16 %v2394_v56, %v2394_v56 }
 0x689   : > { %1589 = vrot.lane.b32.xlu2 %v4025_v3, %s3785_s18 }
 0x691   : > { %1621 = vrot.lane.b32.xlu2 %v4000_v35, %s3784_s17 }
 0x6dc   : > { %v1568_v38 = vpop.xlane.xlu1 %1567 }
 0x6dd   : > { %v1572_v12 = vsub.f32 %v1561_v45, %v1568_v38  ;;  %v2442_v45 = vrot.slane %v2440_v53, 6  ;;  %v2405_v38 = vpack.c.bf16 %v2404_v40, %v2404_v40 }
 0x6df   : > { %v1574_v15 = vmul.f32 1.442695, %v1572_v12  ;;  %v2423_v12 = vmul.f32 0.5, %v3343_v36  ;;  %2444 = vst.msk [vmem:[#allocation3 + $0x4] sm:$0xc] %vm320_vm1, %v2442_v45 }
 0x6e1   : > { %3579 = vpow2.f32 %v1574_v15  ;;  %v3346_v15 = vld [vmem:[%s3918_s3 + $0x3c] sm:$0xf] }
 0x6e4   : > { %v1571_v10 = vpop.xlane.xlu2 %1570 }
 0x6e5   : > { %v1573_v6 = vsub.f32 %v1563_v4, %v1571_v10  ;;  %v4480_v10 = vld [vmem:[#allocation2] sm:$0xff] }
 0x6e6   : > { %2396 = vst.msk [vmem:[#allocation2] sm:$0x3] %vm303_vm0, %v2395_v37  ;;  %3315 = vmatmul.msk.bf16.vlgmr.msra.gmra.mxu1 %vm387_vm2, %v4480_v10 }
 0x6e7   : > { %v3580_v50 = vpop.eup %3579  ;;  %v1576_v48 = vmul.f32 1.442695, %v1573_v6  ;;  %v2433_v6 = vmul.f32 0.5, %v3346_v15 }
 0x6e8   : > { %v1578_v17 = vsel %vm408_vm3, %v3580_v50, 0.0 }
 0x6e9   : > { %3581 = vpow2.f32 %v1576_v48  ;;  %1579 = vadd.xlane.f32.xlu0 %v1578_v17  ;;  %v2407_v17 = vrot.slane %v2405_v38, 6 }
 0x6eb   : > { %2409 = vst.msk [vmem:[#allocation2] sm:$0xc] %vm320_vm1, %v2407_v17  ;;  %v4571_v17 = vld [vmem:[#allocation4] sm:$0xff] }
 0x6ec   : > { %v1590_v35 = vpop.permute.xlu2 %1589 }
 0x6ed   : > { %1602 = vmatpush.bf16.msrb.mxu3 %v1590_v35  ;;  %v2434_v35 = vpack.c.bf16 %v2433_v6, %v2433_v6 }
 0x6ef   : > { %v3582_v57 = vpop.eup %3581 }
 0x6f0   : > { %v1581_v49 = vsel %vm408_vm3, %v3582_v57, 0.0 }
 0x6f1   : > { %1582 = vadd.xlane.f32.xlu1 %v1581_v49  ;;  %1837 = vmatpush.bf16.msra.mxu3 %v4571_v17 }
 0x6f4   : > { %v1622_v63 = vpop.permute.xlu2 %1621 }
 0x6f5   : > { %v1627_v26 = vsel %vm387_vm2, %v1622_v63, 0  ;;  %v2436_v63 = vrot.slane %v2434_v35, 6 }
 0x6f6   : > { %1636 = vmatpush.bf16.xpose.msrb.mxu0 %v1627_v26 }
 0x6f7   : > { %2438 = vst.msk [vmem:[#allocation2 + $0x4] sm:$0xc] %vm320_vm1, %v2436_v63  ;;  %v3345_v63 = vld [vmem:[%s3918_s3 + $0xac] sm:$0xf] }
 0x6fd   : > { %1619 = vrot.lane.b32.xlu0 %v4037_v7, %s3784_s17 }
 0x75c   : > { %v1580_v30 = vpop.xlane.xlu0 %1579 }
 0x75d   : > { %3583 = vrcp.f32 %v1580_v30 }
 0x763   : > { %v3584_v18 = vpop.eup %3583 }
 0x764   : > { %v1583_v20 = vpop.xlane.xlu1 %1582  ;;  %v1586_v1 = vmul.f32 %v3584_v18, %v3580_v50 }
 0x765   : > { %3585 = vrcp.f32 %v1583_v20 }
 0x76b   : > { %v3586_v60 = vpop.eup %3585 }
 0x76c   : > { %v1587_v14 = vmul.f32 %v3586_v60, %v3582_v57  ;;  %v2424_v57 = vpack.c.bf16 %v2423_v12, %v2423_v12 }
 0x76e   : > { %v1588_v21 = vpack.c.bf16 %v1587_v14, %v1586_v1  ;;  %2425 = vst.msk [vmem:[#allocation2 + $0x4] sm:$0x3] %vm303_vm0, %v2424_v57  ;;  %v3339_v57 = vld [vmem:[%s3918_s3 + $0x8c] sm:$0xf] }
 0x76f   : > { %v1620_v27 = vpop.permute.xlu0 %1619 }
 0x770   : > { %3290 = vmatmul.msk.bf16.vlgmr.msrb.gmra.mxu3 %vm408_vm3, %v1588_v21  ;;  %3291 = vmatmul.msk.bf16.vlgmr.msrb.gmra.mxu0 %vm387_vm2, %v1620_v27  ;;  %v1793_v21 = vpop.f32.mrf.mxu1 }
 0x771   : > { %v1798_v27 = vsel %vm408_vm3, %v1793_v21, -inf }
 0x7ed   : > { %v1638_v7 = vpop.f32.mrf.mxu0 }
 0x7ee   : > { %v1643_v0 = vsel %vm408_vm3, %v1638_v7, -inf }
 0x7ef   : > { %1644 = vmax.xlane.f32.xlu0 %v1643_v0 }
 0x7f5   : > { %v1640_v5 = vpop.f32.mrf.mxu0 }
 0x7f6   : > { %v1646_v34 = vsel %vm408_vm3, %v1640_v5, -inf }
 0x7f7   : > { %1647 = vmax.xlane.f32.xlu2 %v1646_v34 }
 0x803   : > { %1666 = vrot.lane.b32.xlu0 %v4025_v3, %s3784_s17  ;;  %v3341_v3 = vld [vmem:[%s3918_s3 + $0x5c] sm:$0xf] }
 0x804   : > { %v2411_v59 = vpack.c.bf16 %v3341_v3, %v3341_v3 }
 0x806   : > { %v2413_v55 = vrot.slane %v2411_v59, 6  ;;  %v1795_v59 = vpop.f32.mrf.mxu1 }
 0x807   : > { %v1801_v16 = vsel %vm408_vm3, %v1795_v59, -inf }
 0x808   : > { %2415 = vst.msk [vmem:[#allocation3] sm:$0xc] %vm320_vm1, %v2413_v55 }
 0x80b   : > { %606 = vrot.lane.b32.xlu0 %v599_v29, %s3790_s24 }
 0x813   : > { %762 = vrot.lane.b32.xlu0 %v755_v32, %s3791_s25 }
 0x83d   : > { %1799 = vmax.xlane.f32.xlu0 %v1798_v27 }
 0x862   : > { %v1645_v33 = vpop.xlane.xlu0 %1644 }
 0x863   : > { %v1649_v52 = vsub.f32 %v1638_v7, %v1645_v33 }
 0x865   : > { %v1651_v22 = vmul.f32 1.442695, %v1649_v52 }
 0x867   : > { %3587 = vpow2.f32 %v1651_v22 }
 0x86a   : > { %v1648_v9 = vpop.xlane.xlu2 %1647 }
 0x86b   : > { %v1650_v4 = vsub.f32 %v1640_v5, %v1648_v9 }
 0x86d   : > { %v3588_v50 = vpop.eup %3587  ;;  %v1653_v48 = vmul.f32 1.442695, %v1650_v4 }
 0x86e   : > { %v1655_v49 = vsel %vm408_vm3, %v3588_v50, 0.0 }
 0x86f   : > { %3589 = vpow2.f32 %v1653_v48  ;;  %1656 = vadd.xlane.f32.xlu1 %v1655_v49  ;;  %v2401_v49 = vpack.c.bf16 %v3339_v57, %v3339_v57 }
 0x871   : > { %2402 = vst.msk [vmem:[#allocation4] sm:$0x3] %vm303_vm0, %v2401_v49 }
 0x875   : > { %v3590_v26 = vpop.eup %3589  ;;  %v1667_v30 = vpop.permute.xlu0 %1666 }
 0x876   : > { %v1658_v20 = vsel %vm408_vm3, %v3590_v26, 0.0  ;;  %1679 = vmatpush.bf16.msrb.mxu2 %v1667_v30  ;;  %v2430_v30 = vpack.c.bf16 %v3345_v63, %v3345_v63 }
 0x877   : > { %1659 = vadd.xlane.f32.xlu2 %v1658_v20 }
 0x878   : > { %2431 = vst.msk [vmem:[#allocation4 + $0x4] sm:$0x3] %vm303_vm0, %v2430_v30 }
 0x87d   : > { %v607_v18 = vpop.permute.xlu0 %606 }
 0x87e   : > { %612 = vst.msk [vmem:[#allocation5 + $0x8] sm:$0xff] %vm610_vm5, %v607_v18 }
 0x87f   : > { %690 = vst.msk [vmem:[#allocation5 + $0x8] sm:$0xff] %vm688_vm6, %v4345_v41 }
 0x885   : > { %v763_v60 = vpop.permute.xlu0 %762 }
 0x886   : > { %768 = vst.msk [vmem:[#allocation5 + $0x8] sm:$0xff] %vm766_vm7, %v763_v60 }
 0x887   : > { %846 = vst.msk [vmem:[#allocation5 + $0x8] sm:$0xff] %vm844_vm8, %v4386_v25  ;;  %v909_v25 = vpop.f32.mrf.mxu3 }
 0x88f   : > { %v911_v33 = vpop.f32.mrf.mxu3 }
 0x897   : > { %v4504_v52 = vpop.f32.mrf.mxu3 }
 0x89f   : > { %v1152_v3 = vpop.f32.mrf.mxu3 }
 0x8a7   : > { %v1296_v51 = vpop.f32.mrf.mxu3 }
 0x8b0   : > { %v1800_v22 = vpop.xlane.xlu0 %1799 }
 0x8b1   : > { %v1804_v46 = vsub.f32 %v1793_v21, %v1800_v22 }
 0x8b3   : > { %v1806_v24 = vmul.f32 1.442695, %v1804_v46 }
 0x8e2   : > { %v1657_v1 = vpop.xlane.xlu1 %1656 }
 0x8e3   : > { %3591 = vrcp.f32 %v1657_v1 }
 0x8e9   : > { %v3592_v7 = vpop.eup %3591 }
 0x8ea   : > { %v1660_v14 = vpop.xlane.xlu2 %1659  ;;  %v1663_v5 = vmul.f32 %v3592_v7, %v3588_v50 }
 0x8eb   : > { %3593 = vrcp.f32 %v1660_v14 }
 0x8ec   : > { %3595 = vpow2.f32 %v1806_v24 }
 0x8f1   : > { %v3594_v0 = vpop.eup %3593 }
 0x8f2   : > { %v1664_v41 = vmul.f32 %v3594_v0, %v3590_v26  ;;  %v3348_v26 = vld [vmem:[%s3918_s3 + $0xbc] sm:$0xf] }
 0x8f4   : > { %v1665_v34 = vpack.c.bf16 %v1664_v41, %v1663_v5 }
 0x8f6   : > { %3292 = vmatmul.msk.bf16.vlgmr.msrb.gmra.mxu2 %vm408_vm3, %v1665_v34 }
 0x979   : > { %v1681_v29 = vpop.f32.mrf.mxu2 }
 0x97a   : > { %1688 = vrot.lane.b32.xlu1 %v1681_v29, %s5075_s23 }
 0x981   : > { %v1683_v32 = vpop.f32.mrf.mxu2 }
 0x982   : > { %760 = vrot.lane.b32.xlu1 %v4460_v47, %s3791_s25  ;;  %1690 = vrot.lane.b32.xlu2 %v1683_v32, %s5075_s23  ;;  %v4507_v47 = vpop.eup %3595 }
 0x983   : > { %v1810_v11 = vsel %vm408_vm3, %v4507_v47, 0.0 }
 0x98a   : > { %604 = vrot.lane.b32.xlu2 %v4455_v8, %s3790_s24  ;;  %v1298_v8 = vpop.f32.mrf.mxu3 }
 0x992   : > { %v1450_v58 = vpop.f32.mrf.mxu3 }
 0x99a   : > { %v1452_v53 = vpop.f32.mrf.mxu3 }
 0x9a2   : > { %v1604_v28 = vpop.f32.mrf.mxu3 }
 0x9aa   : > { %v1606_v54 = vpop.f32.mrf.mxu3 }
 0x9ac   : > { %1802 = vmax.xlane.f32.xlu1 %v1801_v16 }
 0x9b3   : > { %1811 = vadd.xlane.f32.xlu2 %v1810_v11 }
 0x9c5   : > { %916 = vrot.lane.b32.xlu1 %v909_v25, %s3792_s26 }
 0x9cb   : > { %918 = vrot.lane.b32.xlu2 %v911_v33, %s3792_s26 }
 0x9cd   : > { %1846 = vrot.lane.b32.xlu1 %v4480_v10, %s3779_s4 }
 0x9d3   : > { %1303 = vrot.lane.b32.xlu2 %v1296_v51, %s3790_s24 }
 0x9d5   : > { %1457 = vrot.lane.b32.xlu1 %v1450_v58, %s3791_s25 }
 0x9db   : > { %1459 = vrot.lane.b32.xlu2 %v1452_v53, %s3791_s25 }
 0x9dc   : > { %v4518_v55 = vpop.permute.xlu2 %1690 }
 0x9dd   : > { %1613 = vrot.lane.b32.xlu1 %v1606_v54, %s3792_s26 }
 0x9e4   : > { %v605_v56 = vpop.permute.xlu2 %604 }
 0x9e5   : > { %611 = vst.msk [vmem:[#allocation5] sm:$0xff] %vm610_vm5, %v605_v56  ;;  %1893 = vrot.lane.b32.xlu1 %v4571_v17, %s3779_s4 }
 0x9e6   : > { %689 = vst.msk [vmem:[#allocation5] sm:$0xff] %vm688_vm6, %v4363_v13 }
 0x9ec   : > { %v4524_v40 = vpop.permute.xlu1 %1688 }
 0x9f4   : > { %v761_v9 = vpop.permute.xlu1 %760 }
 0x9f5   : > { %767 = vst.msk [vmem:[#allocation5] sm:$0xff] %vm766_vm7, %v761_v9 }
 0x9f6   : > { %845 = vst.msk [vmem:[#allocation5] sm:$0xff] %vm844_vm8, %v4384_v23 }
 0xa1f   : > { %v1803_v45 = vpop.xlane.xlu1 %1802 }
 0xa20   : > { %v1805_v36 = vsub.f32 %v1795_v59, %v1803_v45 }
 0xa22   : > { %v1808_v4 = vmul.f32 1.442695, %v1805_v36 }
 0xa24   : > { %3597 = vpow2.f32 %v1808_v4 }
 0xa26   : > { %v1812_v37 = vpop.xlane.xlu2 %1811 }
 0xa27   : > { %3599 = vrcp.f32 %v1812_v37 }
 0xa2a   : > { %v3598_v38 = vpop.eup %3597 }
 0xa2b   : > { %v1813_v13 = vsel %vm408_vm3, %v3598_v38, 0.0 }
 0xa2c   : > { %1814 = vadd.xlane.f32.xlu0 %v1813_v13 }
 0xa2d   : > { %v3600_v60 = vpop.eup %3599 }
 0xa2e   : > { %v919_v12 = vpop.permute.xlu2 %918  ;;  %v1818_v14 = vmul.f32 %v3600_v60, %v4507_v47 }
 0xa2f   : > { %924 = vst.msk [vmem:[#allocation5 + $0x8] sm:$0xff] %vm922_vm9, %v919_v12 }
 0xa30   : > { %1002 = vst.msk [vmem:[#allocation5 + $0x8] sm:$0xff] %vm1000_vm10, %v4389_v19 }
 0xa37   : > { %v1009_v23 = vld [vmem:[#allocation5 + $0x8] sm:$0xf]  ;;  %v1012_v15 = vld [vmem:[#allocation5 + $0xc] sm:$0xf]  ;;  %v917_v6 = vpop.permute.xlu1 %916 }
 0xa38   : > { %3252 = vst.msk [vmem:[%s4539_s22 + $0x20] sm:$0xf] %vm1004_vm11, %v1009_v23 }
 0xa39   : > { %3253 = vst.msk [vmem:[%s4539_s22 + $0x30] sm:$0xf] %vm1004_vm11, %v1012_v15 }
 0xa3a   : > { %1156 = vst.msk [vmem:[#allocation5 + $0x8] sm:$0xff] %vm387_vm2, %v1152_v3 }
 0xa3b   : > { %1233 = vst.msk [vmem:[#allocation5 + $0x8] sm:$0xff] %vm532_vm4, %v4413_v2  ;;  %v1304_v2 = vpop.permute.xlu2 %1303 }
 0xa3c   : > { %923 = vst.msk [vmem:[#allocation5] sm:$0xff] %vm922_vm9, %v917_v6 }
 0xa3d   : > { %1001 = vst.msk [vmem:[#allocation5] sm:$0xff] %vm1000_vm10, %v4391_v31 }
 0xa3f   : > { %v4551_v19 = vpop.permute.xlu1 %1846 }
 0xa40   : > { %1305 = vrot.lane.b32.xlu0 %v1298_v8, %s3790_s24 }
 0xa43   : > { %v1460_v0 = vpop.permute.xlu2 %1459 }
 0xa44   : > { %v1003_v50 = vld [vmem:[#allocation5] sm:$0xf]  ;;  %v1006_v48 = vld [vmem:[#allocation5 + $0x4] sm:$0xf] }
 0xa45   : > { %1005 = vst.msk [vmem:[%s4539_s22] sm:$0xf] %vm1004_vm11, %v1003_v50 }
 0xa46   : > { %3251 = vst.msk [vmem:[%s4539_s22 + $0x10] sm:$0xf] %vm1004_vm11, %v1006_v48 }
 0xa47   : > { %1155 = vst.msk [vmem:[#allocation5] sm:$0xff] %vm387_vm2, %v4504_v52  ;;  %v1458_v31 = vpop.permute.xlu1 %1457 }
 0xa48   : > { %1232 = vst.msk [vmem:[#allocation5] sm:$0xff] %vm532_vm4, %v4394_v39  ;;  %1611 = vrot.lane.b32.xlu0 %v1604_v28, %s3792_s26  ;;  %v3342_v39 = vld [vmem:[%s3918_s3 + $0x9c] sm:$0xf]  ;;  %s5080_s3 = smov 28  }
 0xa49   : > { %1309 = vst.msk [vmem:[#allocation5] sm:$0xff] %vm610_vm5, %v1304_v2  ;;  %v2417_v35 = vpack.c.bf16 %v3342_v39, %v3342_v39  ;;  %v3393_v2 = vld [vmem:[#allocation3] sm:$0xff] }
 0xa4a   : > { %1386 = vst.msk [vmem:[#allocation5] sm:$0xff] %vm688_vm6, %v4411_v43  ;;  %v2446_v43 = vpack.c.bf16 %v3348_v26, %v3348_v26 }
 0xa4b   : > { %1463 = vst.msk [vmem:[#allocation5] sm:$0xff] %vm766_vm7, %v1458_v31 }
 0xa4c   : > { %1540 = vst.msk [vmem:[#allocation5] sm:$0xff] %vm844_vm8, %v4445_v61  ;;  %v2419_v61 = vrot.slane %v2417_v35, 6  ;;  %v2448_v20 = vrot.slane %v2446_v43, 6  ;;  %v3392_v35 = vld [vmem:[#allocation2] sm:$0xff] }
 0xa4e   : > { %2421 = vst.msk [vmem:[#allocation4] sm:$0xc] %vm320_vm1, %v2419_v61 }
 0xa4f   : > { %2450 = vst.msk [vmem:[#allocation4 + $0x4] sm:$0xc] %vm320_vm1, %v2448_v20  ;;  %v1614_v5 = vpop.permute.xlu1 %1613 }
 0xa50   : > { %1848 = vrot.lane.b32.xlu0 %v4464_v44, %s3779_s4 }
 0xa9f   : > { %v1815_v18 = vpop.xlane.xlu0 %1814 }
 0xaa0   : > { %3601 = vrcp.f32 %v1815_v18 }
 0xaa6   : > { %v3602_v1 = vpop.eup %3601 }
 0xaa7   : > { %v1819_v21 = vmul.f32 %v3602_v1, %v3598_v38 }
 0xaa9   : > { %v1820_v27 = vpack.c.bf16 %v1819_v21, %v1818_v14 }
 0xaab   : > { %3320 = vmatmul.msk.bf16.vlgmr.msra.gmra.mxu3 %vm408_vm3, %v1820_v27 }
 0xab2   : > { %v1306_v7 = vpop.permute.xlu0 %1305 }
 0xab3   : > { %1310 = vst.msk [vmem:[#allocation5 + $0x8] sm:$0xff] %vm610_vm5, %v1306_v7  ;;  %v2471_v7 = vsel %vm387_vm2, %v3393_v2, 0 }
 0xab4   : > { %1387 = vst.msk [vmem:[#allocation5 + $0x8] sm:$0xff] %vm688_vm6, %v4427_v42 }
 0xab5   : > { %1464 = vst.msk [vmem:[#allocation5 + $0x8] sm:$0xff] %vm766_vm7, %v1460_v0 }
 0xab6   : > { %1541 = vst.msk [vmem:[#allocation5 + $0x8] sm:$0xff] %vm844_vm8, %v4435_v62 }
 0xab7   : > { %1618 = vst.msk [vmem:[#allocation5 + $0x8] sm:$0xff] %vm922_vm9, %v1614_v5 }
 0xab8   : > { %1695 = vst.msk [vmem:[#allocation5 + $0x8] sm:$0xff] %vm1000_vm10, %v4518_v55  ;;  %v1894_v55 = vpop.permute.xlu1 %1893 }
 0xab9   : > { %1906 = vmatpush.bf16.msra.mxu2 %v1894_v55 }
 0xaba   : > { %v1612_v41 = vpop.permute.xlu0 %1611 }
 0xabb   : > { %1617 = vst.msk [vmem:[#allocation5] sm:$0xff] %vm922_vm9, %v1612_v41 }
 0xabc   : > { %1694 = vst.msk [vmem:[#allocation5] sm:$0xff] %vm1000_vm10, %v4524_v40 }
 0xabf   : > { %v1702_v42 = vld [vmem:[#allocation5 + $0xc] sm:$0xf]  ;;  %v1700_v34 = vld [vmem:[#allocation5 + $0x8] sm:$0xf] }
 0xac0   : > { %3295 = vst.msk [vmem:[%s4539_s22 + $0x34] sm:$0xf] %vm1004_vm11, %v1702_v42 }
 0xac1   : > { %3294 = vst.msk [vmem:[%s4539_s22 + $0x24] sm:$0xf] %vm1004_vm11, %v1700_v34 }
 0xac2   : > { %v1849_v29 = vpop.permute.xlu0 %1848 }
 0xac3   : > { %v1698_v62 = vld [vmem:[#allocation5 + $0x4] sm:$0xf]  ;;  %v1854_v32 = vsel %vm387_vm2, %v1849_v29, 0  ;;  %v1696_v25 = vld [vmem:[#allocation5] sm:$0xf] }
 0xac4   : > { %3293 = vst.msk [vmem:[%s4539_s22 + $0x14] sm:$0xf] %vm1004_vm11, %v1698_v62  ;;  %1863 = vmatpush.bf16.xpose.msra.mxu0 %v1854_v32 }
 0xac5   : > { %1697 = vst.msk [vmem:[%s4539_s22 + $0x4] sm:$0xf] %vm1004_vm11, %v1696_v25 }
 0xacb   : > { %3321 = vmatmul.msk.bf16.vlgmr.msra.gmra.mxu0 %vm387_vm2, %v4551_v19 }
 0xb2e   : > { %v1839_v33 = vpop.f32.mrf.mxu3 }
 0xb2f   : > { %1844 = vst.msk [vmem:[#allocation5] sm:$0xff] %vm387_vm2, %v1839_v33 }
 0xb36   : > { %v1841_v52 = vpop.f32.mrf.mxu3 }
 0xb37   : > { %1845 = vst.msk [vmem:[#allocation5 + $0x8] sm:$0xff] %vm387_vm2, %v1841_v52 }
 0xb48   : > { %v1865_v22 = vpop.f32.mrf.mxu0 }
 0xb49   : > { %v1870_v46 = vsel %vm408_vm3, %v1865_v22, -inf }
 0xb4a   : > { %1871 = vmax.xlane.f32.xlu2 %v1870_v46 }
 0xb50   : > { %v1867_v3 = vpop.f32.mrf.mxu0 }
 0xb51   : > { %v1873_v24 = vsel %vm408_vm3, %v1867_v3, -inf }
 0xb52   : > { %1874 = vmax.xlane.f32.xlu2 %v1873_v24 }
 0xbbd   : > { %v1872_v59 = vpop.xlane.xlu2 %1871 }
 0xbbe   : > { %v1876_v16 = vsub.f32 %v1865_v22, %v1872_v59 }
 0xbc0   : > { %v1878_v51 = vmul.f32 1.442695, %v1876_v16 }
 0xbc2   : > { %3603 = vpow2.f32 %v1878_v51 }
 0xbc5   : > { %v1875_v47 = vpop.xlane.xlu2 %1874 }
 0xbc6   : > { %v1877_v11 = vsub.f32 %v1867_v3, %v1875_v47 }
 0xbc8   : > { %v3604_v8 = vpop.eup %3603  ;;  %v1880_v58 = vmul.f32 1.442695, %v1877_v11 }
 0xbc9   : > { %v1882_v53 = vsel %vm408_vm3, %v3604_v8, 0.0 }
 0xbca   : > { %3605 = vpow2.f32 %v1880_v58  ;;  %1883 = vadd.xlane.f32.xlu2 %v1882_v53 }
 0xbd0   : > { %v3606_v28 = vpop.eup %3605 }
 0xbd1   : > { %v1885_v54 = vsel %vm408_vm3, %v3606_v28, 0.0 }
 0xbd2   : > { %1886 = vadd.xlane.f32.xlu0 %v1885_v54 }
 0xbe6   : > { %2079 = vrot.lane.b32.xlu0 %v4464_v44, %s3782_s15 }
 0xbee   : > { %2154 = vrot.lane.b32.xlu0 %v4480_v10, %s3783_s16 }
 0xbf6   : > { %2310 = vrot.lane.b32.xlu0 %v4464_v44, %s3784_s17 }
 0xbfe   : > { %2537 = vrot.lane.b32.xlu0 %v3393_v2, %s3779_s4 }
 0xc06   : > { %2535 = vrot.lane.b32.xlu0 %v3392_v35, %s3779_s4 }
 0xc0e   : > { %2614 = vrot.lane.b32.xlu0 %v3393_v2, %s3780_s5 }
 0xc16   : > { %2691 = vrot.lane.b32.xlu0 %v3393_v2, %s3781_s6 }
 0xc1e   : > { %2689 = vrot.lane.b32.xlu0 %v3392_v35, %s3781_s6 }
 0xc26   : > { %2845 = vrot.lane.b32.xlu0 %v3393_v2, %s3783_s16 }
 0xc2e   : > { %2922 = vrot.lane.b32.xlu0 %v3393_v2, %s3785_s18 }
 0xc36   : > { %2920 = vrot.lane.b32.xlu0 %v3392_v35, %s3785_s18 }
 0xc3d   : > { %v1884_v56 = vpop.xlane.xlu2 %1883 }
 0xc3e   : > { %3607 = vrcp.f32 %v1884_v56 }
 0xc44   : > { %v3608_v9 = vpop.eup %3607 }
 0xc45   : > { %v1887_v40 = vpop.xlane.xlu0 %1886  ;;  %v1890_v36 = vmul.f32 %v3608_v9, %v3604_v8 }
 0xc46   : > { %3609 = vrcp.f32 %v1887_v40 }
 0xc4c   : > { %v3610_v45 = vpop.eup %3609 }
 0xc4d   : > { %v1891_v4 = vmul.f32 %v3610_v45, %v3606_v28 }
 0xc4f   : > { %v1892_v37 = vpack.c.bf16 %v1891_v4, %v1890_v36 }
 0xc51   : > { %3322 = vmatmul.msk.bf16.vlgmr.msra.gmra.mxu2 %vm408_vm3, %v1892_v37 }
 0xc58   : > { %v2080_v31 = vpop.permute.xlu0 %2079 }
 0xc59   : > { %v2085_v39 = vsel %vm387_vm2, %v2080_v31, 0 }
 0xcd4   : > { %v1908_v38 = vpop.f32.mrf.mxu2 }
 0xcd5   : > { %1915 = vrot.lane.b32.xlu2 %v1908_v38, %s3787_s21 }
 0xcdc   : > { %v1910_v13 = vpop.f32.mrf.mxu2 }
 0xcdd   : > { %1917 = vrot.lane.b32.xlu1 %v1910_v13, %s3787_s21  ;;  %2002 = vrot.lane.b32.xlu2 %v4464_v44, %s3781_s6 }
 0xce5   : > { %1923 = vrot.lane.b32.xlu1 %v4480_v10, %s3780_s5  ;;  %2000 = vrot.lane.b32.xlu2 %v4480_v10, %s3781_s6 }
 0xced   : > { %1925 = vrot.lane.b32.xlu1 %v4464_v44, %s3780_s5  ;;  %2156 = vrot.lane.b32.xlu2 %v4464_v44, %s3783_s16 }
 0xcf5   : > { %2077 = vrot.lane.b32.xlu2 %v4480_v10, %s3782_s15 }
 0xcfd   : > { %2233 = vrot.lane.b32.xlu2 %v4464_v44, %s3785_s18 }
 0xd05   : > { %2231 = vrot.lane.b32.xlu2 %v4480_v10, %s3785_s18 }
 0xd2f   : > { %v1916_v12 = vpop.permute.xlu2 %1915 }
 0xd30   : > { %1921 = vst.msk [vmem:[#allocation5] sm:$0xff] %vm532_vm4, %v1916_v12 }
 0xd37   : > { %v2003_v23 = vpop.permute.xlu2 %2002 }
 0xd38   : > { %v2008_v15 = vsel %vm387_vm2, %v2003_v23, 0 }
 0xd39   : > { %2017 = vmatpush.bf16.xpose.msrb.mxu0 %v2008_v15 }
 0xd3f   : > { %v2001_v44 = vpop.permute.xlu2 %2000 }
 0xd40   : > { %3325 = vmatmul.msk.bf16.vlgmr.msrb.gmra.mxu0 %vm387_vm2, %v2001_v44 }
 0xd47   : > { %v2157_v57 = vpop.permute.xlu2 %2156 }
 0xd48   : > { %v2162_v49 = vsel %vm387_vm2, %v2157_v57, 0 }
 0xd49   : > { %2171 = vmatpush.bf16.xpose.msra.mxu0 %v2162_v49 }
 0xd4f   : > { %v1918_v6 = vpop.permute.xlu1 %1917  ;;  %v2078_v63 = vpop.permute.xlu2 %2077 }
 0xd50   : > { %1922 = vst.msk [vmem:[#allocation5 + $0x8] sm:$0xff] %vm532_vm4, %v1918_v6 }
 0xd57   : > { %v1924_v19 = vpop.permute.xlu1 %1923  ;;  %v2234_v43 = vpop.permute.xlu2 %2233 }
 0xd58   : > { %v2239_v61 = vsel %vm387_vm2, %v2234_v43, 0 }
 0xd5f   : > { %v1926_v50 = vpop.permute.xlu1 %1925  ;;  %v2232_v60 = vpop.permute.xlu2 %2231 }
 0xd60   : > { %v1931_v48 = vsel %vm387_vm2, %v1926_v50, 0 }
 0xd61   : > { %1940 = vmatpush.bf16.xpose.msrb.mxu1 %v1931_v48 }
 0xd68   : > { %3323 = vmatmul.msk.bf16.vlgmr.msrb.gmra.mxu1 %vm387_vm2, %v1924_v19 }
 0xd69   : > { %2094 = vmatpush.bf16.xpose.msra.mxu1 %v2085_v39 }
 0xd71   : > { %2248 = vmatpush.bf16.xpose.msrb.mxu1 %v2239_v61 }
 0xd78   : > { %3327 = vmatmul.msk.bf16.vlgmr.msra.gmra.mxu1 %vm387_vm2, %v2078_v63 }
 0xd79   : > { %2480 = vmatpush.bf16.xpose.msra.mxu1 %v2471_v7 }
 0xd88   : > { %3331 = vmatmul.msk.bf16.vlgmr.msrb.gmra.mxu1 %vm387_vm2, %v2232_v60 }
 0xd98   : > { %3357 = vmatmul.msk.bf16.vlgmr.msra.gmra.mxu1 %vm387_vm2, %v3392_v35 }
 0xdbd   : > { %v4676_v34 = vpop.f32.mrf.mxu0 }
 0xdc5   : > { %v2021_v3 = vpop.f32.mrf.mxu0 }
 0xdc6   : > { %v2027_v24 = vsel %vm408_vm3, %v2021_v3, -inf }
 0xde5   : > { %v1942_v26 = vpop.f32.mrf.mxu1 }
 0xde6   : > { %v1947_v30 = vsel %vm408_vm3, %v1942_v26, -inf }
 0xde7   : > { %1948 = vmax.xlane.f32.xlu1 %v1947_v30 }
 0xded   : > { %v1944_v20 = vpop.f32.mrf.mxu1 }
 0xdee   : > { %v1950_v18 = vsel %vm408_vm3, %v1944_v20, -inf }
 0xdef   : > { %1951 = vmax.xlane.f32.xlu2 %v1950_v18 }
 0xdf5   : > { %v2096_v60 = vpop.f32.mrf.mxu1 }
 0xe00   : > { %2308 = vrot.lane.b32.xlu1 %v4480_v10, %s3784_s17  ;;  %v2155_v10 = vpop.permute.xlu0 %2154 }
 0xe01   : > { %3329 = vmatmul.msk.bf16.vlgmr.msra.gmra.mxu0 %vm387_vm2, %v2155_v10  ;;  %v2101_v10 = vsel %vm408_vm3, %v2096_v60, -inf }
 0xe07   : > { %2843 = vrot.lane.b32.xlu2 %v3392_v35, %s3783_s16 }
 0xe08   : > { %2612 = vrot.lane.b32.xlu1 %v3392_v35, %s3780_s5  ;;  %v2311_v1 = vpop.permute.xlu0 %2310 }
 0xe09   : > { %v2316_v14 = vsel %vm387_vm2, %v2311_v1, 0 }
 0xe0a   : > { %2325 = vmatpush.bf16.xpose.msrb.mxu0 %v2316_v14 }
 0xe0f   : > { %1970 = vrot.lane.b32.xlu2 %v4571_v17, %s3780_s5 }
 0xe10   : > { %2768 = vrot.lane.b32.xlu1 %v3393_v2, %s3782_s15  ;;  %v2538_v21 = vpop.permute.xlu0 %2537 }
 0xe11   : > { %v2543_v27 = vsel %vm387_vm2, %v2538_v21, 0 }
 0xe12   : > { %2552 = vmatpush.bf16.xpose.msra.mxu0 %v2543_v27 }
 0xe18   : > { %2766 = vrot.lane.b32.xlu1 %v3392_v35, %s3782_s15  ;;  %v2536_v0 = vpop.permute.xlu0 %2535 }
 0xe20   : > { %2999 = vrot.lane.b32.xlu1 %v3393_v2, %s3784_s17  ;;  %v2615_v29 = vpop.permute.xlu0 %2614 }
 0xe21   : > { %v2620_v62 = vsel %vm387_vm2, %v2615_v29, 0 }
 0xe22   : > { %2629 = vmatpush.bf16.xpose.msrb.mxu1 %v2620_v62 }
 0xe28   : > { %2997 = vrot.lane.b32.xlu1 %v3392_v35, %s3784_s17  ;;  %v2692_v46 = vpop.permute.xlu0 %2691  ;;  %v2024_v35 = vsel %vm408_vm3, %v4676_v34, -inf }
 0xe29   : > { %v2697_v51 = vsel %vm387_vm2, %v2692_v46, 0 }
 0xe30   : > { %v2690_v47 = vpop.permute.xlu0 %2689 }
 0xe38   : > { %v2846_v58 = vpop.permute.xlu0 %2845 }
 0xe39   : > { %v2851_v53 = vsel %vm387_vm2, %v2846_v58, 0 }
 0xe40   : > { %v2923_v55 = vpop.permute.xlu0 %2922 }
 0xe41   : > { %v2928_v56 = vsel %vm387_vm2, %v2923_v55, 0 }
 0xe48   : > { %v2921_v36 = vpop.permute.xlu0 %2920 }
 0xe5a   : > { %v1949_v5 = vpop.xlane.xlu1 %1948 }
 0xe5b   : > { %v1953_v41 = vsub.f32 %v1942_v26, %v1949_v5 }
 0xe5d   : > { %v1955_v42 = vmul.f32 1.442695, %v1953_v41 }
 0xe5f   : > { %3611 = vpow2.f32 %v1955_v42 }
 0xe62   : > { %v1952_v32 = vpop.xlane.xlu2 %1951 }
 0xe63   : > { %v1954_v25 = vsub.f32 %v1944_v20, %v1952_v32 }
 0xe65   : > { %v3612_v33 = vpop.eup %3611  ;;  %v1957_v52 = vmul.f32 1.442695, %v1954_v25  ;;  %v2098_v25 = vpop.f32.mrf.mxu1 }
 0xe66   : > { %v1959_v22 = vsel %vm408_vm3, %v3612_v33, 0.0 }
 0xe67   : > { %3613 = vpow2.f32 %v1957_v52  ;;  %1960 = vadd.xlane.f32.xlu0 %v1959_v22 }
 0xe6a   : > { %v2844_v4 = vpop.permute.xlu2 %2843 }
 0xe6d   : > { %v3614_v59 = vpop.eup %3613 }
 0xe6e   : > { %v1962_v16 = vsel %vm408_vm3, %v3614_v59, 0.0 }
 0xe6f   : > { %2028 = vmax.xlane.f32.xlu0 %v2027_v24  ;;  %1963 = vadd.xlane.f32.xlu1 %v1962_v16 }
 0xe72   : > { %v2309_v11 = vpop.permute.xlu1 %2308  ;;  %v1971_v38 = vpop.permute.xlu2 %1970 }
 0xe73   : > { %3333 = vmatmul.msk.bf16.vlgmr.msrb.gmra.mxu0 %vm387_vm2, %v2309_v11  ;;  %1983 = vmatpush.bf16.msrb.mxu3 %v1971_v38 }
 0xe74   : > { %2706 = vmatpush.bf16.xpose.msrb.mxu0 %v2697_v51 }
 0xe7a   : > { %v2613_v8 = vpop.permute.xlu1 %2612 }
 0xe7b   : > { %3365 = vmatmul.msk.bf16.vlgmr.msrb.gmra.mxu1 %vm387_vm2, %v2613_v8 }
 0xe7e   : > { %v2173_v22 = vpop.f32.mrf.mxu0 }
 0xe82   : > { %v2769_v28 = vpop.permute.xlu1 %2768 }
 0xe83   : > { %3363 = vmatmul.msk.bf16.vlgmr.msra.gmra.mxu0 %vm387_vm2, %v2536_v0  ;;  %v2774_v54 = vsel %vm387_vm2, %v2769_v28, 0 }
 0xe84   : > { %2783 = vmatpush.bf16.xpose.msra.mxu1 %v2774_v54  ;;  %2860 = vmatpush.bf16.xpose.msra.mxu0 %v2851_v53 }
 0xe86   : > { %v4717_v24 = vpop.f32.mrf.mxu0 }
 0xe8a   : > { %v2767_v40 = vpop.permute.xlu1 %2766 }
 0xe8b   : > { %3369 = vmatmul.msk.bf16.vlgmr.msra.gmra.mxu1 %vm387_vm2, %v2767_v40 }
 0xe8c   : > { %2937 = vmatpush.bf16.xpose.msrb.mxu1 %v2928_v56 }
 0xe92   : > { %v3000_v9 = vpop.permute.xlu1 %2999 }
 0xe93   : > { %3367 = vmatmul.msk.bf16.vlgmr.msrb.gmra.mxu0 %vm387_vm2, %v2690_v47  ;;  %v3005_v45 = vsel %vm387_vm2, %v3000_v9, 0 }
 0xe94   : > { %3014 = vmatpush.bf16.xpose.msrb.mxu0 %v3005_v45  ;;  %v2181_v45 = vsel %vm408_vm3, %v4717_v24, -inf }
 0xe9a   : > { %v2998_v37 = vpop.permute.xlu1 %2997 }
 0xe9b   : > { %3373 = vmatmul.msk.bf16.vlgmr.msrb.gmra.mxu1 %vm387_vm2, %v2921_v36  ;;  %v2250_v36 = vpop.f32.mrf.mxu1 }
 0xea3   : > { %3371 = vmatmul.msk.bf16.vlgmr.msra.gmra.mxu0 %vm387_vm2, %v2844_v4 }
 0xeb3   : > { %3375 = vmatmul.msk.bf16.vlgmr.msrb.gmra.mxu0 %vm387_vm2, %v2998_v37  ;;  %v2255_v37 = vsel %vm408_vm3, %v2250_v36, -inf }
 0xeda   : > { %v1961_v13 = vpop.xlane.xlu0 %1960 }
 0xedb   : > { %3615 = vrcp.f32 %v1961_v13  ;;  %v2252_v13 = vpop.f32.mrf.mxu1 }
 0xee1   : > { %v3616_v19 = vpop.eup %3615 }
 0xee2   : > { %v2029_v12 = vpop.xlane.xlu0 %2028  ;;  %v1964_v23 = vpop.xlane.xlu1 %1963  ;;  %v1967_v48 = vmul.f32 %v3616_v19, %v3612_v33  ;;  %v2104_v33 = vsel %vm408_vm3, %v2098_v25, -inf }
 0xee3   : > { %v2031_v15 = vsub.f32 %v2021_v3, %v2029_v12  ;;  %3617 = vrcp.f32 %v1964_v23  ;;  %v2178_v3 = vsel %vm408_vm3, %v2173_v22, -inf  ;;  %v2258_v12 = vsel %vm408_vm3, %v2252_v13, -inf  ;;  %v4742_v23 = vpop.f32.mrf.mxu1 }
 0xee5   : > { %v2034_v6 = vmul.f32 1.442695, %v2031_v15 }
 0xee7   : > { %3619 = vpow2.f32 %v2034_v6 }
 0xee9   : > { %v3618_v50 = vpop.eup %3617 }
 0xeea   : > { %v1968_v44 = vmul.f32 %v3618_v50, %v3614_v59 }
 0xeeb   : > { %v4746_v6 = vpop.f32.mrf.mxu1 }
 0xeec   : > { %v1969_v2 = vpack.c.bf16 %v1968_v44, %v1967_v48  ;;  %v2490_v19 = vsel %vm408_vm3, %v4746_v6, -inf }
 0xeed   : > { %v3620_v31 = vpop.eup %3619 }
 0xeee   : > { %3324 = vmatmul.msk.bf16.vlgmr.msrb.gmra.mxu3 %vm408_vm3, %v1969_v2  ;;  %v2039_v57 = vsel %vm408_vm3, %v3620_v31, 0.0 }
 0xeef   : > { %2040 = vadd.xlane.f32.xlu0 %v2039_v57 }
 0xef0   : > { %v4721_v59 = vpop.f32.mrf.mxu0 }
 0xef1   : > { %v2332_v8 = vsel %vm408_vm3, %v4721_v59, -inf }
 0xef8   : > { %v4723_v16 = vpop.f32.mrf.mxu0  ;;  %v4754_v44 = vpop.f32.mrf.mxu1 }
 0xef9   : > { %v2335_v15 = vsel %vm408_vm3, %v4723_v16, -inf }
 0xf00   : > { %v4725_v51 = vpop.f32.mrf.mxu0 }
 0xf01   : > { %v2559_v50 = vsel %vm408_vm3, %v4725_v51, -inf }
 0xf08   : > { %v4728_v11 = vpop.f32.mrf.mxu0 }
 0xf09   : > { %v2562_v48 = vsel %vm408_vm3, %v4728_v11, -inf }
 0xf10   : > { %v4733_v53 = vpop.f32.mrf.mxu0 }
 0xf11   : > { %v2713_v28 = vsel %vm408_vm3, %v4733_v53, -inf }
 0xf62   : > { %v2041_v14 = vpop.xlane.xlu0 %2040 }
 0xf71   : > { %v1985_v39 = vpop.f32.mrf.mxu3 }
 0xf72   : > { %1992 = vrot.lane.b32.xlu2 %v1985_v39, %s3790_s24  ;;  %v4758_v39 = vpop.f32.mrf.mxu1 }
 0xf79   : > { %v1987_v49 = vpop.f32.mrf.mxu3 }
 0xf7a   : > { %1994 = vrot.lane.b32.xlu2 %v1987_v49, %s3790_s24  ;;  %v2639_v49 = vsel %vm408_vm3, %v4758_v39, -inf }
 0xfa3   : > { %2025 = vmax.xlane.f32.xlu2 %v2024_v35 }
 0xfcc   : > { %v1993_v63 = vpop.permute.xlu2 %1992 }
 0xfcd   : > { %1998 = vst.msk [vmem:[#allocation5] sm:$0xff] %vm610_vm5, %v1993_v63 }
 0xfd4   : > { %v1995_v26 = vpop.permute.xlu2 %1994 }
 0xfd5   : > { %1999 = vst.msk [vmem:[#allocation5 + $0x8] sm:$0xff] %vm610_vm5, %v1995_v26  ;;  %v4766_v26 = vpop.f32.mrf.mxu0 }
0x1016   : > { %v2026_v30 = vpop.xlane.xlu2 %2025 }
0x1017   : > { %v2030_v43 = vsub.f32 %v4676_v34, %v2026_v30  ;;  %v4768_v30 = vpop.f32.mrf.mxu1 }
0x1019   : > { %v2032_v61 = vmul.f32 1.442695, %v2030_v43  ;;  %v2790_v43 = vsel %vm408_vm3, %v4768_v30, -inf }
0x101b   : > { %3621 = vpow2.f32 %v2032_v61  ;;  %v4772_v61 = vpop.f32.mrf.mxu0 }
0x1021   : > { %v3622_v20 = vpop.eup %3621 }
0x1022   : > { %v2036_v18 = vsel %vm408_vm3, %v3622_v20, 0.0 }
0x1023   : > { %2037 = vadd.xlane.f32.xlu1 %v2036_v18 }
0x103c   : > { %2047 = vrot.lane.b32.xlu1 %v4571_v17, %s3781_s6 }
0x1066   : > { %2102 = vmax.xlane.f32.xlu1 %v2101_v10 }
0x1096   : > { %v2038_v1 = vpop.xlane.xlu1 %2037 }
0x1097   : > { %3623 = vrcp.f32 %v2038_v1 }
0x1098   : > { %3625 = vrcp.f32 %v2041_v14 }
0x109d   : > { %v3624_v21 = vpop.eup %3623 }
0x109e   : > { %v3626_v27 = vpop.eup %3625  ;;  %v2044_v7 = vmul.f32 %v3624_v21, %v3622_v20  ;;  %v2867_v20 = vsel %vm408_vm3, %v4772_v61, -inf }
0x109f   : > { %v2045_v0 = vmul.f32 %v3626_v27, %v3620_v31  ;;  %v2636_v31 = vsel %vm408_vm3, %v4754_v44, -inf }
0x10a1   : > { %v2046_v41 = vpack.c.bf16 %v2045_v0, %v2044_v7 }
0x10ae   : > { %v2048_v5 = vpop.permute.xlu1 %2047 }
0x10af   : > { %2060 = vmatpush.bf16.msrb.mxu2 %v2048_v5 }
0x10b2   : > { %3326 = vmatmul.msk.bf16.vlgmr.msrb.gmra.mxu2 %vm408_vm3, %v2046_v41 }
0x10d9   : > { %v2103_v29 = vpop.xlane.xlu1 %2102 }
0x10da   : > { %v2107_v62 = vsub.f32 %v2096_v60, %v2103_v29 }
0x10dc   : > { %v2109_v32 = vmul.f32 1.442695, %v2107_v62 }
0x10de   : > { %3627 = vpow2.f32 %v2109_v32 }
0x10e4   : > { %v4712_v52 = vpop.eup %3627 }
0x10e5   : > { %v2113_v46 = vsel %vm408_vm3, %v4712_v52, 0.0 }
0x1135   : > { %v2062_v42 = vpop.f32.mrf.mxu2 }
0x1136   : > { %2069 = vrot.lane.b32.xlu0 %v2062_v42, %s3786_s20 }
0x113d   : > { %v2064_v34 = vpop.f32.mrf.mxu2 }
0x113e   : > { %2071 = vrot.lane.b32.xlu2 %v2064_v34, %s3786_s20 }
0x1160   : > { %2105 = vmax.xlane.f32.xlu0 %v2104_v33 }
0x1167   : > { %2114 = vadd.xlane.f32.xlu2 %v2113_v46 }
0x1168   : > { %2179 = vmax.xlane.f32.xlu0 %v2178_v3 }
0x117c   : > { %2124 = vrot.lane.b32.xlu0 %v4571_v17, %s3782_s15 }
0x1198   : > { %v2072_v47 = vpop.permute.xlu2 %2071 }
0x1199   : > { %2076 = vst.msk [vmem:[#allocation5 + $0x8] sm:$0xff] %vm688_vm6, %v2072_v47 }
0x11a6   : > { %2333 = vmax.xlane.f32.xlu0 %v2332_v8  ;;  %v4792_v8 = vpop.f32.mrf.mxu0 }
0x11a8   : > { %v2070_v58 = vpop.permute.xlu0 %2069 }
0x11a9   : > { %2075 = vst.msk [vmem:[#allocation5] sm:$0xff] %vm688_vm6, %v2070_v58 }
0x11ae   : > { %2714 = vmax.xlane.f32.xlu0 %v2713_v28  ;;  %v2870_v28 = vsel %vm408_vm3, %v4792_v8, -inf }
0x11d3   : > { %v2106_v54 = vpop.xlane.xlu0 %2105 }
0x11d4   : > { %v2108_v55 = vsub.f32 %v2098_v25, %v2106_v54  ;;  %v4783_v25 = vpop.f32.mrf.mxu1 }
0x11d6   : > { %v2111_v56 = vmul.f32 1.442695, %v2108_v55 }
0x11d8   : > { %3629 = vpow2.f32 %v2111_v56 }
0x11da   : > { %v2115_v18 = vpop.xlane.xlu2 %2114 }
0x11db   : > { %v2180_v4 = vpop.xlane.xlu0 %2179 }
0x11dc   : > { %v2184_v2 = vsub.f32 %v2173_v22, %v2180_v4  ;;  %v2793_v22 = vsel %vm408_vm3, %v4783_v25, -inf }
0x11de   : > { %v3630_v40 = vpop.eup %3629  ;;  %v2186_v57 = vmul.f32 1.442695, %v2184_v2 }
0x11df   : > { %v2116_v9 = vsel %vm408_vm3, %v3630_v40, 0.0 }
0x11e0   : > { %2117 = vadd.xlane.f32.xlu1 %v2116_v9  ;;  %3631 = vpow2.f32 %v2186_v57 }
0x11e1   : > { %3633 = vrcp.f32 %v2115_v18 }
0x11e6   : > { %v4762_v35 = vpop.eup %3631 }
0x11e7   : > { %v2190_v63 = vsel %vm408_vm3, %v4762_v35, 0.0  ;;  %v3634_v10 = vpop.eup %3633 }
0x11e8   : > { %2182 = vmax.xlane.f32.xlu1 %v2181_v45  ;;  %v2121_v14 = vmul.f32 %v3634_v10, %v4712_v52 }
0x11ee   : > { %v2125_v38 = vpop.permute.xlu0 %2124 }
0x11ef   : > { %2137 = vmatpush.bf16.msra.mxu3 %v2125_v38 }
0x11f0   : > { %2256 = vmax.xlane.f32.xlu1 %v2255_v37  ;;  %v4813_v37 = vpop.f32.mrf.mxu1 }
0x11f8   : > { %2259 = vmax.xlane.f32.xlu1 %v2258_v12  ;;  %v4819_v2 = vpop.f32.mrf.mxu1 }
0x1200   : > { %2336 = vmax.xlane.f32.xlu1 %v2335_v15 }
0x1208   : > { %2491 = vmax.xlane.f32.xlu1 %v2490_v19 }
0x1210   : > { %2560 = vmax.xlane.f32.xlu1 %v2559_v50  ;;  %v2944_v50 = vsel %vm408_vm3, %v4813_v37, -inf }
0x1218   : > { %2563 = vmax.xlane.f32.xlu1 %v2562_v48 }
0x1219   : > { %v4811_v4 = vpop.xlane.xlu0 %2333 }
0x1220   : > { %2637 = vmax.xlane.f32.xlu1 %v2636_v31 }
0x1221   : > { %v2715_v48 = vpop.xlane.xlu0 %2714 }
0x1222   : > { %v2719_v57 = vsub.f32 %v4733_v53, %v2715_v48 }
0x1228   : > { %2640 = vmax.xlane.f32.xlu1 %v2639_v49 }
0x1230   : > { %2191 = vadd.xlane.f32.xlu1 %v2190_v63 }
0x1238   : > { %2791 = vmax.xlane.f32.xlu1 %v2790_v43  ;;  %v2721_v43 = vmul.f32 1.442695, %v2719_v57 }
0x1240   : > { %2868 = vmax.xlane.f32.xlu1 %v2867_v20 }
0x1253   : > { %v2118_v60 = vpop.xlane.xlu1 %2117 }
0x1254   : > { %3635 = vrcp.f32 %v2118_v60 }
0x125a   : > { %v3636_v1 = vpop.eup %3635 }
0x125b   : > { %v2122_v21 = vmul.f32 %v3636_v1, %v3630_v40  ;;  %v2183_v27 = vpop.xlane.xlu1 %2182 }
0x125c   : > { %v2185_v7 = vsub.f32 %v4717_v24, %v2183_v27 }
0x125d   : > { %v2123_v0 = vpack.c.bf16 %v2122_v21, %v2121_v14 }
0x125e   : > { %v2188_v5 = vmul.f32 1.442695, %v2185_v7 }
0x125f   : > { %3328 = vmatmul.msk.bf16.vlgmr.msra.gmra.mxu3 %vm408_vm3, %v2123_v0 }
0x1260   : > { %3637 = vpow2.f32 %v2188_v5 }
0x1263   : > { %v2257_v41 = vpop.xlane.xlu1 %2256 }
0x1264   : > { %v2261_v42 = vsub.f32 %v2250_v36, %v2257_v41 }
0x1266   : > { %v4779_v34 = vpop.eup %3637  ;;  %v2263_v29 = vmul.f32 1.442695, %v2261_v42 }
0x1267   : > { %v2193_v62 = vsel %vm408_vm3, %v4779_v34, 0.0 }
0x1268   : > { %3639 = vpow2.f32 %v2263_v29  ;;  %2194 = vadd.xlane.f32.xlu0 %v2193_v62 }
0x126b   : > { %v2260_v32 = vpop.xlane.xlu1 %2259 }
0x126c   : > { %v2262_v52 = vsub.f32 %v2252_v13, %v2260_v32 }
0x126e   : > { %v4785_v33 = vpop.eup %3639  ;;  %v2265_v3 = vmul.f32 1.442695, %v2262_v52 }
0x126f   : > { %v2267_v46 = vsel %vm408_vm3, %v4785_v33, 0.0 }
0x1270   : > { %2794 = vmax.xlane.f32.xlu0 %v2793_v22  ;;  %2268 = vadd.xlane.f32.xlu1 %v2267_v46  ;;  %3641 = vpow2.f32 %v2265_v3  ;;  %v4858_v22 = vld [vmem:[#allocation4] sm:$0xff] }
0x1273   : > { %v2337_v24 = vpop.xlane.xlu1 %2336 }
0x1274   : > { %v2339_v47 = vsub.f32 %v4723_v16, %v2337_v24 }
0x1276   : > { %v2342_v58 = vmul.f32 1.442695, %v2339_v47  ;;  %v4796_v54 = vpop.eup %3641 }
0x1277   : > { %v2270_v56 = vsel %vm408_vm3, %v4796_v54, 0.0 }
0x1278   : > { %3643 = vpow2.f32 %v2342_v58  ;;  %2871 = vmax.xlane.f32.xlu0 %v2870_v28 }
0x127b   : > { %v2492_v16 = vpop.xlane.xlu1 %2491 }
0x127c   : > { %v2494_v36 = vsub.f32 %v4746_v6, %v2492_v16 }
0x127e   : > { %v4798_v55 = vpop.eup %3643  ;;  %v2497_v38 = vmul.f32 1.442695, %v2494_v36  ;;  %v2487_v36 = vsel %vm408_vm3, %v4742_v23, -inf }
0x127f   : > { %v2347_v40 = vsel %vm408_vm3, %v4798_v55, 0.0 }
0x1280   : > { %2271 = vadd.xlane.f32.xlu0 %v2270_v56  ;;  %2348 = vadd.xlane.f32.xlu1 %v2347_v40  ;;  %3645 = vpow2.f32 %v2497_v38 }
0x1283   : > { %v4808_v9 = vpop.xlane.xlu1 %2560 }
0x1286   : > { %v4821_v6 = vpop.eup %3645 }
0x128b   : > { %v2564_v45 = vpop.xlane.xlu1 %2563 }
0x128c   : > { %v2566_v15 = vsub.f32 %v4728_v11, %v2564_v45  ;;  %v2502_v11 = vsel %vm408_vm3, %v4821_v6, 0.0 }
0x128e   : > { %v2569_v31 = vmul.f32 1.442695, %v2566_v15 }
0x1293   : > { %v2638_v13 = vpop.xlane.xlu1 %2637 }
0x1294   : > { %2278 = vrot.lane.b32.xlu0 %v4571_v17, %s3785_s18  ;;  %v2642_v12 = vsub.f32 %v4754_v44, %v2638_v13  ;;  %v2947_v44 = vsel %vm408_vm3, %v4819_v2, -inf }
0x1296   : > { %v2644_v19 = vmul.f32 1.442695, %v2642_v12 }
0x1298   : > { %3647 = vpow2.f32 %v2644_v19 }
0x1299   : > { %2355 = vrot.lane.b32.xlu1 %v4571_v17, %s3784_s17  ;;  %3649 = vpow2.f32 %v2569_v31 }
0x129a   : > { %3651 = vpow2.f32 %v2721_v43 }
0x129b   : > { %v2641_v49 = vpop.xlane.xlu1 %2640 }
0x129c   : > { %v2643_v63 = vsub.f32 %v4758_v39, %v2641_v49 }
0x129e   : > { %v4829_v20 = vpop.eup %3647  ;;  %v2646_v18 = vmul.f32 1.442695, %v2643_v63 }
0x129f   : > { %v4831_v60 = vpop.eup %3649  ;;  %v2648_v53 = vsel %vm408_vm3, %v4829_v20, 0.0 }
0x12a0   : > { %3653 = vpow2.f32 %v2646_v18  ;;  %v2574_v10 = vsel %vm408_vm3, %v4831_v60, 0.0  ;;  %v4837_v1 = vpop.eup %3651 }
0x12a1   : > { %v2725_v14 = vsel %vm408_vm3, %v4837_v1, 0.0 }
0x12a3   : > { %v2192_v27 = vpop.xlane.xlu1 %2191 }
0x12a4   : > { %3655 = vrcp.f32 %v2192_v27 }
0x12a6   : > { %v4839_v39 = vpop.eup %3653 }
0x12a7   : > { %v2651_v21 = vsel %vm408_vm3, %v4839_v39, 0.0 }
0x12aa   : > { %v3656_v0 = vpop.eup %3655 }
0x12ab   : > { %v4846_v42 = vmul.f32 %v3656_v0, %v4762_v35  ;;  %v4856_v52 = vpop.xlane.xlu1 %2791  ;;  %v2565_v0 = vsub.f32 %v4725_v51, %v4808_v9 }
0x12b3   : > { %v2869_v35 = vpop.xlane.xlu1 %2868 }
0x12b4   : > { %v2873_v58 = vsub.f32 %v4772_v61, %v2869_v35  ;;  %v2716_v61 = vsel %vm408_vm3, %v4766_v26, -inf }
0x12b6   : > { %v2875_v16 = vmul.f32 1.442695, %v2873_v58 }
0x12be   : > { %2945 = vmax.xlane.f32.xlu0 %v2944_v50 }
0x12c3   : > { %2948 = vmax.xlane.f32.xlu1 %v2947_v44 }
0x12c6   : > { %2503 = vadd.xlane.f32.xlu0 %v2502_v11 }
0x12cb   : > { %2649 = vadd.xlane.f32.xlu1 %v2648_v53  ;;  %v4897_v53 = vpop.f32.mrf.mxu0 }
0x12ce   : > { %2575 = vadd.xlane.f32.xlu0 %v2574_v10 }
0x12d3   : > { %2726 = vadd.xlane.f32.xlu1 %v2725_v14  ;;  %v3021_v14 = vsel %vm408_vm3, %v4897_v53, -inf }
0x12d6   : > { %2652 = vadd.xlane.f32.xlu0 %v2651_v21 }
0x12db   : > { %v2195_v7 = vpop.xlane.xlu0 %2194 }
0x12dc   : > { %3657 = vrcp.f32 %v2195_v7 }
0x12e2   : > { %v3658_v5 = vpop.eup %3657  ;;  %v2139_v41 = vpop.f32.mrf.mxu3 }
0x12e3   : > { %v4849_v29 = vmul.f32 %v3658_v5, %v4779_v34  ;;  %2146 = vrot.lane.b32.xlu2 %v2139_v41, %s3791_s25  ;;  %v4852_v62 = vpop.xlane.xlu0 %2794  ;;  %v2269_v34 = vpop.xlane.xlu1 %2268  ;;  %v2567_v41 = vmul.f32 1.442695, %v2565_v0 }
0x12e5   : > { %v2200_v32 = vpack.c.bf16 %v4849_v29, %v4846_v42  ;;  %v2796_v42 = vsub.f32 %v4768_v30, %v4856_v52 }
0x12eb   : > { %v4862_v46 = vpop.xlane.xlu0 %2871 }
0x12ec   : > { %2659 = vrot.lane.b32.xlu1 %v4858_v22, %s3780_s5 }
0x12f3   : > { %v2272_v3 = vpop.xlane.xlu0 %2271 }
0x12f4   : > { %3659 = vrcp.f32 %v2272_v3 }
0x12f5   : > { %3661 = vrcp.f32 %v2269_v34 }
0x12f6   : > { %3663 = vpow2.f32 %v2875_v16 }
0x12fa   : > { %v3660_v24 = vpop.eup %3659 }
0x12fb   : > { %v3662_v47 = vpop.eup %3661  ;;  %v2276_v28 = vmul.f32 %v3660_v24, %v4796_v54  ;;  %v4877_v54 = vpop.xlane.xlu1 %2348 }
0x12fc   : > { %v2275_v56 = vmul.f32 %v3662_v47, %v4785_v33  ;;  %v4871_v38 = vpop.eup %3663 }
0x12fd   : > { %v2879_v33 = vsel %vm408_vm3, %v4871_v38, 0.0 }
0x12fe   : > { %v2277_v45 = vpack.c.bf16 %v2276_v28, %v2275_v56  ;;  %v2797_v28 = vsub.f32 %v4783_v25, %v4852_v62 }
0x1300   : > { %v2800_v29 = vmul.f32 1.442695, %v2797_v28 }
0x1306   : > { %v2279_v40 = vpop.permute.xlu0 %2278 }
0x1307   : > { %2291 = vmatpush.bf16.msrb.mxu3 %v2279_v40  ;;  %v2874_v40 = vsub.f32 %v4792_v8, %v4862_v46 }
0x130a   : > { %3332 = vmatmul.msk.bf16.vlgmr.msrb.gmra.mxu3 %vm408_vm3, %v2277_v45 }
0x130b   : > { %2526 = vmatpush.bf16.msra.mxu3 %v4858_v22  ;;  %v2356_v13 = vpop.permute.xlu1 %2355 }
0x130c   : > { %2488 = vmax.xlane.f32.xlu2 %v2487_v36 }
0x1314   : > { %2717 = vmax.xlane.f32.xlu2 %v2716_v61  ;;  %v2877_v61 = vmul.f32 1.442695, %v2874_v40 }
0x1316   : > { %2880 = vadd.xlane.f32.xlu1 %v2879_v33 }
0x132c   : > { %2201 = vrot.lane.b32.xlu2 %v4571_v17, %s3783_s16 }
0x1331   : > { %v2946_v12 = vpop.xlane.xlu0 %2945 }
0x1332   : > { %v2950_v15 = vsub.f32 %v4813_v37, %v2946_v12  ;;  %v2338_v37 = vsub.f32 %v4721_v59, %v4811_v4  ;;  %v3018_v59 = vpop.f32.mrf.mxu0 }
0x1333   : > { %v3024_v4 = vsel %vm408_vm3, %v3018_v59, -inf }
0x1334   : > { %v2952_v19 = vmul.f32 1.442695, %v2950_v15 }
0x1336   : > { %3665 = vpow2.f32 %v2952_v19  ;;  %v2949_v50 = vpop.xlane.xlu1 %2948 }
0x1337   : > { %v2951_v48 = vsub.f32 %v4819_v2, %v2949_v50  ;;  %v2340_v2 = vmul.f32 1.442695, %v2338_v37 }
0x1339   : > { %v2954_v31 = vmul.f32 1.442695, %v2951_v48  ;;  %v2141_v48 = vpop.f32.mrf.mxu3 }
0x133b   : > { %3667 = vpow2.f32 %v2954_v31  ;;  %v2504_v31 = vpop.xlane.xlu0 %2503 }
0x133c   : > { %v4883_v57 = vpop.eup %3665  ;;  %3669 = vpow2.f32 %v2340_v2 }
0x133d   : > { %v2147_v49 = vpop.permute.xlu2 %2146  ;;  %v2956_v44 = vsel %vm408_vm3, %v4883_v57, 0.0 }
0x133e   : > { %2152 = vst.msk [vmem:[#allocation5] sm:$0xff] %vm766_vm7, %v2147_v49  ;;  %2957 = vadd.xlane.f32.xlu1 %v2956_v44  ;;  %v4894_v43 = vpop.xlane.xlu1 %2649 }
0x1341   : > { %v4888_v17 = vpop.eup %3667 }
0x1342   : > { %v2959_v11 = vsel %vm408_vm3, %v4888_v17, 0.0  ;;  %v3670_v63 = vpop.eup %3669 }
0x1343   : > { %v2344_v18 = vsel %vm408_vm3, %v3670_v63, 0.0  ;;  %v2576_v49 = vpop.xlane.xlu0 %2575 }
0x1346   : > { %2960 = vadd.xlane.f32.xlu1 %v2959_v11  ;;  %v4899_v10 = vpop.xlane.xlu1 %2726 }
0x1355   : > { %2345 = vadd.xlane.f32.xlu2 %v2344_v18 }
0x135d   : > { %3022 = vmax.xlane.f32.xlu2 %v3021_v14 }
0x135e   : > { %v2660_v21 = vpop.permute.xlu1 %2659 }
0x135f   : > { %2672 = vmatpush.bf16.msrb.mxu3 %v2660_v21 }
0x1365   : > { %3025 = vmax.xlane.f32.xlu2 %v3024_v4 }
0x137f   : > { %v2489_v27 = vpop.xlane.xlu2 %2488 }
0x1380   : > { %v2493_v7 = vsub.f32 %v4742_v23, %v2489_v27 }
0x1382   : > { %v2495_v5 = vmul.f32 1.442695, %v2493_v7 }
0x1384   : > { %3671 = vpow2.f32 %v2495_v5 }
0x1385   : > { %3673 = vpow2.f32 %v2567_v41 }
0x1387   : > { %v2718_v35 = vpop.xlane.xlu2 %2717 }
0x1388   : > { %v2720_v3 = vsub.f32 %v4766_v26, %v2718_v35 }
0x138a   : > { %v4908_v34 = vpop.eup %3671  ;;  %v2723_v24 = vmul.f32 1.442695, %v2720_v3 }
0x138b   : > { %v2499_v47 = vsel %vm408_vm3, %v4908_v34, 0.0  ;;  %v4912_v23 = vpop.eup %3673 }
0x138c   : > { %3675 = vpow2.f32 %v2723_v24  ;;  %2500 = vadd.xlane.f32.xlu2 %v2499_v47  ;;  %v2571_v26 = vsel %vm408_vm3, %v4912_v23, 0.0 }
0x138d   : > { %3677 = vrcp.f32 %v4877_v54  ;;  %v2293_v11 = vpop.f32.mrf.mxu3 }
0x138e   : > { %3679 = vpow2.f32 %v2800_v29  ;;  %v2881_v29 = vpop.xlane.xlu1 %2880 }
0x138f   : > { %v2202_v58 = vpop.permute.xlu2 %2201 }
0x1390   : > { %2214 = vmatpush.bf16.msra.mxu2 %v2202_v58 }
0x1392   : > { %v4914_v51 = vpop.eup %3675 }
0x1393   : > { %3330 = vmatmul.msk.bf16.vlgmr.msra.gmra.mxu2 %vm408_vm3, %v2200_v32  ;;  %v2728_v9 = vsel %vm408_vm3, %v4914_v51, 0.0  ;;  %v2798_v32 = vmul.f32 1.442695, %v2796_v42  ;;  %v3678_v16 = vpop.eup %3677 }
0x1394   : > { %2368 = vmatpush.bf16.msrb.mxu2 %v2356_v13  ;;  %2572 = vadd.xlane.f32.xlu2 %v2571_v26  ;;  %v4935_v45 = vpop.eup %3679  ;;  %v2353_v25 = vmul.f32 %v3678_v16, %v4798_v55 }
0x1395   : > { %2729 = vadd.xlane.f32.xlu0 %v2728_v9  ;;  %v2805_v33 = vsel %vm408_vm3, %v4935_v45, 0.0  ;;  %v2295_v42 = vpop.f32.mrf.mxu3 }
0x13a9   : > { %2736 = vrot.lane.b32.xlu0 %v4858_v22, %s3781_s6 }
0x13ac   : > { %2582 = vrot.lane.b32.xlu2 %v4858_v22, %s3779_s4 }
0x13c8   : > { %v2346_v56 = vpop.xlane.xlu2 %2345 }
0x13c9   : > { %3681 = vrcp.f32 %v2346_v56 }
0x13ca   : > { %3683 = vpow2.f32 %v2798_v32 }
0x13cb   : > { %3685 = vpow2.f32 %v2877_v61 }
0x13cf   : > { %v3682_v36 = vpop.eup %3681 }
0x13d0   : > { %v2352_v62 = vmul.f32 %v3682_v36, %v3670_v63  ;;  %v3023_v30 = vpop.xlane.xlu2 %3022  ;;  %v4938_v52 = vpop.eup %3683 }
0x13d1   : > { %v2802_v8 = vsel %vm408_vm3, %v4938_v52, 0.0  ;;  %v4945_v13 = vpop.eup %3685  ;;  %v3027_v21 = vsub.f32 %v4897_v53, %v3023_v30 }
0x13d2   : > { %v2354_v54 = vpack.c.bf16 %v2353_v25, %v2352_v62  ;;  %v2882_v15 = vsel %vm408_vm3, %v4945_v13, 0.0 }
0x13d3   : > { %2806 = vadd.xlane.f32.xlu0 %v2805_v33  ;;  %v3029_v0 = vmul.f32 1.442695, %v3027_v21 }
0x13d4   : > { %3334 = vmatmul.msk.bf16.vlgmr.msrb.gmra.mxu2 %vm408_vm3, %v2354_v54 }
0x13d5   : > { %2803 = vadd.xlane.f32.xlu2 %v2802_v8 }
0x13d8   : > { %v3026_v46 = vpop.xlane.xlu2 %3025 }
0x13d9   : > { %v3028_v55 = vsub.f32 %v3018_v59, %v3026_v46  ;;  %v2653_v59 = vpop.xlane.xlu0 %2652 }
0x13db   : > { %v3031_v12 = vmul.f32 1.442695, %v3028_v55 }
0x13dd   : > { %3687 = vpow2.f32 %v3031_v12  ;;  %2883 = vadd.xlane.f32.xlu2 %v2882_v15 }
0x13de   : > { %3689 = vrcp.f32 %v2504_v31 }
0x13e3   : > { %v4949_v19 = vpop.eup %3687 }
0x13e4   : > { %v3036_v50 = vsel %vm408_vm3, %v4949_v19, 0.0  ;;  %v3690_v37 = vpop.eup %3689 }
0x13e5   : > { %3037 = vadd.xlane.f32.xlu1 %v3036_v50  ;;  %v2508_v63 = vmul.f32 %v3690_v37, %v4821_v6 }
0x13e7   : > { %2890 = vrot.lane.b32.xlu0 %v4858_v22, %s3783_s16 }
0x13ef   : > { %2967 = vrot.lane.b32.xlu0 %v4858_v22, %s3785_s18 }
0x13f5   : > { %2813 = vrot.lane.b32.xlu2 %v4858_v22, %s3782_s15 }
0x13f7   : > { %2148 = vrot.lane.b32.xlu0 %v2141_v48, %s3791_s25 }
0x13fe   : > { %3044 = vrot.lane.b32.xlu1 %v4858_v22, %s3784_s17 }
0x13ff   : > { %v2501_v44 = vpop.xlane.xlu2 %2500 }
0x1400   : > { %3691 = vrcp.f32 %v2501_v44 }
0x1401   : > { %3693 = vrcp.f32 %v2576_v49 }
0x1406   : > { %v3692_v2 = vpop.eup %3691  ;;  %2300 = vrot.lane.b32.xlu1 %v2293_v11, %s3792_s26 }
0x1407   : > { %v2507_v18 = vmul.f32 %v3692_v2, %v4908_v34  ;;  %v2573_v14 = vpop.xlane.xlu2 %2572  ;;  %v3694_v22 = vpop.eup %3693 }
0x1408   : > { %3695 = vrcp.f32 %v2573_v14  ;;  %v2580_v7 = vmul.f32 %v3694_v22, %v4831_v60  ;;  %v2730_v35 = vpop.xlane.xlu0 %2729 }
0x1409   : > { %v2509_v4 = vpack.c.bf16 %v2508_v63, %v2507_v18  ;;  %3697 = vrcp.f32 %v2653_v59 }
0x140a   : > { %3699 = vrcp.f32 %v4894_v43 }
0x140b   : > { %3362 = vmatmul.msk.bf16.vlgmr.msra.gmra.mxu3 %vm408_vm3, %v2509_v4  ;;  %3701 = vpow2.f32 %v3029_v0 }
0x140c   : > { %3703 = vrcp.f32 %v2730_v35 }
0x140d   : > { %3705 = vrcp.f32 %v4899_v10 }
0x140e   : > { %v3696_v27 = vpop.eup %3695 }
0x140f   : > { %v2579_v6 = vmul.f32 %v3696_v27, %v4912_v23  ;;  %v2583_v5 = vpop.permute.xlu2 %2582  ;;  %v3698_v3 = vpop.eup %3697 }
0x1410   : > { %2595 = vmatpush.bf16.msra.mxu2 %v2583_v5  ;;  %v3700_v53 = vpop.eup %3699  ;;  %v2657_v34 = vmul.f32 %v3698_v3, %v4839_v39 }
0x1411   : > { %v2581_v41 = vpack.c.bf16 %v2580_v7, %v2579_v6  ;;  %v2656_v60 = vmul.f32 %v3700_v53, %v4829_v20  ;;  %v4975_v24 = vpop.eup %3701 }
0x1412   : > { %v3704_v58 = vpop.eup %3703  ;;  %v3033_v39 = vsel %vm408_vm3, %v4975_v24, 0.0 }
0x1413   : > { %3364 = vmatmul.msk.bf16.vlgmr.msra.gmra.mxu2 %vm408_vm3, %v2581_v41  ;;  %v2658_v47 = vpack.c.bf16 %v2657_v34, %v2656_v60  ;;  %v3706_v26 = vpop.eup %3705  ;;  %v2734_v9 = vmul.f32 %v3704_v58, %v4914_v51  ;;  %v2958_v51 = vpop.xlane.xlu1 %2957 }
0x1414   : > { %v2733_v20 = vmul.f32 %v3706_v26, %v4837_v1 }
0x1416   : > { %v2216_v43 = vpop.f32.mrf.mxu2  ;;  %v2735_v28 = vpack.c.bf16 %v2734_v9, %v2733_v20 }
0x1417   : > { %2223 = vrot.lane.b32.xlu0 %v2216_v43, %s5079_s9 }
0x141b   : > { %v2737_v23 = vpop.permute.xlu0 %2736  ;;  %3366 = vmatmul.msk.bf16.vlgmr.msrb.gmra.mxu3 %vm408_vm3, %v2658_v47  ;;  %v2961_v55 = vpop.xlane.xlu1 %2960 }
0x141c   : > { %2749 = vmatpush.bf16.msrb.mxu2 %v2737_v23 }
0x141e   : > { %v2218_v10 = vpop.f32.mrf.mxu2  ;;  %3034 = vadd.xlane.f32.xlu2 %v3033_v39 }
0x141f   : > { %2225 = vrot.lane.b32.xlu0 %v2218_v10, %s5079_s9 }
0x1423   : > { %3368 = vmatmul.msk.bf16.vlgmr.msrb.gmra.mxu2 %vm408_vm3, %v2735_v28 }
0x1427   : > { %2302 = vrot.lane.b32.xlu0 %v2295_v42, %s3792_s26 }
0x1446   : > { %v2807_v56 = vpop.xlane.xlu0 %2806 }
0x1448   : > { %v2804_v32 = vpop.xlane.xlu2 %2803 }
0x1449   : > { %3707 = vrcp.f32 %v2804_v32 }
0x144a   : > { %3709 = vrcp.f32 %v2881_v29 }
0x144b   : > { %3711 = vrcp.f32 %v2807_v56 }
0x144f   : > { %v3708_v16 = vpop.eup %3707 }
0x1450   : > { %v2884_v40 = vpop.xlane.xlu2 %2883  ;;  %v3710_v36 = vpop.eup %3709  ;;  %v2810_v61 = vmul.f32 %v3708_v16, %v4938_v52 }
0x1451   : > { %3713 = vrcp.f32 %v2884_v40  ;;  %v3712_v1 = vpop.eup %3711  ;;  %v2887_v30 = vmul.f32 %v3710_v36, %v4871_v38 }
0x1452   : > { %v2811_v33 = vmul.f32 %v3712_v1, %v4935_v45  ;;  %3715 = vrcp.f32 %v2961_v55 }
0x1453   : > { %3717 = vrcp.f32 %v2958_v51 }
0x1454   : > { %v2812_v12 = vpack.c.bf16 %v2811_v33, %v2810_v61 }
0x1457   : > { %v3714_v25 = vpop.eup %3713  ;;  %v2370_v62 = vpop.f32.mrf.mxu2 }
0x1458   : > { %v2888_v54 = vmul.f32 %v3714_v25, %v4945_v13  ;;  %v2814_v46 = vpop.permute.xlu2 %2813  ;;  %2377 = vrot.lane.b32.xlu2 %v2370_v62, %s5080_s3  ;;  %v3716_v45 = vpop.eup %3715 }
0x1459   : > { %v2891_v8 = vpop.permute.xlu0 %2890  ;;  %2826 = vmatpush.bf16.msra.mxu3 %v2814_v46  ;;  %v3718_v13 = vpop.eup %3717  ;;  %v2965_v50 = vmul.f32 %v3716_v45, %v4888_v17 }
0x145a   : > { %2903 = vmatpush.bf16.msra.mxu2 %v2891_v8  ;;  %v2889_v15 = vpack.c.bf16 %v2888_v54, %v2887_v30  ;;  %v2964_v48 = vmul.f32 %v3718_v13, %v4883_v57  ;;  %v3038_v31 = vpop.xlane.xlu1 %3037 }
0x145b   : > { %3719 = vrcp.f32 %v3038_v31 }
0x145c   : > { %3370 = vmatmul.msk.bf16.vlgmr.msra.gmra.mxu3 %vm408_vm3, %v2812_v12  ;;  %v2966_v44 = vpack.c.bf16 %v2965_v50, %v2964_v48 }
0x145d   : > { %3372 = vmatmul.msk.bf16.vlgmr.msra.gmra.mxu2 %vm408_vm3, %v2889_v15 }
0x145f   : > { %v2372_v38 = vpop.f32.mrf.mxu2 }
0x1460   : > { %2379 = vrot.lane.b32.xlu1 %v2372_v38, %s5080_s3 }
0x1461   : > { %v2968_v52 = vpop.permute.xlu0 %2967  ;;  %v3720_v57 = vpop.eup %3719 }
0x1462   : > { %2980 = vmatpush.bf16.msrb.mxu3 %v2968_v52  ;;  %v3042_v21 = vmul.f32 %v3720_v57, %v4949_v19 }
0x1469   : > { %v2149_v49 = vpop.permute.xlu0 %2148 }
0x146a   : > { %2153 = vst.msk [vmem:[#allocation5 + $0x8] sm:$0xff] %vm766_vm7, %v2149_v49 }
0x146c   : > { %3374 = vmatmul.msk.bf16.vlgmr.msrb.gmra.mxu3 %vm408_vm3, %v2966_v44 }
0x1470   : > { %v3045_v37 = vpop.permute.xlu1 %3044 }
0x1471   : > { %3057 = vmatpush.bf16.msrb.mxu2 %v3045_v37 }
0x1478   : > { %v2301_v2 = vpop.permute.xlu1 %2300 }
0x1489   : > { %v2224_v11 = vpop.permute.xlu0 %2223 }
0x148a   : > { %2229 = vst.msk [vmem:[#allocation5] sm:$0xff] %vm844_vm8, %v2224_v11 }
0x148b   : > { %2306 = vst.msk [vmem:[#allocation5] sm:$0xff] %vm922_vm9, %v2301_v2 }
0x148e   : > { %v2528_v63 = vpop.f32.mrf.mxu3 }
0x1491   : > { %v2226_v17 = vpop.permute.xlu0 %2225  ;;  %v3035_v18 = vpop.xlane.xlu2 %3034 }
0x1492   : > { %2230 = vst.msk [vmem:[#allocation5 + $0x8] sm:$0xff] %vm844_vm8, %v2226_v17  ;;  %3721 = vrcp.f32 %v3035_v18 }
0x1496   : > { %v2530_v14 = vpop.f32.mrf.mxu3  ;;  %v2597_v59 = vpop.f32.mrf.mxu2 }
0x1497   : > { %2604 = vrot.lane.b32.xlu0 %v2597_v59, %s3787_s21 }
0x1498   : > { %v3722_v4 = vpop.eup %3721 }
0x1499   : > { %v3041_v22 = vmul.f32 %v3722_v4, %v4975_v24  ;;  %v2303_v27 = vpop.permute.xlu0 %2302 }
0x149a   : > { %2307 = vst.msk [vmem:[#allocation5 + $0x8] sm:$0xff] %vm922_vm9, %v2303_v27 }
0x149b   : > { %v3043_v7 = vpack.c.bf16 %v3042_v21, %v3041_v22 }
0x149d   : > { %3376 = vmatmul.msk.bf16.vlgmr.msrb.gmra.mxu2 %vm408_vm3, %v3043_v7 }
0x149e   : > { %v2599_v0 = vpop.f32.mrf.mxu2  ;;  %v2674_v6 = vpop.f32.mrf.mxu3 }
0x149f   : > { %2606 = vrot.lane.b32.xlu1 %v2599_v0, %s3787_s21  ;;  %2681 = vrot.lane.b32.xlu0 %v2674_v6, %s3790_s24 }
0x14a6   : > { %v2676_v5 = vpop.f32.mrf.mxu3  ;;  %v2751_v41 = vpop.f32.mrf.mxu2 }
0x14a7   : > { %2758 = vrot.lane.b32.xlu0 %v2751_v41, %s3786_s20  ;;  %2683 = vrot.lane.b32.xlu1 %v2676_v5, %s3790_s24 }
0x14ae   : > { %v2753_v19 = vpop.f32.mrf.mxu2 }
0x14af   : > { %2760 = vrot.lane.b32.xlu2 %v2753_v19, %s3786_s20 }
0x14b2   : > { %v2378_v35 = vpop.permute.xlu2 %2377 }
0x14b3   : > { %2383 = vst.msk [vmem:[#allocation5] sm:$0xff] %vm1000_vm10, %v2378_v35 }
0x14ba   : > { %v2385_v3 = vld [vmem:[#allocation5] sm:$0xf]  ;;  %v2387_v53 = vld [vmem:[#allocation5 + $0x4] sm:$0xf] }
0x14bb   : > { %2386 = vst.msk [vmem:[%s4539_s22 + $0x8] sm:$0xf] %vm1004_vm11, %v2385_v3 }
0x14bc   : > { %3335 = vst.msk [vmem:[%s4539_s22 + $0x18] sm:$0xf] %vm1004_vm11, %v2387_v53 }
0x14bd   : > { %2533 = vst.msk [vmem:[#allocation5] sm:$0xff] %vm387_vm2, %v2528_v63 }
0x14d2   : > { %v2380_v34 = vpop.permute.xlu1 %2379 }
0x14d3   : > { %2384 = vst.msk [vmem:[#allocation5 + $0x8] sm:$0xff] %vm1000_vm10, %v2380_v34 }
0x14da   : > { %v2389_v43 = vld [vmem:[#allocation5 + $0x8] sm:$0xf]  ;;  %v2391_v60 = vld [vmem:[#allocation5 + $0xc] sm:$0xf] }
0x14db   : > { %3336 = vst.msk [vmem:[%s4539_s22 + $0x28] sm:$0xf] %vm1004_vm11, %v2389_v43 }
0x14dc   : > { %3337 = vst.msk [vmem:[%s4539_s22 + $0x38] sm:$0xf] %vm1004_vm11, %v2391_v60 }
0x14dd   : > { %2534 = vst.msk [vmem:[#allocation5 + $0x8] sm:$0xff] %vm387_vm2, %v2530_v14 }
0x14df   : > { %v2828_v24 = vpop.f32.mrf.mxu3 }
0x14e0   : > { %v2905_v47 = vpop.f32.mrf.mxu2  ;;  %2835 = vrot.lane.b32.xlu1 %v2828_v24, %s3791_s25 }
0x14e1   : > { %2912 = vrot.lane.b32.xlu2 %v2905_v47, %s5079_s9 }
0x14e7   : > { %v2830_v58 = vpop.f32.mrf.mxu3 }
0x14e8   : > { %v2907_v23 = vpop.f32.mrf.mxu2  ;;  %2837 = vrot.lane.b32.xlu0 %v2830_v58, %s3791_s25 }
0x14e9   : > { %2914 = vrot.lane.b32.xlu1 %v2907_v23, %s5079_s9 }
0x14ef   : > { %v2982_v26 = vpop.f32.mrf.mxu3 }
0x14f0   : > { %2989 = vrot.lane.b32.xlu0 %v2982_v26, %s3792_s26 }
0x14f7   : > { %v2984_v9 = vpop.f32.mrf.mxu3 }
0x14f8   : > { %2991 = vrot.lane.b32.xlu2 %v2984_v9, %s3792_s26 }
0x1509   : > { %v2605_v39 = vpop.permute.xlu0 %2604  ;;  %v2761_v29 = vpop.permute.xlu2 %2760 }
0x150a   : > { %2610 = vst.msk [vmem:[#allocation5] sm:$0xff] %vm532_vm4, %v2605_v39 }
0x1511   : > { %v2682_v10 = vpop.permute.xlu0 %2681  ;;  %v2607_v20 = vpop.permute.xlu1 %2606 }
0x1512   : > { %2687 = vst.msk [vmem:[#allocation5] sm:$0xff] %vm610_vm5, %v2682_v10 }
0x1513   : > { %2611 = vst.msk [vmem:[#allocation5 + $0x8] sm:$0xff] %vm532_vm4, %v2607_v20 }
0x1519   : > { %v2759_v28 = vpop.permute.xlu0 %2758  ;;  %v2684_v42 = vpop.permute.xlu1 %2683 }
0x151a   : > { %2764 = vst.msk [vmem:[#allocation5] sm:$0xff] %vm688_vm6, %v2759_v28 }
0x151b   : > { %2688 = vst.msk [vmem:[#allocation5 + $0x8] sm:$0xff] %vm610_vm5, %v2684_v42 }
0x151c   : > { %2765 = vst.msk [vmem:[#allocation5 + $0x8] sm:$0xff] %vm688_vm6, %v2761_v29 }
0x1520   : > { %v3059_v32 = vpop.f32.mrf.mxu2 }
0x1521   : > { %3066 = vrot.lane.b32.xlu1 %v3059_v32, %s5080_s3 }
0x1528   : > { %v3061_v56 = vpop.f32.mrf.mxu2 }
0x1529   : > { %3068 = vrot.lane.b32.xlu0 %v3061_v56, %s5080_s3 }
0x153b   : > { %v2913_v40 = vpop.permute.xlu2 %2912 }
0x1552   : > { %v2836_v51 = vpop.permute.xlu1 %2835  ;;  %v2992_v1 = vpop.permute.xlu2 %2991 }
0x1553   : > { %2841 = vst.msk [vmem:[#allocation5] sm:$0xff] %vm766_vm7, %v2836_v51 }
0x1554   : > { %2918 = vst.msk [vmem:[#allocation5] sm:$0xff] %vm844_vm8, %v2913_v40 }
0x155a   : > { %v2838_v16 = vpop.permute.xlu0 %2837 }
0x155b   : > { %v2915_v36 = vpop.permute.xlu1 %2914  ;;  %2842 = vst.msk [vmem:[#allocation5 + $0x8] sm:$0xff] %vm766_vm7, %v2838_v16 }
0x155c   : > { %2919 = vst.msk [vmem:[#allocation5 + $0x8] sm:$0xff] %vm844_vm8, %v2915_v36 }
0x155d   : > { %2996 = vst.msk [vmem:[#allocation5 + $0x8] sm:$0xff] %vm922_vm9, %v2992_v1 }
0x1562   : > { %v2990_v61 = vpop.permute.xlu0 %2989 }
0x1563   : > { %2995 = vst.msk [vmem:[#allocation5] sm:$0xff] %vm922_vm9, %v2990_v61 }
0x1593   : > { %v3067_v25 = vpop.permute.xlu1 %3066 }
0x1594   : > { %3072 = vst.msk [vmem:[#allocation5] sm:$0xff] %vm1000_vm10, %v3067_v25 }
0x159b   : > { %v3074_v62 = vld [vmem:[#allocation5] sm:$0xf]  ;;  %v3076_v30 = vld [vmem:[#allocation5 + $0x4] sm:$0xf]  ;;  %v3069_v33 = vpop.permute.xlu0 %3068 }
0x159c   : > { %3075 = vst.msk [vmem:[%s4539_s22 + $0xc] sm:$0xf] %vm1004_vm11, %v3074_v62 }
0x159d   : > { %3377 = vst.msk [vmem:[%s4539_s22 + $0x1c] sm:$0xf] %vm1004_vm11, %v3076_v30 }
0x159e   : > { %3073 = vst.msk [vmem:[#allocation5 + $0x8] sm:$0xff] %vm1000_vm10, %v3069_v33 }
0x15a5   : > { %v3078_v54 = vld [vmem:[#allocation5 + $0x8] sm:$0xf]  ;;  %v3080_v8 = vld [vmem:[#allocation5 + $0xc] sm:$0xf] }
0x15a6   : > { %3378 = vst.msk [vmem:[%s4539_s22 + $0x2c] sm:$0xf] %vm1004_vm11, %v3078_v54 }
0x15a7   : > { %3379 = vst.msk [vmem:[%s4539_s22 + $0x3c] sm:$0xf] %vm1004_vm11, %v3080_v8 }
0x15a8 PF: > { %s11_s12 = sadd.s32 1, %s3777_s12   ;;  %s5081_s6 = smov %s3757_s7 }
0x15a9   : > { %p8_p12 = scmp.ge.s32.totalorder %s11_s12, 10   ;;  %s5082_s7 = smov %s3854_s19 }
0x15aa   : > { %s5083_s8 = smov %s3769_s10  ;;  %s5084_s9 = smov %s3773_s11 }
0x15ab   : > { %s5085_s10 = smov %s5088_s13  ;;  %s5086_s11 = smov %s5092_s14 }
0x15ac   :  { %10 = sbr.rel (!%p8_p12) target bundleno = 4 (0x4), region = 111 }

</bundles_post_ra>
